<compile_context>
chip_gen: v7x
topology: tpu7x:2x2x1
jax: 0.10.0
libtpu: 0.0.40
codegen_flags: <defaults>
</compile_context>

<pallas_src>
import math

import jax
import jax.numpy as jnp
from jax.experimental import pallas as pl
from jax.experimental.pallas import tpu as pltpu

VMEM = pl.BlockSpec(memory_space=pltpu.MemorySpace.VMEM)
SMEM = pl.BlockSpec(memory_space=pltpu.MemorySpace.SMEM)

_BN_EPS = 1e-5
_NORM_EPS_SQ = 1e-24   # F.normalize clamps ||x|| at 1e-12 -> clamp squared norm


# ----------------------------------------------------------- fused kernel ---

def _byol_kernel(mom_ref, x_ref,
                 we_o, be_o,
                 pw1_o, pb1_o, pg_o, pbe_o, pw2_o, pb2_o,
                 qw1, qb1, qg, qbe, qw2, qb2,
                 we_t, be_t,
                 pw1_t, pb1_t, pg_t, pbe_t, pw2_t, pb2_t,
                 loss_ref,
                 we_t_out, be_t_out,
                 pw1_t_out, pb1_t_out, pg_t_out, pbe_t_out, pw2_t_out, pb2_t_out):
    m = mom_ref[0, 0]          # runtime momentum (SMEM scalar -> no recompile on schedule)
    om = 1.0 - m
    B2 = x_ref.shape[0]        # 2B stacked rows (view1 ; view2)
    B = B2 // 2

    def bf16(w):
        return w if w.dtype == jnp.bfloat16 else w.astype(jnp.bfloat16)

    def mlp_head(h_in, w1, b1, g, be, w2, b2):
        # Linear -> BatchNorm1d (training mode, PER-VIEW batch stats) -> ReLU -> Linear
        h = jnp.dot(bf16(h_in), bf16(w1), preferred_element_type=jnp.float32) + b1
        hid = h.shape[1]
        h3 = h.reshape(2, B, hid)                 # layout-free split (B multiple of 8)
        mu = jnp.mean(h3, axis=1, keepdims=True)
        var = jnp.mean((h3 - mu) * (h3 - mu), axis=1, keepdims=True)
        hn = ((h3 - mu) * jax.lax.rsqrt(var + _BN_EPS)).reshape(B2, hid) * g + be
        a = jnp.maximum(hn, 0.0)
        return jnp.dot(bf16(a), bf16(w2), preferred_element_type=jnp.float32) + b2

    # --- encoder: two independent N=128 dots on the ORIGINAL weights -----------
    # (no concat / column slices; MXU starts without waiting on the EMA pass)
    x_bf = bf16(x_ref[...])
    f_online = jnp.dot(x_bf, bf16(we_o[...]),
                       preferred_element_type=jnp.float32) + be_o[...]
    f_t_raw = jnp.dot(x_bf, bf16(we_t[...]),
                      preferred_element_type=jnp.float32) + be_t[...]
    # EMA/matmul linearity:
    #   x @ (m*Wt + (1-m)*Wo) + (m*bt + (1-m)*bo) = m*(x@Wt + bt) + (1-m)*(x@Wo + bo)
    f_target = m * f_t_raw + om * f_online

    # --- EMA target-parameter update (independent VPU work, overlaps MXU) ------
    ema = lambda t, o: m * t + om * o
    we_t_out[...] = ema(we_t[...], we_o[...])
    be_t_out[...] = ema(be_t[...], be_o[...])
    pw1_t_new = ema(pw1_t[...], pw1_o[...]);  pw1_t_out[...] = pw1_t_new
    pb1_t_new = ema(pb1_t[...], pb1_o[...]);  pb1_t_out[...] = pb1_t_new
    pg_t_new = ema(pg_t[...], pg_o[...]);     pg_t_out[...] = pg_t_new
    pbe_t_new = ema(pbe_t[...], pbe_o[...]);  pbe_t_out[...] = pbe_t_new
    pw2_t_new = ema(pw2_t[...], pw2_o[...]);  pw2_t_out[...] = pw2_t_new
    pb2_t_new = ema(pb2_t[...], pb2_o[...]);  pb2_t_out[...] = pb2_t_new

    # --- online branch: projector -> predictor (both views stacked) ------------
    z_online = mlp_head(f_online, pw1_o[...], pb1_o[...], pg_o[...], pbe_o[...],
                        pw2_o[...], pb2_o[...])
    p_all = mlp_head(z_online, qw1[...], qb1[...], qg[...], qbe[...],
                     qw2[...], qb2[...])

    # --- target branch with EMA-updated projector (update-then-forward) --------
    z_target = mlp_head(f_target, pw1_t_new, pb1_t_new, pg_t_new, pbe_t_new,
                        pw2_t_new, pb2_t_new)

    p1, p2 = p_all[:B], p_all[B:]
    z1_t, z2_t = z_target[:B], z_target[B:]

    # --- symmetric negative-cosine loss (rsqrt on EUP, f32) ---------------------
    def cos_sum(p, z):
        pp = jnp.sum(p * p, axis=1, keepdims=True)
        zz = jnp.sum(z * z, axis=1, keepdims=True)
        pz = jnp.sum(p * z, axis=1, keepdims=True)
        return jnp.sum(pz * jax.lax.rsqrt(jnp.maximum(pp, _NORM_EPS_SQ))
                          * jax.lax.rsqrt(jnp.maximum(zz, _NORM_EPS_SQ)))

    loss_ref[0, 0] = -0.5 * (cos_sum(p1, z2_t) + cos_sum(p2, z1_t)) / B


# --------------------------------------------------------------- wrapper ----

def byol_forward(params, x1, x2, momentum=0.996):
    online_enc = params["online_encoder"]        # (W, b)
    online_proj = params["online_projector"]     # (w1, b1, gamma, beta, w2, b2)
    online_pred = params["online_predictor"]
    target_enc = params["target_encoder"]
    target_proj = params["target_projector"]

    B = x1.shape[0]
    # stack the two views once, outside the kernel (no in-kernel row concat)
    x = jnp.concatenate([x1.reshape(B, -1), x2.reshape(B, -1)], axis=0)   # (2B, Din)
    mom = jnp.full((1, 1), momentum, jnp.float32)   # runtime scalar, not a closure const

    # non-EMA'd predictor matmul weights travel as bf16 (half the HBM bytes)
    qw1, qb1, qg, qbe, qw2, qb2 = online_pred
    pred = (qw1.astype(jnp.bfloat16), qb1, qg, qbe, qw2.astype(jnp.bfloat16), qb2)

    inputs = (mom, x, *online_enc, *online_proj, *pred, *target_enc, *target_proj)

    target_params = (*target_enc, *target_proj)          # 8 f32 arrays
    target_shapes = tuple(jax.ShapeDtypeStruct(a.shape, a.dtype) for a in target_params)
    out_shape = (jax.ShapeDtypeStruct((1, 1), jnp.float32), *target_shapes)
    out_specs = (SMEM,) + (VMEM,) * len(target_shapes)

    # EMA update is logically in-place: alias target-param inputs -> target outputs
    n_t = len(target_params)
    first_t_in = len(inputs) - n_t
    io_aliases = {first_t_in + i: 1 + i for i in range(n_t)}

    # advisory cost estimate for XLA scheduling around the fused call
    Din = x.shape[1]
    F = online_enc[0].shape[1]
    Ph = online_proj[0].shape[1]
    Pd = online_proj[4].shape[1]
    Qh = online_pred[0].shape[1]
    M = 2 * B
    flops = 2 * M * (2 * Din * F + 2 * (F * Ph + Ph * Pd) + (Pd * Qh + Qh * Pd))
    bytes_accessed = (sum(int(a.size) * a.dtype.itemsize for a in inputs)
                      + 4 + sum(int(math.prod(s.shape)) * 4 for s in target_shapes))
    cost = pl.CostEstimate(flops=int(flops),
                           transcendentals=int(4 * Ph + 2 * Qh + 4 * B),
                           bytes_accessed=int(bytes_accessed))

    outs = pl.pallas_call(
        _byol_kernel,
        out_shape=out_shape,
        in_specs=[SMEM] + [VMEM] * (len(inputs) - 1),
        out_specs=out_specs,
        input_output_aliases=io_aliases,
        compiler_params=pltpu.CompilerParams(vmem_limit_bytes=32 * 1024 * 1024),
        cost_estimate=cost,
    )(*inputs)

    loss = outs[0][0, 0]
    new_target = outs[1:]
    new_target_state = {
        "target_encoder": tuple(new_target[0:2]),
        "target_projector": tuple(new_target[2:8]),
    }
    return loss, new_target_state


# ------------------------------------------------------------ param init ----

def init_linear(key, d_in, d_out):
    kw, kb = jax.random.split(key)
    bound = 1.0 / jnp.sqrt(jnp.float32(d_in))
    w = jax.random.uniform(kw, (d_in, d_out), jnp.float32, -bound, bound)
    b = jax.random.uniform(kb, (1, d_out), jnp.float32, -bound, bound)
    return (w, b)


def init_mlp_head(key, d_in, d_hid, d_out):
    k1, k2 = jax.random.split(key)
    w1, b1 = init_linear(k1, d_in, d_hid)
    gamma = jnp.ones((1, d_hid), jnp.float32)    # BatchNorm1d default affine
    beta = jnp.zeros((1, d_hid), jnp.float32)
    w2, b2 = init_linear(k2, d_hid, d_out)
    return (w1, b1, gamma, beta, w2, b2)


# ------------------------------------------------------------------- main ---

if __name__ == "__main__":
    B, C, H, W = 8, 4, 16, 16
    feature_dim, hidden_dim, proj_dim = 128, 256, 128   # predictor hidden = 128

    key = jax.random.PRNGKey(0)
    ke, kp, kq, kx1, kx2 = jax.random.split(key, 5)

    online_encoder = init_linear(ke, C * H * W, feature_dim)
    online_projector = init_mlp_head(kp, feature_dim, hidden_dim, proj_dim)
    online_predictor = init_mlp_head(kq, proj_dim, hidden_dim // 2, proj_dim)

    params = {
        "online_encoder": online_encoder,
        "online_projector": online_projector,
        "online_predictor": online_predictor,
        # deepcopy semantics: target starts as an exact copy of online
        "target_encoder": jax.tree_util.tree_map(jnp.copy, online_encoder),
        "target_projector": jax.tree_util.tree_map(jnp.copy, online_projector),
    }

    x1 = jax.random.normal(kx1, (B, C, H, W), jnp.float32)
    x2 = jax.random.normal(kx2, (B, C, H, W), jnp.float32)

    loss, new_target = byol_forward(params, x1, x2, momentum=0.996)
    jax.block_until_ready(loss)
    jax.block_until_ready(new_target)
    assert loss.shape == () and bool(jnp.isfinite(loss))
    print("KERNEL_OK")
</pallas_src>

<mosaic_0001>
module attributes {stable_mosaic.version = 11 : i64} {
  func.func @_byol_kernel(%arg0: memref<1x1xf32, #tpu.memory_space<smem>>, %arg1: memref<16x1024xf32, #tpu.memory_space<vmem>>, %arg2: memref<1024x128xf32, #tpu.memory_space<vmem>>, %arg3: memref<1x128xf32, #tpu.memory_space<vmem>>, %arg4: memref<128x256xf32, #tpu.memory_space<vmem>>, %arg5: memref<1x256xf32, #tpu.memory_space<vmem>>, %arg6: memref<1x256xf32, #tpu.memory_space<vmem>>, %arg7: memref<1x256xf32, #tpu.memory_space<vmem>>, %arg8: memref<256x128xf32, #tpu.memory_space<vmem>>, %arg9: memref<1x128xf32, #tpu.memory_space<vmem>>, %arg10: memref<128x128xbf16, #tpu.memory_space<vmem>>, %arg11: memref<1x128xf32, #tpu.memory_space<vmem>>, %arg12: memref<1x128xf32, #tpu.memory_space<vmem>>, %arg13: memref<1x128xf32, #tpu.memory_space<vmem>>, %arg14: memref<128x128xbf16, #tpu.memory_space<vmem>>, %arg15: memref<1x128xf32, #tpu.memory_space<vmem>>, %arg16: memref<1024x128xf32, #tpu.memory_space<vmem>>, %arg17: memref<1x128xf32, #tpu.memory_space<vmem>>, %arg18: memref<128x256xf32, #tpu.memory_space<vmem>>, %arg19: memref<1x256xf32, #tpu.memory_space<vmem>>, %arg20: memref<1x256xf32, #tpu.memory_space<vmem>>, %arg21: memref<1x256xf32, #tpu.memory_space<vmem>>, %arg22: memref<256x128xf32, #tpu.memory_space<vmem>>, %arg23: memref<1x128xf32, #tpu.memory_space<vmem>>, %arg24: memref<1x1xf32, #tpu.memory_space<smem>>, %arg25: memref<1024x128xf32, #tpu.memory_space<vmem>>, %arg26: memref<1x128xf32, #tpu.memory_space<vmem>>, %arg27: memref<128x256xf32, #tpu.memory_space<vmem>>, %arg28: memref<1x256xf32, #tpu.memory_space<vmem>>, %arg29: memref<1x256xf32, #tpu.memory_space<vmem>>, %arg30: memref<1x256xf32, #tpu.memory_space<vmem>>, %arg31: memref<256x128xf32, #tpu.memory_space<vmem>>, %arg32: memref<1x128xf32, #tpu.memory_space<vmem>>) attributes {dimension_semantics = [], scalar_prefetch = 0 : i64, scratch_operands = 0 : i64, tpu.core_type = #tpu.core_type<tc>} {
    %c0 = arith.constant 0 : index
    %c0_0 = arith.constant 0 : index
    %0 = memref.load %arg0[%c0, %c0_0] : memref<1x1xf32, #tpu.memory_space<smem>>
    %cst = arith.constant 1.000000e+00 : f32
    %1 = arith.subf %cst, %0 : f32
    %c0_1 = arith.constant 0 : index
    %c0_2 = arith.constant 0 : index
    %2 = vector.load %arg1[%c0_1, %c0_2] : memref<16x1024xf32, #tpu.memory_space<vmem>>, vector<16x1024xf32>
    %3 = arith.truncf %2 : vector<16x1024xf32> to vector<16x1024xbf16>
    %c0_3 = arith.constant 0 : index
    %c0_4 = arith.constant 0 : index
    %4 = vector.load %arg2[%c0_3, %c0_4] : memref<1024x128xf32, #tpu.memory_space<vmem>>, vector<1024x128xf32>
    %5 = arith.truncf %4 : vector<1024x128xf32> to vector<1024x128xbf16>
    %cst_5 = arith.constant dense<0.000000e+00> : vector<16x128xf32>
    %6 = tpu.matmul %3, %5, %cst_5 {dimension_numbers = #tpu.dot_dimension_numbers<[1], [0], [0], [1], [0, 0, 1, 1], [], []>} : vector<16x1024xbf16>, vector<1024x128xbf16>, vector<16x128xf32> -> vector<16x128xf32>
    %c0_6 = arith.constant 0 : index
    %c0_7 = arith.constant 0 : index
    %7 = vector.load %arg3[%c0_6, %c0_7] : memref<1x128xf32, #tpu.memory_space<vmem>>, vector<1x128xf32>
    %8 = vector.broadcast %7 : vector<1x128xf32> to vector<16x128xf32>
    %9 = arith.addf %6, %8 : vector<16x128xf32>
    %c0_8 = arith.constant 0 : index
    %c0_9 = arith.constant 0 : index
    %10 = vector.load %arg16[%c0_8, %c0_9] : memref<1024x128xf32, #tpu.memory_space<vmem>>, vector<1024x128xf32>
    %11 = arith.truncf %10 : vector<1024x128xf32> to vector<1024x128xbf16>
    %cst_10 = arith.constant dense<0.000000e+00> : vector<16x128xf32>
    %12 = tpu.matmul %3, %11, %cst_10 {dimension_numbers = #tpu.dot_dimension_numbers<[1], [0], [0], [1], [0, 0, 1, 1], [], []>} : vector<16x1024xbf16>, vector<1024x128xbf16>, vector<16x128xf32> -> vector<16x128xf32>
    %c0_11 = arith.constant 0 : index
    %c0_12 = arith.constant 0 : index
    %13 = vector.load %arg17[%c0_11, %c0_12] : memref<1x128xf32, #tpu.memory_space<vmem>>, vector<1x128xf32>
    %14 = vector.broadcast %13 : vector<1x128xf32> to vector<16x128xf32>
    %15 = arith.addf %12, %14 : vector<16x128xf32>
    %16 = vector.broadcast %0 : f32 to vector<16x128xf32>
    %17 = arith.mulf %16, %15 : vector<16x128xf32>
    %18 = vector.broadcast %1 : f32 to vector<16x128xf32>
    %19 = arith.mulf %18, %9 : vector<16x128xf32>
    %20 = arith.addf %17, %19 : vector<16x128xf32>
    %c0_13 = arith.constant 0 : index
    %c0_14 = arith.constant 0 : index
    %21 = vector.load %arg16[%c0_13, %c0_14] : memref<1024x128xf32, #tpu.memory_space<vmem>>, vector<1024x128xf32>
    %c0_15 = arith.constant 0 : index
    %c0_16 = arith.constant 0 : index
    %22 = vector.load %arg2[%c0_15, %c0_16] : memref<1024x128xf32, #tpu.memory_space<vmem>>, vector<1024x128xf32>
    %23 = vector.broadcast %0 : f32 to vector<1024x128xf32>
    %24 = arith.mulf %23, %21 : vector<1024x128xf32>
    %25 = vector.broadcast %1 : f32 to vector<1024x128xf32>
    %26 = arith.mulf %25, %22 : vector<1024x128xf32>
    %27 = arith.addf %24, %26 : vector<1024x128xf32>
    %c0_17 = arith.constant 0 : index
    %c0_18 = arith.constant 0 : index
    %28 = vector.load %arg25[%c0_17, %c0_18] : memref<1024x128xf32, #tpu.memory_space<vmem>>, vector<1024x128xf32>
    tpu.vector_store %arg25[%c0_17, %c0_18], %27 {strides = array<i32>} : memref<1024x128xf32, #tpu.memory_space<vmem>>, vector<1024x128xf32>,
    %c0_19 = arith.constant 0 : index
    %c0_20 = arith.constant 0 : index
    %29 = vector.load %arg17[%c0_19, %c0_20] : memref<1x128xf32, #tpu.memory_space<vmem>>, vector<1x128xf32>
    %c0_21 = arith.constant 0 : index
    %c0_22 = arith.constant 0 : index
    %30 = vector.load %arg3[%c0_21, %c0_22] : memref<1x128xf32, #tpu.memory_space<vmem>>, vector<1x128xf32>
    %31 = vector.broadcast %0 : f32 to vector<1x128xf32>
    %32 = arith.mulf %31, %29 : vector<1x128xf32>
    %33 = vector.broadcast %1 : f32 to vector<1x128xf32>
    %34 = arith.mulf %33, %30 : vector<1x128xf32>
    %35 = arith.addf %32, %34 : vector<1x128xf32>
    %c0_23 = arith.constant 0 : index
    %c0_24 = arith.constant 0 : index
    %36 = vector.load %arg26[%c0_23, %c0_24] : memref<1x128xf32, #tpu.memory_space<vmem>>, vector<1x128xf32>
    tpu.vector_store %arg26[%c0_23, %c0_24], %35 {strides = array<i32>} : memref<1x128xf32, #tpu.memory_space<vmem>>, vector<1x128xf32>,
    %c0_25 = arith.constant 0 : index
    %c0_26 = arith.constant 0 : index
    %37 = vector.load %arg18[%c0_25, %c0_26] : memref<128x256xf32, #tpu.memory_space<vmem>>, vector<128x256xf32>
    %c0_27 = arith.constant 0 : index
    %c0_28 = arith.constant 0 : index
    %38 = vector.load %arg4[%c0_27, %c0_28] : memref<128x256xf32, #tpu.memory_space<vmem>>, vector<128x256xf32>
    %39 = vector.broadcast %0 : f32 to vector<128x256xf32>
    %40 = arith.mulf %39, %37 : vector<128x256xf32>
    %41 = vector.broadcast %1 : f32 to vector<128x256xf32>
    %42 = arith.mulf %41, %38 : vector<128x256xf32>
    %43 = arith.addf %40, %42 : vector<128x256xf32>
    %c0_29 = arith.constant 0 : index
    %c0_30 = arith.constant 0 : index
    %44 = vector.load %arg27[%c0_29, %c0_30] : memref<128x256xf32, #tpu.memory_space<vmem>>, vector<128x256xf32>
    tpu.vector_store %arg27[%c0_29, %c0_30], %43 {strides = array<i32>} : memref<128x256xf32, #tpu.memory_space<vmem>>, vector<128x256xf32>,
    %c0_31 = arith.constant 0 : index
    %c0_32 = arith.constant 0 : index
    %45 = vector.load %arg19[%c0_31, %c0_32] : memref<1x256xf32, #tpu.memory_space<vmem>>, vector<1x256xf32>
    %c0_33 = arith.constant 0 : index
    %c0_34 = arith.constant 0 : index
    %46 = vector.load %arg5[%c0_33, %c0_34] : memref<1x256xf32, #tpu.memory_space<vmem>>, vector<1x256xf32>
    %47 = vector.broadcast %0 : f32 to vector<1x256xf32>
    %48 = arith.mulf %47, %45 : vector<1x256xf32>
    %49 = vector.broadcast %1 : f32 to vector<1x256xf32>
    %50 = arith.mulf %49, %46 : vector<1x256xf32>
    %51 = arith.addf %48, %50 : vector<1x256xf32>
    %c0_35 = arith.constant 0 : index
    %c0_36 = arith.constant 0 : index
    %52 = vector.load %arg28[%c0_35, %c0_36] : memref<1x256xf32, #tpu.memory_space<vmem>>, vector<1x256xf32>
    tpu.vector_store %arg28[%c0_35, %c0_36], %51 {strides = array<i32>} : memref<1x256xf32, #tpu.memory_space<vmem>>, vector<1x256xf32>,
    %c0_37 = arith.constant 0 : index
    %c0_38 = arith.constant 0 : index
    %53 = vector.load %arg20[%c0_37, %c0_38] : memref<1x256xf32, #tpu.memory_space<vmem>>, vector<1x256xf32>
    %c0_39 = arith.constant 0 : index
    %c0_40 = arith.constant 0 : index
    %54 = vector.load %arg6[%c0_39, %c0_40] : memref<1x256xf32, #tpu.memory_space<vmem>>, vector<1x256xf32>
    %55 = vector.broadcast %0 : f32 to vector<1x256xf32>
    %56 = arith.mulf %55, %53 : vector<1x256xf32>
    %57 = vector.broadcast %1 : f32 to vector<1x256xf32>
    %58 = arith.mulf %57, %54 : vector<1x256xf32>
    %59 = arith.addf %56, %58 : vector<1x256xf32>
    %c0_41 = arith.constant 0 : index
    %c0_42 = arith.constant 0 : index
    %60 = vector.load %arg29[%c0_41, %c0_42] : memref<1x256xf32, #tpu.memory_space<vmem>>, vector<1x256xf32>
    tpu.vector_store %arg29[%c0_41, %c0_42], %59 {strides = array<i32>} : memref<1x256xf32, #tpu.memory_space<vmem>>, vector<1x256xf32>,
    %c0_43 = arith.constant 0 : index
    %c0_44 = arith.constant 0 : index
    %61 = vector.load %arg21[%c0_43, %c0_44] : memref<1x256xf32, #tpu.memory_space<vmem>>, vector<1x256xf32>
    %c0_45 = arith.constant 0 : index
    %c0_46 = arith.constant 0 : index
    %62 = vector.load %arg7[%c0_45, %c0_46] : memref<1x256xf32, #tpu.memory_space<vmem>>, vector<1x256xf32>
    %63 = vector.broadcast %0 : f32 to vector<1x256xf32>
    %64 = arith.mulf %63, %61 : vector<1x256xf32>
    %65 = vector.broadcast %1 : f32 to vector<1x256xf32>
    %66 = arith.mulf %65, %62 : vector<1x256xf32>
    %67 = arith.addf %64, %66 : vector<1x256xf32>
    %c0_47 = arith.constant 0 : index
    %c0_48 = arith.constant 0 : index
    %68 = vector.load %arg30[%c0_47, %c0_48] : memref<1x256xf32, #tpu.memory_space<vmem>>, vector<1x256xf32>
    tpu.vector_store %arg30[%c0_47, %c0_48], %67 {strides = array<i32>} : memref<1x256xf32, #tpu.memory_space<vmem>>, vector<1x256xf32>,
    %c0_49 = arith.constant 0 : index
    %c0_50 = arith.constant 0 : index
    %69 = vector.load %arg22[%c0_49, %c0_50] : memref<256x128xf32, #tpu.memory_space<vmem>>, vector<256x128xf32>
    %c0_51 = arith.constant 0 : index
    %c0_52 = arith.constant 0 : index
    %70 = vector.load %arg8[%c0_51, %c0_52] : memref<256x128xf32, #tpu.memory_space<vmem>>, vector<256x128xf32>
    %71 = vector.broadcast %0 : f32 to vector<256x128xf32>
    %72 = arith.mulf %71, %69 : vector<256x128xf32>
    %73 = vector.broadcast %1 : f32 to vector<256x128xf32>
    %74 = arith.mulf %73, %70 : vector<256x128xf32>
    %75 = arith.addf %72, %74 : vector<256x128xf32>
    %c0_53 = arith.constant 0 : index
    %c0_54 = arith.constant 0 : index
    %76 = vector.load %arg31[%c0_53, %c0_54] : memref<256x128xf32, #tpu.memory_space<vmem>>, vector<256x128xf32>
    tpu.vector_store %arg31[%c0_53, %c0_54], %75 {strides = array<i32>} : memref<256x128xf32, #tpu.memory_space<vmem>>, vector<256x128xf32>,
    %c0_55 = arith.constant 0 : index
    %c0_56 = arith.constant 0 : index
    %77 = vector.load %arg23[%c0_55, %c0_56] : memref<1x128xf32, #tpu.memory_space<vmem>>, vector<1x128xf32>
    %c0_57 = arith.constant 0 : index
    %c0_58 = arith.constant 0 : index
    %78 = vector.load %arg9[%c0_57, %c0_58] : memref<1x128xf32, #tpu.memory_space<vmem>>, vector<1x128xf32>
    %79 = vector.broadcast %0 : f32 to vector<1x128xf32>
    %80 = arith.mulf %79, %77 : vector<1x128xf32>
    %81 = vector.broadcast %1 : f32 to vector<1x128xf32>
    %82 = arith.mulf %81, %78 : vector<1x128xf32>
    %83 = arith.addf %80, %82 : vector<1x128xf32>
    %c0_59 = arith.constant 0 : index
    %c0_60 = arith.constant 0 : index
    %84 = vector.load %arg32[%c0_59, %c0_60] : memref<1x128xf32, #tpu.memory_space<vmem>>, vector<1x128xf32>
    tpu.vector_store %arg32[%c0_59, %c0_60], %83 {strides = array<i32>} : memref<1x128xf32, #tpu.memory_space<vmem>>, vector<1x128xf32>,
    %c0_61 = arith.constant 0 : index
    %c0_62 = arith.constant 0 : index
    %85 = vector.load %arg4[%c0_61, %c0_62] : memref<128x256xf32, #tpu.memory_space<vmem>>, vector<128x256xf32>
    %c0_63 = arith.constant 0 : index
    %c0_64 = arith.constant 0 : index
    %86 = vector.load %arg5[%c0_63, %c0_64] : memref<1x256xf32, #tpu.memory_space<vmem>>, vector<1x256xf32>
    %c0_65 = arith.constant 0 : index
    %c0_66 = arith.constant 0 : index
    %87 = vector.load %arg6[%c0_65, %c0_66] : memref<1x256xf32, #tpu.memory_space<vmem>>, vector<1x256xf32>
    %c0_67 = arith.constant 0 : index
    %c0_68 = arith.constant 0 : index
    %88 = vector.load %arg7[%c0_67, %c0_68] : memref<1x256xf32, #tpu.memory_space<vmem>>, vector<1x256xf32>
    %c0_69 = arith.constant 0 : index
    %c0_70 = arith.constant 0 : index
    %89 = vector.load %arg8[%c0_69, %c0_70] : memref<256x128xf32, #tpu.memory_space<vmem>>, vector<256x128xf32>
    %c0_71 = arith.constant 0 : index
    %c0_72 = arith.constant 0 : index
    %90 = vector.load %arg9[%c0_71, %c0_72] : memref<1x128xf32, #tpu.memory_space<vmem>>, vector<1x128xf32>
    %91 = arith.truncf %9 : vector<16x128xf32> to vector<16x128xbf16>
    %92 = arith.truncf %85 : vector<128x256xf32> to vector<128x256xbf16>
    %cst_73 = arith.constant dense<0.000000e+00> : vector<16x256xf32>
    %93 = tpu.matmul %91, %92, %cst_73 {dimension_numbers = #tpu.dot_dimension_numbers<[1], [0], [0], [1], [0, 0, 1, 1], [], []>} : vector<16x128xbf16>, vector<128x256xbf16>, vector<16x256xf32> -> vector<16x256xf32>
    %94 = vector.broadcast %86 : vector<1x256xf32> to vector<16x256xf32>
    %95 = arith.addf %93, %94 : vector<16x256xf32>
    %96 = vector.shape_cast %95 : vector<16x256xf32> to vector<2x8x256xf32>
    %cst_74 = arith.constant dense<0.000000e+00> : vector<2x256xf32>
    %97 = vector.multi_reduction <add>, %96, %cst_74 [1] : vector<2x8x256xf32> to vector<2x256xf32>
    %98 = vector.shape_cast %97 : vector<2x256xf32> to vector<2x1x256xf32>
    %cst_75 = arith.constant 8.000000e+00 : f32
    %99 = vector.broadcast %cst_75 : f32 to vector<2x1x256xf32>
    %100 = arith.divf %98, %99 : vector<2x1x256xf32>
    %101 = vector.broadcast %100 : vector<2x1x256xf32> to vector<2x8x256xf32>
    %102 = arith.subf %96, %101 : vector<2x8x256xf32>
    %103 = vector.broadcast %100 : vector<2x1x256xf32> to vector<2x8x256xf32>
    %104 = arith.subf %96, %103 : vector<2x8x256xf32>
    %105 = arith.mulf %102, %104 : vector<2x8x256xf32>
    %cst_76 = arith.constant dense<0.000000e+00> : vector<2x256xf32>
    %106 = vector.multi_reduction <add>, %105, %cst_76 [1] : vector<2x8x256xf32> to vector<2x256xf32>
    %107 = vector.shape_cast %106 : vector<2x256xf32> to vector<2x1x256xf32>
    %cst_77 = arith.constant 8.000000e+00 : f32
    %108 = vector.broadcast %cst_77 : f32 to vector<2x1x256xf32>
    %109 = arith.divf %107, %108 : vector<2x1x256xf32>
    %110 = vector.broadcast %100 : vector<2x1x256xf32> to vector<2x8x256xf32>
    %111 = arith.subf %96, %110 : vector<2x8x256xf32>
    %cst_78 = arith.constant 9.99999974E-6 : f32
    %112 = vector.broadcast %cst_78 : f32 to vector<2x1x256xf32>
    %113 = arith.addf %109, %112 : vector<2x1x256xf32>
    %114 = math.rsqrt %113 : vector<2x1x256xf32>
    %115 = vector.broadcast %114 : vector<2x1x256xf32> to vector<2x8x256xf32>
    %116 = arith.mulf %111, %115 : vector<2x8x256xf32>
    %117 = vector.shape_cast %116 : vector<2x8x256xf32> to vector<16x256xf32>
    %118 = vector.broadcast %87 : vector<1x256xf32> to vector<16x256xf32>
    %119 = arith.mulf %117, %118 : vector<16x256xf32>
    %120 = vector.broadcast %88 : vector<1x256xf32> to vector<16x256xf32>
    %121 = arith.addf %119, %120 : vector<16x256xf32>
    %cst_79 = arith.constant 0.000000e+00 : f32
    %122 = vector.broadcast %cst_79 : f32 to vector<16x256xf32>
    %123 = arith.maximumf %121, %122 : vector<16x256xf32>
    %124 = arith.truncf %123 : vector<16x256xf32> to vector<16x256xbf16>
    %125 = arith.truncf %89 : vector<256x128xf32> to vector<256x128xbf16>
    %cst_80 = arith.constant dense<0.000000e+00> : vector<16x128xf32>
    %126 = tpu.matmul %124, %125, %cst_80 {dimension_numbers = #tpu.dot_dimension_numbers<[1], [0], [0], [1], [0, 0, 1, 1], [], []>} : vector<16x256xbf16>, vector<256x128xbf16>, vector<16x128xf32> -> vector<16x128xf32>
    %127 = vector.broadcast %90 : vector<1x128xf32> to vector<16x128xf32>
    %128 = arith.addf %126, %127 : vector<16x128xf32>
    %c0_81 = arith.constant 0 : index
    %c0_82 = arith.constant 0 : index
    %129 = vector.load %arg10[%c0_81, %c0_82] : memref<128x128xbf16, #tpu.memory_space<vmem>>, vector<128x128xbf16>
    %c0_83 = arith.constant 0 : index
    %c0_84 = arith.constant 0 : index
    %130 = vector.load %arg11[%c0_83, %c0_84] : memref<1x128xf32, #tpu.memory_space<vmem>>, vector<1x128xf32>
    %c0_85 = arith.constant 0 : index
    %c0_86 = arith.constant 0 : index
    %131 = vector.load %arg12[%c0_85, %c0_86] : memref<1x128xf32, #tpu.memory_space<vmem>>, vector<1x128xf32>
    %c0_87 = arith.constant 0 : index
    %c0_88 = arith.constant 0 : index
    %132 = vector.load %arg13[%c0_87, %c0_88] : memref<1x128xf32, #tpu.memory_space<vmem>>, vector<1x128xf32>
    %c0_89 = arith.constant 0 : index
    %c0_90 = arith.constant 0 : index
    %133 = vector.load %arg14[%c0_89, %c0_90] : memref<128x128xbf16, #tpu.memory_space<vmem>>, vector<128x128xbf16>
    %c0_91 = arith.constant 0 : index
    %c0_92 = arith.constant 0 : index
    %134 = vector.load %arg15[%c0_91, %c0_92] : memref<1x128xf32, #tpu.memory_space<vmem>>, vector<1x128xf32>
    %135 = arith.truncf %128 : vector<16x128xf32> to vector<16x128xbf16>
    %cst_93 = arith.constant dense<0.000000e+00> : vector<16x128xf32>
    %136 = tpu.matmul %135, %129, %cst_93 {dimension_numbers = #tpu.dot_dimension_numbers<[1], [0], [0], [1], [0, 0, 1, 1], [], []>} : vector<16x128xbf16>, vector<128x128xbf16>, vector<16x128xf32> -> vector<16x128xf32>
    %137 = vector.broadcast %130 : vector<1x128xf32> to vector<16x128xf32>
    %138 = arith.addf %136, %137 : vector<16x128xf32>
    %139 = vector.shape_cast %138 : vector<16x128xf32> to vector<2x8x128xf32>
    %cst_94 = arith.constant dense<0.000000e+00> : vector<2x128xf32>
    %140 = vector.multi_reduction <add>, %139, %cst_94 [1] : vector<2x8x128xf32> to vector<2x128xf32>
    %141 = vector.shape_cast %140 : vector<2x128xf32> to vector<2x1x128xf32>
    %cst_95 = arith.constant 8.000000e+00 : f32
    %142 = vector.broadcast %cst_95 : f32 to vector<2x1x128xf32>
    %143 = arith.divf %141, %142 : vector<2x1x128xf32>
    %144 = vector.broadcast %143 : vector<2x1x128xf32> to vector<2x8x128xf32>
    %145 = arith.subf %139, %144 : vector<2x8x128xf32>
    %146 = vector.broadcast %143 : vector<2x1x128xf32> to vector<2x8x128xf32>
    %147 = arith.subf %139, %146 : vector<2x8x128xf32>
    %148 = arith.mulf %145, %147 : vector<2x8x128xf32>
    %cst_96 = arith.constant dense<0.000000e+00> : vector<2x128xf32>
    %149 = vector.multi_reduction <add>, %148, %cst_96 [1] : vector<2x8x128xf32> to vector<2x128xf32>
    %150 = vector.shape_cast %149 : vector<2x128xf32> to vector<2x1x128xf32>
    %cst_97 = arith.constant 8.000000e+00 : f32
    %151 = vector.broadcast %cst_97 : f32 to vector<2x1x128xf32>
    %152 = arith.divf %150, %151 : vector<2x1x128xf32>
    %153 = vector.broadcast %143 : vector<2x1x128xf32> to vector<2x8x128xf32>
    %154 = arith.subf %139, %153 : vector<2x8x128xf32>
    %cst_98 = arith.constant 9.99999974E-6 : f32
    %155 = vector.broadcast %cst_98 : f32 to vector<2x1x128xf32>
    %156 = arith.addf %152, %155 : vector<2x1x128xf32>
    %157 = math.rsqrt %156 : vector<2x1x128xf32>
    %158 = vector.broadcast %157 : vector<2x1x128xf32> to vector<2x8x128xf32>
    %159 = arith.mulf %154, %158 : vector<2x8x128xf32>
    %160 = vector.shape_cast %159 : vector<2x8x128xf32> to vector<16x128xf32>
    %161 = vector.broadcast %131 : vector<1x128xf32> to vector<16x128xf32>
    %162 = arith.mulf %160, %161 : vector<16x128xf32>
    %163 = vector.broadcast %132 : vector<1x128xf32> to vector<16x128xf32>
    %164 = arith.addf %162, %163 : vector<16x128xf32>
    %cst_99 = arith.constant 0.000000e+00 : f32
    %165 = vector.broadcast %cst_99 : f32 to vector<16x128xf32>
    %166 = arith.maximumf %164, %165 : vector<16x128xf32>
    %167 = arith.truncf %166 : vector<16x128xf32> to vector<16x128xbf16>
    %cst_100 = arith.constant dense<0.000000e+00> : vector<16x128xf32>
    %168 = tpu.matmul %167, %133, %cst_100 {dimension_numbers = #tpu.dot_dimension_numbers<[1], [0], [0], [1], [0, 0, 1, 1], [], []>} : vector<16x128xbf16>, vector<128x128xbf16>, vector<16x128xf32> -> vector<16x128xf32>
    %169 = vector.broadcast %134 : vector<1x128xf32> to vector<16x128xf32>
    %170 = arith.addf %168, %169 : vector<16x128xf32>
    %171 = arith.truncf %20 : vector<16x128xf32> to vector<16x128xbf16>
    %172 = arith.truncf %43 : vector<128x256xf32> to vector<128x256xbf16>
    %cst_101 = arith.constant dense<0.000000e+00> : vector<16x256xf32>
    %173 = tpu.matmul %171, %172, %cst_101 {dimension_numbers = #tpu.dot_dimension_numbers<[1], [0], [0], [1], [0, 0, 1, 1], [], []>} : vector<16x128xbf16>, vector<128x256xbf16>, vector<16x256xf32> -> vector<16x256xf32>
    %174 = vector.broadcast %51 : vector<1x256xf32> to vector<16x256xf32>
    %175 = arith.addf %173, %174 : vector<16x256xf32>
    %176 = vector.shape_cast %175 : vector<16x256xf32> to vector<2x8x256xf32>
    %cst_102 = arith.constant dense<0.000000e+00> : vector<2x256xf32>
    %177 = vector.multi_reduction <add>, %176, %cst_102 [1] : vector<2x8x256xf32> to vector<2x256xf32>
    %178 = vector.shape_cast %177 : vector<2x256xf32> to vector<2x1x256xf32>
    %cst_103 = arith.constant 8.000000e+00 : f32
    %179 = vector.broadcast %cst_103 : f32 to vector<2x1x256xf32>
    %180 = arith.divf %178, %179 : vector<2x1x256xf32>
    %181 = vector.broadcast %180 : vector<2x1x256xf32> to vector<2x8x256xf32>
    %182 = arith.subf %176, %181 : vector<2x8x256xf32>
    %183 = vector.broadcast %180 : vector<2x1x256xf32> to vector<2x8x256xf32>
    %184 = arith.subf %176, %183 : vector<2x8x256xf32>
    %185 = arith.mulf %182, %184 : vector<2x8x256xf32>
    %cst_104 = arith.constant dense<0.000000e+00> : vector<2x256xf32>
    %186 = vector.multi_reduction <add>, %185, %cst_104 [1] : vector<2x8x256xf32> to vector<2x256xf32>
    %187 = vector.shape_cast %186 : vector<2x256xf32> to vector<2x1x256xf32>
    %cst_105 = arith.constant 8.000000e+00 : f32
    %188 = vector.broadcast %cst_105 : f32 to vector<2x1x256xf32>
    %189 = arith.divf %187, %188 : vector<2x1x256xf32>
    %190 = vector.broadcast %180 : vector<2x1x256xf32> to vector<2x8x256xf32>
    %191 = arith.subf %176, %190 : vector<2x8x256xf32>
    %cst_106 = arith.constant 9.99999974E-6 : f32
    %192 = vector.broadcast %cst_106 : f32 to vector<2x1x256xf32>
    %193 = arith.addf %189, %192 : vector<2x1x256xf32>
    %194 = math.rsqrt %193 : vector<2x1x256xf32>
    %195 = vector.broadcast %194 : vector<2x1x256xf32> to vector<2x8x256xf32>
    %196 = arith.mulf %191, %195 : vector<2x8x256xf32>
    %197 = vector.shape_cast %196 : vector<2x8x256xf32> to vector<16x256xf32>
    %198 = vector.broadcast %59 : vector<1x256xf32> to vector<16x256xf32>
    %199 = arith.mulf %197, %198 : vector<16x256xf32>
    %200 = vector.broadcast %67 : vector<1x256xf32> to vector<16x256xf32>
    %201 = arith.addf %199, %200 : vector<16x256xf32>
    %cst_107 = arith.constant 0.000000e+00 : f32
    %202 = vector.broadcast %cst_107 : f32 to vector<16x256xf32>
    %203 = arith.maximumf %201, %202 : vector<16x256xf32>
    %204 = arith.truncf %203 : vector<16x256xf32> to vector<16x256xbf16>
    %205 = arith.truncf %75 : vector<256x128xf32> to vector<256x128xbf16>
    %cst_108 = arith.constant dense<0.000000e+00> : vector<16x128xf32>
    %206 = tpu.matmul %204, %205, %cst_108 {dimension_numbers = #tpu.dot_dimension_numbers<[1], [0], [0], [1], [0, 0, 1, 1], [], []>} : vector<16x256xbf16>, vector<256x128xbf16>, vector<16x128xf32> -> vector<16x128xf32>
    %207 = vector.broadcast %83 : vector<1x128xf32> to vector<16x128xf32>
    %208 = arith.addf %206, %207 : vector<16x128xf32>
    %209 = vector.extract_strided_slice %170 {offsets = [0, 0], sizes = [8, 128], strides = [1, 1]} : vector<16x128xf32> to vector<8x128xf32>
    %210 = vector.extract_strided_slice %170 {offsets = [8, 0], sizes = [8, 128], strides = [1, 1]} : vector<16x128xf32> to vector<8x128xf32>
    %211 = vector.extract_strided_slice %208 {offsets = [0, 0], sizes = [8, 128], strides = [1, 1]} : vector<16x128xf32> to vector<8x128xf32>
    %212 = vector.extract_strided_slice %208 {offsets = [8, 0], sizes = [8, 128], strides = [1, 1]} : vector<16x128xf32> to vector<8x128xf32>
    %213 = arith.mulf %209, %209 : vector<8x128xf32>
    %cst_109 = arith.constant dense<0.000000e+00> : vector<8xf32>
    %214 = vector.multi_reduction <add>, %213, %cst_109 [1] : vector<8x128xf32> to vector<8xf32>
    %215 = vector.shape_cast %214 : vector<8xf32> to vector<8x1xf32>
    %216 = arith.mulf %212, %212 : vector<8x128xf32>
    %cst_110 = arith.constant dense<0.000000e+00> : vector<8xf32>
    %217 = vector.multi_reduction <add>, %216, %cst_110 [1] : vector<8x128xf32> to vector<8xf32>
    %218 = vector.shape_cast %217 : vector<8xf32> to vector<8x1xf32>
    %219 = arith.mulf %209, %212 : vector<8x128xf32>
    %cst_111 = arith.constant dense<0.000000e+00> : vector<8xf32>
    %220 = vector.multi_reduction <add>, %219, %cst_111 [1] : vector<8x128xf32> to vector<8xf32>
    %221 = vector.shape_cast %220 : vector<8xf32> to vector<8x1xf32>
    %cst_112 = arith.constant 1.000000e-24 : f32
    %222 = vector.broadcast %cst_112 : f32 to vector<8x1xf32>
    %223 = arith.maximumf %215, %222 : vector<8x1xf32>
    %224 = math.rsqrt %223 : vector<8x1xf32>
    %225 = arith.mulf %221, %224 : vector<8x1xf32>
    %cst_113 = arith.constant 1.000000e-24 : f32
    %226 = vector.broadcast %cst_113 : f32 to vector<8x1xf32>
    %227 = arith.maximumf %218, %226 : vector<8x1xf32>
    %228 = math.rsqrt %227 : vector<8x1xf32>
    %229 = arith.mulf %225, %228 : vector<8x1xf32>
    %230 = vector.shape_cast %229 : vector<8x1xf32> to vector<1x8x1xf32>
    %cst_114 = arith.constant dense<0.000000e+00> : vector<1xf32>
    %231 = vector.multi_reduction <add>, %230, %cst_114 [1, 2] : vector<1x8x1xf32> to vector<1xf32>
    %232 = vector.shape_cast %231 : vector<1xf32> to vector<1x1x1xf32>
    %233 = vector.extract %232[0, 0, 0] : f32 from vector<1x1x1xf32>
    %234 = arith.mulf %210, %210 : vector<8x128xf32>
    %cst_115 = arith.constant dense<0.000000e+00> : vector<8xf32>
    %235 = vector.multi_reduction <add>, %234, %cst_115 [1] : vector<8x128xf32> to vector<8xf32>
    %236 = vector.shape_cast %235 : vector<8xf32> to vector<8x1xf32>
    %237 = arith.mulf %211, %211 : vector<8x128xf32>
    %cst_116 = arith.constant dense<0.000000e+00> : vector<8xf32>
    %238 = vector.multi_reduction <add>, %237, %cst_116 [1] : vector<8x128xf32> to vector<8xf32>
    %239 = vector.shape_cast %238 : vector<8xf32> to vector<8x1xf32>
    %240 = arith.mulf %210, %211 : vector<8x128xf32>
    %cst_117 = arith.constant dense<0.000000e+00> : vector<8xf32>
    %241 = vector.multi_reduction <add>, %240, %cst_117 [1] : vector<8x128xf32> to vector<8xf32>
    %242 = vector.shape_cast %241 : vector<8xf32> to vector<8x1xf32>
    %cst_118 = arith.constant 1.000000e-24 : f32
    %243 = vector.broadcast %cst_118 : f32 to vector<8x1xf32>
    %244 = arith.maximumf %236, %243 : vector<8x1xf32>
    %245 = math.rsqrt %244 : vector<8x1xf32>
    %246 = arith.mulf %242, %245 : vector<8x1xf32>
    %cst_119 = arith.constant 1.000000e-24 : f32
    %247 = vector.broadcast %cst_119 : f32 to vector<8x1xf32>
    %248 = arith.maximumf %239, %247 : vector<8x1xf32>
    %249 = math.rsqrt %248 : vector<8x1xf32>
    %250 = arith.mulf %246, %249 : vector<8x1xf32>
    %251 = vector.shape_cast %250 : vector<8x1xf32> to vector<1x8x1xf32>
    %cst_120 = arith.constant dense<0.000000e+00> : vector<1xf32>
    %252 = vector.multi_reduction <add>, %251, %cst_120 [1, 2] : vector<1x8x1xf32> to vector<1xf32>
    %253 = vector.shape_cast %252 : vector<1xf32> to vector<1x1x1xf32>
    %254 = vector.extract %253[0, 0, 0] : f32 from vector<1x1x1xf32>
    %255 = arith.addf %233, %254 : f32
    %cst_121 = arith.constant -5.000000e-01 : f32
    %256 = arith.mulf %cst_121, %255 : f32
    %cst_122 = arith.constant 8.000000e+00 : f32
    %257 = arith.divf %256, %cst_122 : f32
    %c0_123 = arith.constant 0 : index
    %c0_124 = arith.constant 0 : index
    %258 = memref.load %arg24[%c0_123, %c0_124] : memref<1x1xf32, #tpu.memory_space<smem>>
    memref.store %257, %arg24[%c0_123, %c0_124] : memref<1x1xf32, #tpu.memory_space<smem>>
    return
  }
}

</mosaic_0001>

<bundles_post_ra>
// kernel: tpu_custom_call.1
= control target key start
LH: loop header
LB: loop body
LE: loop exit
PB: predicated region body
PF: predicated region fallthrough
CT: control target
= control target key end

     0   :  { %s3781_s6 = smov 1   ;;  %s3782_s10 = smov 2   ;;  %s5995_s0 = inlined_call_operand.smem [shape: u32[33], index: -1, kind: input, shape index: {}] }
   0x1   :  { %s3845_s5 = sld [smem:[%s5995_s0]]   ;;  %s3783_s14 = smov 3  }
   0x2   :  { %s3850_s9 = sld [smem:[%s5995_s0 + %s3781_s6]]   ;;  %s3784_s18 = smov 4  }
   0x3   :  { %s3855_s13 = sld [smem:[%s5995_s0 + %s3782_s10]]   ;;  %s3785_s22 = smov 5  }
   0x4   :  { %s3860_s17 = sld [smem:[%s5995_s0 + %s3783_s14]]   ;;  %s3786_s26 = smov 6  }
   0x5   :  { %s3865_s21 = sld [smem:[%s5995_s0 + %s3784_s18]]   ;;  %s3787_s30 = smov 7  }
   0x6   :  { %s3870_s25 = sld [smem:[%s5995_s0 + %s3785_s22]]   ;;  %s3788_s4 = smov 8  }
   0x7   :  { %s3875_s29 = sld [smem:[%s5995_s0 + %s3786_s26]]   ;;  %s3789_s10 = smov 9  }
   0x8   :  { %s3880_s3 = sld [smem:[%s5995_s0 + %s3787_s30]]   ;;  %s3790_s15 = smov 10  }
   0x9   :  { %s3885_s8 = sld [smem:[%s5995_s0 + %s3788_s4]]   ;;  %s3791_s20 = smov 11  }
   0xa   :  { %s3890_s14 = sld [smem:[%s5995_s0 + %s3789_s10]]   ;;  %s3792_s26 = smov 12  }
   0xb   :  { %s3895_s19 = sld [smem:[%s5995_s0 + %s3790_s15]]   ;;  %s3793_s1 = smov 13  }
   0xc   :  { %6044 = sst [smem:[#allocation42_spill]] %s3870_s25  ;;  %s3794_s7 = smov 14  }
   0xd   :  { %6045 = sst [smem:[#allocation43_spill]] %s3875_s29  ;;  %s3795_s15 = smov 15  }
   0xe   :  { %6046 = sst [smem:[#allocation44_spill]] %s3880_s3  ;;  %s3796_s22 = smov 16  }
   0xf   :  { %s3900_s24 = sld [smem:[%s5995_s0 + %s3791_s20]]   ;;  %s3797_s28 = smov 17  }
  0x10   :  { %6047 = sst [smem:[#allocation45_spill]] %s3890_s14 }
  0x11   :  { %6048 = sst [smem:[#allocation46_spill]] %s3895_s19 }
  0x12   :  { %s3905_s30 = sld [smem:[%s5995_s0 + %s3792_s26]]  }
  0x13   :  { %s3910_s6 = sld [smem:[%s5995_s0 + %s3793_s1]]  }
  0x14   :  { %s3915_s12 = sld [smem:[%s5995_s0 + %s3794_s7]]   ;;  %s3798_s7 = smov 18  }
  0x15   :  { %6049 = sst [smem:[#allocation47_spill]] %s3900_s24 }
  0x16   :  { %s3920_s20 = sld [smem:[%s5995_s0 + %s3795_s15]]   ;;  %s3799_s15 = smov 19  }
  0x17   :  { %s3925_s27 = sld [smem:[%s5995_s0 + %s3796_s22]]   ;;  %s3800_s22 = smov 20  }
  0x18   :  { %6050 = sst [smem:[#allocation48_spill]] %s3905_s30 }
  0x19   :  { %6051 = sst [smem:[#allocation49_spill]] %s3910_s6 }
  0x1a   :  { %6052 = sst [smem:[#allocation50_spill]] %s3915_s12 }
  0x1b   :  { %s3930_s4 = sld [smem:[%s5995_s0 + %s3797_s28]]   ;;  %s3801_s28 = smov 21  }
  0x1c   :  { %6053 = sst [smem:[#allocation51_spill]] %s3920_s20 }
  0x1d   :  { %s3935_s6 = sld [smem:[%s5995_s0 + %s3798_s7]]   ;;  %s3802_s7 = smov 22  }
  0x1e   :  { %s3940_s20 = sld [smem:[%s5995_s0 + %s3799_s15]]   ;;  %s3803_s15 = smov 23  }
  0x1f   :  { %s3945_s30 = sld [smem:[%s5995_s0 + %s3800_s22]]   ;;  %s3804_s22 = smov 24  }
  0x20   :  { %s3950_s24 = sld [smem:[%s5995_s0 + %s3801_s28]]   ;;  %s3805_s28 = smov 25  }
  0x21   :  { %s3955_s12 = sld [smem:[%s5995_s0 + %s3802_s7]]   ;;  %s3806_s7 = smov 26  }
  0x22   :  { %s3960_s14 = sld [smem:[%s5995_s0 + %s3803_s15]]   ;;  %s3807_s15 = smov 27  }
  0x23   :  { %s3965_s3 = sld [smem:[%s5995_s0 + %s3804_s22]]   ;;  %s3808_s22 = smov 28  }
  0x24   :  { %s3970_s29 = sld [smem:[%s5995_s0 + %s3805_s28]]   ;;  %s3809_s28 = smov 29  }
  0x25   :  { %s3975_s25 = sld [smem:[%s5995_s0 + %s3806_s7]]   ;;  %s3810_s7 = smov 30  }
  0x26   :  { %s3980_s19 = sld [smem:[%s5995_s0 + %s3807_s15]]   ;;  %s3811_s15 = smov 31  }
  0x29   :  { %6054 = sst [smem:[#allocation52_spill]] %s3965_s3 }
  0x2a   :  { %6055 = sst [smem:[#allocation53_spill]] %s3970_s29 }
  0x2b   :  { %6056 = sst [smem:[#allocation54_spill]] %s3975_s25 }
  0x2c   :  { %6057 = sst [smem:[#allocation55_spill]] %s3980_s19 }
  0x2d   :  { %s3985_s3 = sld [smem:[%s5995_s0 + %s3808_s22]]   ;;  %s3812_s22 = smov 32  }
  0x2e   :  { %s3990_s29 = sld [smem:[%s5995_s0 + %s3809_s28]]  }
  0x2f   :  { %s3995_s25 = sld [smem:[%s5995_s0 + %s3810_s7]]  }
  0x30   :  { %s4000_s19 = sld [smem:[%s5995_s0 + %s3811_s15]]  }
  0x33   :  { %6058 = sst [smem:[#allocation56_spill]] %s3985_s3 }
  0x34   :  { %s4005_s3 = sld [smem:[%s5995_s0 + %s3812_s22]]  }
  0x35   :  { %72 = vsyncpa [#allocation4], 0 }
  0x36   :  { %73 = vsyncpa [#allocation8], 0 }
  0x37   :  { %74 = vsyncpa [#allocation11], 0 }
  0x38   :  { %75 = vsyncpa [#allocation14], 0 }
  0x39   :  { %76 = vsyncpa [#allocation17], 0 }
  0x3a   :  { %77 = vsyncpa [#allocation6], 0 }
  0x3b   :  { %78 = vsyncpa [#allocation5], 0 }
  0x3c   :  { %79 = vsyncpa [#allocation21], 0 }
  0x3d   :  { %80 = vsyncpa [#allocation24], 0 }
  0x3e   :  { %81 = vsyncpa [#allocation27], 0 }
  0x3f   :  { %82 = vsyncpa [#allocation30], 0  ;;  %s3813_s28 = smov [#allocation7]   ;;  %s3814_s2 = smov [#allocation10]  }
  0x40   :  { %s133_s1 = sshll.u32 %s3813_s28, 4  ;;  %s155_s7 = sshll.u32 %s3814_s2, 4  ;;  %s134_s1 = int_to_ptr.vmem [resolvable:$true] %s133_s1  ;;  %s156_s7 = int_to_ptr.vmem [resolvable:$true] %s155_s7 }
  0x41   :  { %s3397_s0 = scalar_lea.hbm %s3930_s4, 16 }
  0x42   :  { %p3398_p0 = scmp.ne.s32.totalorder %s3930_s4, %s3397_s0  ;;  %p3401_p1 = scmp.lt.u32.totalorder %s3397_s0, %s3930_s4 }
  0x44   :  { %p3403_p2 = pnand %p3401_p1, %p3398_p0 }
  0x46   :  { %3406 = shalt.err (!%p3403_p2)
}
  0x47   :  { %s3407_s10 = scalar_lea.vmem %s134_s1, 16  ;;  %s3411_s11 = scalar_lea.vmem %s134_s1, 32 }
  0x48   :  { %p3408_p3 = scmp.ne.s32.totalorder %s134_s1, %s3407_s10  ;;  %p3412_p4 = scmp.lt.s32.totalorder %s134_s1, %s134_s1 }
  0x49   :  { %p3413_p5 = scmp.lt.s32.totalorder %s3411_s11, %s3407_s10 }
  0x4b   :  { %p3414_p6 = por %p3413_p5, %p3412_p4 }
  0x4d   :  { %p3415_p7 = pnand %p3414_p6, %p3408_p3 }
  0x4f   :  { %3418 = shalt.err (!%p3415_p7)
}
  0x50   :  { %136 = dma.hbm_to_vmem [thread:$0]  %s3930_s4, 16, %s134_s1, [#allocation8]  }
  0x51   :  { %s3419_s15 = scalar_lea.hbm %s3940_s20, 32 }
  0x52   :  { %p3420_p8 = scmp.ne.s32.totalorder %s3940_s20, %s3419_s15  ;;  %p3423_p9 = scmp.lt.u32.totalorder %s3419_s15, %s3940_s20 }
  0x54   :  { %p3425_p10 = pnand %p3423_p9, %p3420_p8 }
  0x56   :  { %3428 = shalt.err (!%p3425_p10)
}
  0x57   :  { %s3429_s16 = scalar_lea.vmem %s156_s7, 32  ;;  %p3434_p12 = scmp.lt.s32.totalorder %s156_s7, %s156_s7 }
  0x58   :  { %p3430_p11 = scmp.ne.s32.totalorder %s156_s7, %s3429_s16  ;;  %p3435_p13 = scmp.lt.s32.totalorder %s3429_s16, %s3429_s16 }
  0x5a   :  { %p3436_p0 = por %p3435_p13, %p3434_p12 }
  0x5c   :  { %p3437_p1 = pnand %p3436_p0, %p3430_p11 }
  0x5e   :  { %3440 = shalt.err (!%p3437_p1)
}
  0x5f   :  { %158 = dma.hbm_to_vmem [thread:$0]  %s3940_s20, 32, %s156_s7, [#allocation11]  }
  0x60   :  { %s3815_s18 = smov [#allocation13]   ;;  %s3816_s4 = smov [#allocation3]  }
  0x61   :  { %s175_s22 = sshll.u32 %s3815_s18, 4  ;;  %s120_s23 = sshll.u32 %s3816_s4, 4  ;;  %s176_s22 = int_to_ptr.vmem [resolvable:$true] %s175_s22  ;;  %s4015_s23 = int_to_ptr.vmem [resolvable:$true] %s120_s23 }
  0x62   :  { %s3441_s26 = scalar_lea.hbm %s3950_s24, 32 }
  0x63   :  { %p3442_p2 = scmp.ne.s32.totalorder %s3950_s24, %s3441_s26  ;;  %p3445_p3 = scmp.lt.u32.totalorder %s3441_s26, %s3950_s24 }
  0x65   :  { %p3447_p4 = pnand %p3445_p3, %p3442_p2 }
  0x67   :  { %3450 = shalt.err (!%p3447_p4)
}
  0x68   :  { %s3451_s28 = scalar_lea.vmem %s176_s22, 32  ;;  %p3456_p6 = scmp.lt.s32.totalorder %s176_s22, %s176_s22 }
  0x69   :  { %p3452_p5 = scmp.ne.s32.totalorder %s176_s22, %s3451_s28  ;;  %p3457_p7 = scmp.lt.s32.totalorder %s3451_s28, %s3451_s28 }
  0x6b   :  { %p3458_p8 = por %p3457_p7, %p3456_p6 }
  0x6d   :  { %p3459_p9 = pnand %p3458_p8, %p3452_p5 }
  0x6f   :  { %3462 = shalt.err (!%p3459_p9)
}
  0x70   :  { %178 = dma.hbm_to_vmem [thread:$0]  %s3950_s24, 32, %s176_s22, [#allocation14]  }
  0x71   :  { %s3463_s20 = scalar_lea.hbm %s3925_s27, 16384 }
  0x72   :  { %p3464_p10 = scmp.ne.s32.totalorder %s3925_s27, %s3463_s20  ;;  %p3467_p11 = scmp.lt.u32.totalorder %s3463_s20, %s3925_s27 }
  0x74   :  { %p3469_p12 = pnand %p3467_p11, %p3464_p10 }
  0x76   :  { %3472 = shalt.err (!%p3469_p12)
}
  0x77   :  { %s3473_s1 = scalar_lea.vmem %s4015_s23, 16384  ;;  %p3478_p0 = scmp.lt.s32.totalorder %s4015_s23, %s4015_s23 }
  0x78   :  { %p3474_p13 = scmp.ne.s32.totalorder %s4015_s23, %s3473_s1  ;;  %p3479_p1 = scmp.lt.s32.totalorder %s3473_s1, %s3473_s1 }
  0x7a   :  { %p3480_p2 = por %p3479_p1, %p3478_p0 }
  0x7c   :  { %p3481_p3 = pnand %p3480_p2, %p3474_p13 }
  0x7e   :  { %3484 = shalt.err (!%p3481_p3)
}
  0x7f   :  { %s3817_s2 = smov 128   ;;  %s3818_s24 = smov 8  }
  0x80   :  { %126 = dma.hbm_to_vmem [thread:$0]  %s3925_s27, 16384, %s4015_s23, [#allocation4], %s3817_s2, %s3817_s2, %s3818_s24  }
  0x81   :  { %s3819_s7 = smov [#allocation9]   ;;  %s3485_s10 = scalar_lea.hbm %s3935_s6, 4096 }
  0x82   :  { %s142_s0 = sshll.u32 %s3819_s7, 4  ;;  %p3486_p4 = scmp.ne.s32.totalorder %s3935_s6, %s3485_s10  ;;  %s143_s0 = int_to_ptr.vmem [resolvable:$true] %s142_s0 }
  0x83   :  { %p3489_p5 = scmp.lt.u32.totalorder %s3485_s10, %s3935_s6 }
  0x85   :  { %p3491_p6 = pnand %p3489_p5, %p3486_p4 }
  0x87   :  { %3494 = shalt.err (!%p3491_p6)
}
  0x88   :  { %s3495_s11 = scalar_lea.vmem %s143_s0, 4096  ;;  %p3500_p8 = scmp.lt.s32.totalorder %s143_s0, %s143_s0 }
  0x89   :  { %p3496_p7 = scmp.ne.s32.totalorder %s143_s0, %s3495_s11  ;;  %p3501_p9 = scmp.lt.s32.totalorder %s3495_s11, %s3495_s11 }
  0x8b   :  { %p3502_p10 = por %p3501_p9, %p3500_p8 }
  0x8d   :  { %p3503_p11 = pnand %p3502_p10, %p3496_p7 }
  0x8f   :  { %3506 = shalt.err (!%p3503_p11)
}
  0x90   :  { %s3820_s15 = smov 256   ;;  %s3821_s27 = smov 16  }
  0x91   :  { %148 = dma.hbm_to_vmem [thread:$0]  %s3935_s6, 4096, %s143_s0, [#allocation8], %s3820_s15, %s3820_s15, %s3821_s27  }
  0x92   :  { %s3822_s16 = smov [#allocation12]   ;;  %s3823_s22 = smov [#allocation15]  }
  0x93   :  { %s165_s18 = sshll.u32 %s3822_s16, 4  ;;  %s184_s4 = sshll.u32 %s3823_s22, 4  ;;  %s166_s18 = int_to_ptr.vmem [resolvable:$true] %s165_s18  ;;  %s185_s4 = int_to_ptr.vmem [resolvable:$true] %s184_s4 }
  0x94   :  { %s3507_s23 = scalar_lea.hbm %s3945_s30, 32 }
  0x95   :  { %p3508_p12 = scmp.ne.s32.totalorder %s3945_s30, %s3507_s23  ;;  %p3511_p13 = scmp.lt.u32.totalorder %s3507_s23, %s3945_s30 }
  0x97   :  { %p3513_p0 = pnand %p3511_p13, %p3508_p12 }
  0x99   :  { %3516 = shalt.err (!%p3513_p0)
}
  0x9a   :  { %s3517_s26 = scalar_lea.vmem %s166_s18, 32  ;;  %p3522_p2 = scmp.lt.s32.totalorder %s166_s18, %s166_s18 }
  0x9b   :  { %p3518_p1 = scmp.ne.s32.totalorder %s166_s18, %s3517_s26  ;;  %p3523_p3 = scmp.lt.s32.totalorder %s3517_s26, %s3517_s26 }
  0x9d   :  { %p3524_p4 = por %p3523_p3, %p3522_p2 }
  0x9f   :  { %p3525_p5 = pnand %p3524_p4, %p3518_p1 }
  0xa1   :  { %3528 = shalt.err (!%p3525_p5)
}
  0xa2   :  { %168 = dma.hbm_to_vmem [thread:$0]  %s3945_s30, 32, %s166_s18, [#allocation11]  }
  0xa3   :  { %s3529_s6 = scalar_lea.hbm %s3955_s12, 4096 }
  0xa4   :  { %p3530_p6 = scmp.ne.s32.totalorder %s3955_s12, %s3529_s6  ;;  %p3533_p7 = scmp.lt.u32.totalorder %s3529_s6, %s3955_s12 }
  0xa6   :  { %p3535_p8 = pnand %p3533_p7, %p3530_p6 }
  0xa8   :  { %3538 = shalt.err (!%p3535_p8)
}
  0xa9   :  { %s3539_s28 = scalar_lea.vmem %s185_s4, 4096  ;;  %p3544_p10 = scmp.lt.s32.totalorder %s185_s4, %s185_s4 }
  0xaa   :  { %p3540_p9 = scmp.ne.s32.totalorder %s185_s4, %s3539_s28  ;;  %p3545_p11 = scmp.lt.s32.totalorder %s3539_s28, %s3539_s28 }
  0xac   :  { %p3546_p12 = por %p3545_p11, %p3544_p10 }
  0xae   :  { %p3547_p13 = pnand %p3546_p12, %p3540_p9 }
  0xb0   :  { %3550 = shalt.err (!%p3547_p13)
}
  0xb1   :  { %190 = dma.hbm_to_vmem [thread:$0]  %s3955_s12, 4096, %s185_s4, [#allocation14], %s3817_s2, %s3817_s2, %s3818_s24  }
  0xb2   :  { %s3824_s30 = smov [#allocation16]   ;;  %s3551_s1 = scalar_lea.hbm %s3960_s14, 16 }
  0xb3   :  { %s197_s20 = sshll.u32 %s3824_s30, 4  ;;  %p3552_p0 = scmp.ne.s32.totalorder %s3960_s14, %s3551_s1  ;;  %s198_s20 = int_to_ptr.vmem [resolvable:$true] %s197_s20 }
  0xb4   :  { %p3555_p1 = scmp.lt.u32.totalorder %s3551_s1, %s3960_s14 }
  0xb6   :  { %p3557_p2 = pnand %p3555_p1, %p3552_p0 }
  0xb8   :  { %3560 = shalt.err (!%p3557_p2)
}
  0xb9   :  { %s3561_s7 = scalar_lea.vmem %s198_s20, 16  ;;  %s3565_s0 = scalar_lea.vmem %s198_s20, 32 }
  0xba   :  { %p3562_p3 = scmp.ne.s32.totalorder %s198_s20, %s3561_s7  ;;  %p3566_p4 = scmp.lt.s32.totalorder %s198_s20, %s198_s20 }
  0xbb   :  { %p3567_p5 = scmp.lt.s32.totalorder %s3565_s0, %s3561_s7 }
  0xbd   :  { %p3568_p6 = por %p3567_p5, %p3566_p4 }
  0xbf   :  { %p3569_p7 = pnand %p3568_p6, %p3562_p3 }
  0xc1   :  { %3572 = shalt.err (!%p3569_p7)
}
  0xc2   :  { %200 = dma.hbm_to_vmem [thread:$0]  %s3960_s14, 16, %s198_s20, [#allocation17]  }
  0xc3   :  { %3759 = dma.done.wait [#allocation4], 16384  }
  0xc4   :  { %3760 = vsyncadd [#allocation4], 4294950912 }
  0xc5   :  { %3761 = dma.done.wait [#allocation8], 4112  }
  0xc6   :  { %3762 = vsyncadd [#allocation8], 4294963184 }
  0xc7   :  { %3763 = dma.done.wait [#allocation11], 64  }
  0xc8   :  { %3764 = vsyncadd [#allocation11], 4294967232 }
  0xc9   :  { %3765 = dma.done.wait [#allocation14], 4128  }
  0xca   :  { %3766 = vsyncadd [#allocation14], 4294963168 }
  0xcb   :  { %3767 = dma.done.wait [#allocation17], 16  }
  0xcc   :  { %3768 = vsyncadd [#allocation17], 4294967280  ;;  %s227_s12 = ssub.f32 1.0, %s3845_s5  ;;  %v268_v0 = vld [vmem:[%s3855_s13 + $0x80] sm:$0xff]  ;;  %v269_v1 = vld [vmem:[%s3855_s13 + $0x88] sm:$0xff]  ;;  %v4059_v3 = vstv %s3845_s5  ;;  %s6246_s5 = sld [smem:[#allocation46_spill]] }
  0xcd   :  { %v631_v2 = vld [vmem:[#allocation3 + $0x80] sm:$0xff]  ;;  %v388_v5 = vpack.c.bf16 %v269_v1, %v268_v0  ;;  %v632_v6 = vld [vmem:[#allocation3 + $0x88] sm:$0xff]  ;;  %v270_v38 = vld [vmem:[%s3855_s13 + $0x90] sm:$0xff]  ;;  %vm3827_vm0 = vmmov 0   ;;  %s6254_s14 = sld [smem:[#allocation45_spill]]  ;;  %s6256_s10 = sld [smem:[#allocation50_spill]] }
  0xce   :  { %v4061_v4 = vstv %s227_s12  ;;  %v1002_v7 = vmul.f32 %v4059_v3, %v631_v2  ;;  %v300_v10 = vld [vmem:[%s3855_s13 + $0x180] sm:$0xff]  ;;  %v301_v11 = vld [vmem:[%s3855_s13 + $0x188] sm:$0xff]  ;;  %v1003_v12 = vmul.f32 %v4059_v3, %v632_v6  ;;  %v271_v39 = vld [vmem:[%s3855_s13 + $0x98] sm:$0xff]  ;;  %s6260_s11 = sld [smem:[#allocation47_spill]]  ;;  %s6264_s16 = sld [smem:[#allocation49_spill]]  ;;  %vm2776_vm1 = vcmask 7168  }
  0xcf   :  { %v1130_v8 = vmul.f32 %v4061_v4, %v268_v0  ;;  %v1131_v9 = vmul.f32 %v4061_v4, %v269_v1  ;;  %v404_v13 = vpack.c.bf16 %v301_v11, %v300_v10  ;;  %v663_v14 = vld [vmem:[#allocation3 + $0x180] sm:$0xff]  ;;  %v664_v15 = vld [vmem:[#allocation3 + $0x188] sm:$0xff]  ;;  %v1162_v16 = vmul.f32 %v4061_v4, %v300_v10  ;;  %3007 = vmatprep.subr.bf16.mxu0 %v388_v5  ;;  %v302_v44 = vld [vmem:[%s3855_s13 + $0x190] sm:$0xff]  ;;  %s6279_s18 = sld [smem:[#allocation51_spill]]  ;;  %s3828_s22 = smov [#allocation20]  }
  0xd0   :  { %v1163_v17 = vmul.f32 %v4061_v4, %v301_v11  ;;  %v252_v18 = vld [vmem:[%s3855_s13] sm:$0xff]  ;;  %v1034_v20 = vmul.f32 %v4059_v3, %v663_v14  ;;  %v1035_v21 = vmul.f32 %v4059_v3, %v664_v15  ;;  %v253_v22 = vld [vmem:[%s3855_s13 + $0x8] sm:$0xff]  ;;  %v303_v45 = vld [vmem:[%s3855_s13 + $0x198] sm:$0xff]  ;;  %v389_v49 = vpack.c.bf16 %v271_v39, %v270_v38  ;;  %s2845_s4 = sshll.u32 %s3828_s22, 4  ;;  %s3829_s23 = smov [#allocation23]   ;;  %s2846_s4 = int_to_ptr.vmem [resolvable:$true] %s2845_s4 }
  0xd1   :  { %v1258_v19 = vadd.f32 %v1130_v8, %v1002_v7  ;;  %v615_v23 = vld [vmem:[#allocation3] sm:$0xff]  ;;  %v616_v24 = vld [vmem:[#allocation3 + $0x8] sm:$0xff]  ;;  %v1114_v25 = vmul.f32 %v4061_v4, %v252_v18  ;;  %v1259_v26 = vadd.f32 %v1131_v9, %v1003_v12  ;;  %3029 = vmatprep.subr.bf16.mxu1 %v404_v13  ;;  %v380_v27 = vpack.c.bf16 %v253_v22, %v252_v18  ;;  %v254_v46 = vld [vmem:[%s3855_s13 + $0x10] sm:$0xff]  ;;  %s2867_s26 = sshll.u32 %s3829_s23, 4  ;;  %s3577_s6 = scalar_lea.vmem %s2846_s4, 32  ;;  %s5941_s26 = int_to_ptr.vmem [resolvable:$true] %s2867_s26 }
  0xd2   :  { %v986_v28 = vmul.f32 %v4059_v3, %v615_v23  ;;  %v987_v29 = vmul.f32 %v4059_v3, %v616_v24  ;;  %v284_v30 = vld [vmem:[%s3855_s13 + $0x100] sm:$0xff]  ;;  %v285_v31 = vld [vmem:[%s3855_s13 + $0x108] sm:$0xff]  ;;  %v1290_v33 = vadd.f32 %v1162_v16, %v1034_v20  ;;  %v1291_v34 = vadd.f32 %v1163_v17, %v1035_v21  ;;  %v255_v51 = vld [vmem:[%s3855_s13 + $0x18] sm:$0xff]  ;;  %p3578_p9 = scmp.lt.s32.totalorder %s2846_s4, %s2846_s4 }
  0xd3   :  { %v647_v32 = vld [vmem:[#allocation3 + $0x100] sm:$0xff]  ;;  %1386 = vst [vmem:[#allocation19 + $0x80] sm:$0xff] %v1258_v19  ;;  %v1115_v35 = vmul.f32 %v4061_v4, %v253_v22  ;;  %v396_v36 = vpack.c.bf16 %v285_v31, %v284_v30  ;;  %v648_v37 = vld [vmem:[#allocation3 + $0x108] sm:$0xff]  ;;  %1387 = vst [vmem:[#allocation19 + $0x88] sm:$0xff] %v1259_v26  ;;  %3008 = vmatpush3.bf16.msra.mxu0 %v380_v27  ;;  %v1146_v43 = vmul.f32 %v4061_v4, %v284_v30 }
  0xd4   :  { %v1242_v40 = vadd.f32 %v1114_v25, %v986_v28  ;;  %v1018_v41 = vmul.f32 %v4059_v3, %v647_v32  ;;  %v1019_v42 = vmul.f32 %v4059_v3, %v648_v37  ;;  %1418 = vst [vmem:[#allocation19 + $0x180] sm:$0xff] %v1290_v33  ;;  %1419 = vst [vmem:[#allocation19 + $0x188] sm:$0xff] %v1291_v34  ;;  %v4094_v52 = vld [vmem:[#allocation3 + $0x10] sm:$0xff]  ;;  %v4102_v57 = vld [vmem:[#allocation3 + $0x18] sm:$0xff]  ;;  %3009 = vmatprep.subr.bf16.mxu0 %v389_v49 }
  0xd5   :  { %v1243_v47 = vadd.f32 %v1115_v35, %v987_v29  ;;  %3030 = vmatpush3.bf16.msra.mxu1 %v396_v36  ;;  %v1147_v48 = vmul.f32 %v4061_v4, %v285_v31  ;;  %v4091_v50 = vmul.f32 %v4061_v4, %v270_v38  ;;  %v4097_v54 = vmul.f32 %v4061_v4, %v271_v39  ;;  %v286_v58 = vld [vmem:[%s3855_s13 + $0x110] sm:$0xff]  ;;  %v287_v59 = vld [vmem:[%s3855_s13 + $0x118] sm:$0xff]  ;;  %v272_v1 = vld [vmem:[%s3855_s13 + $0xa0] sm:$0xff] }
  0xd6   :  { %1370 = vst [vmem:[#allocation19] sm:$0xff] %v1242_v40  ;;  %v1274_v53 = vadd.f32 %v1146_v43, %v1018_v41  ;;  %v405_v55 = vpack.c.bf16 %v303_v45, %v302_v44  ;;  %v4100_v56 = vmul.f32 %v4061_v4, %v302_v44  ;;  %v4107_v61 = vmul.f32 %v4061_v4, %v303_v45  ;;  %v4111_v0 = vld [vmem:[#allocation3 + $0x110] sm:$0xff]  ;;  %v273_v2 = vld [vmem:[%s3855_s13 + $0xa8] sm:$0xff]  ;;  %v4119_v9 = vld [vmem:[#allocation3 + $0x118] sm:$0xff] }
  0xd7   :  { %1371 = vst [vmem:[#allocation19 + $0x8] sm:$0xff] %v1243_v47  ;;  %v1275_v60 = vadd.f32 %v1147_v48, %v1019_v42  ;;  %v381_v62 = vpack.c.bf16 %v255_v51, %v254_v46  ;;  %v988_v63 = vmul.f32 %v4059_v3, %v4094_v52  ;;  %v989_v5 = vmul.f32 %v4059_v3, %v4102_v57  ;;  %v304_v10 = vld [vmem:[%s3855_s13 + $0x1a0] sm:$0xff]  ;;  %v305_v11 = vld [vmem:[%s3855_s13 + $0x1a8] sm:$0xff]  ;;  %v274_v35 = vld [vmem:[%s3855_s13 + $0xb0] sm:$0xff] }
  0xd8   :  { %1402 = vst [vmem:[#allocation19 + $0x100] sm:$0xff] %v1274_v53  ;;  %3031 = vmatprep.subr.bf16.mxu1 %v405_v55  ;;  %v1116_v6 = vmul.f32 %v4061_v4, %v254_v46  ;;  %v1117_v7 = vmul.f32 %v4061_v4, %v255_v51  ;;  %v397_v8 = vpack.c.bf16 %v287_v59, %v286_v58  ;;  %v256_v16 = vld [vmem:[%s3855_s13 + $0x20] sm:$0xff]  ;;  %v257_v17 = vld [vmem:[%s3855_s13 + $0x28] sm:$0xff]  ;;  %v275_v36 = vld [vmem:[%s3855_s13 + $0xb8] sm:$0xff] }
  0xd9   :  { %1403 = vst [vmem:[#allocation19 + $0x108] sm:$0xff] %v1275_v60  ;;  %3010 = vmatpush3.bf16.msra.mxu0 %v381_v62  ;;  %v1020_v12 = vmul.f32 %v4059_v3, %v4111_v0  ;;  %v1021_v13 = vmul.f32 %v4059_v3, %v4119_v9  ;;  %v1148_v14 = vmul.f32 %v4061_v4, %v286_v58  ;;  %v288_v22 = vld [vmem:[%s3855_s13 + $0x120] sm:$0xff]  ;;  %v289_v23 = vld [vmem:[%s3855_s13 + $0x128] sm:$0xff]  ;;  %v306_v42 = vld [vmem:[%s3855_s13 + $0x1b0] sm:$0xff] }
  0xda   :  { %v1149_v15 = vmul.f32 %v4061_v4, %v287_v59  ;;  %v1244_v18 = vadd.f32 %v1116_v6, %v988_v63  ;;  %v1245_v19 = vadd.f32 %v1117_v7, %v989_v5  ;;  %3032 = vmatpush3.bf16.msra.mxu1 %v397_v8  ;;  %v390_v20 = vpack.c.bf16 %v273_v2, %v272_v1  ;;  %v4139_v28 = vld [vmem:[#allocation3 + $0x20] sm:$0xff]  ;;  %v4141_v29 = vld [vmem:[#allocation3 + $0x28] sm:$0xff]  ;;  %v307_v43 = vld [vmem:[%s3855_s13 + $0x1b8] sm:$0xff] }
  0xdb   :  { %v4132_v21 = vmul.f32 %v4061_v4, %v272_v1  ;;  %v1276_v24 = vadd.f32 %v1148_v14, %v1020_v12  ;;  %v4137_v26 = vmul.f32 %v4061_v4, %v273_v2  ;;  %v406_v27 = vpack.c.bf16 %v305_v11, %v304_v10  ;;  %v4151_v34 = vld [vmem:[#allocation3 + $0x120] sm:$0xff]  ;;  %v4159_v41 = vld [vmem:[#allocation3 + $0x128] sm:$0xff]  ;;  %v258_v48 = vld [vmem:[%s3855_s13 + $0x30] sm:$0xff] }
  0xdc   :  { %v1277_v25 = vadd.f32 %v1149_v15, %v1021_v13  ;;  %1372 = vst [vmem:[#allocation19 + $0x10] sm:$0xff] %v1244_v18  ;;  %1373 = vst [vmem:[#allocation19 + $0x18] sm:$0xff] %v1245_v19  ;;  %3011 = vmatprep.subr.bf16.mxu0 %v390_v20  ;;  %v4144_v30 = vmul.f32 %v4061_v4, %v304_v10  ;;  %v4147_v31 = vmul.f32 %v4061_v4, %v305_v11  ;;  %v259_v49 = vld [vmem:[%s3855_s13 + $0x38] sm:$0xff]  ;;  %v290_v59 = vld [vmem:[%s3855_s13 + $0x130] sm:$0xff] }
  0xdd   :  { %v382_v32 = vpack.c.bf16 %v257_v17, %v256_v16  ;;  %v990_v33 = vmul.f32 %v4059_v3, %v4139_v28  ;;  %1404 = vst [vmem:[#allocation19 + $0x110] sm:$0xff] %v1276_v24  ;;  %3033 = vmatprep.subr.bf16.mxu1 %v406_v27  ;;  %v991_v37 = vmul.f32 %v4059_v3, %v4141_v29  ;;  %v291_v60 = vld [vmem:[%s3855_s13 + $0x138] sm:$0xff]  ;;  %v4179_v5 = vld [vmem:[#allocation3 + $0x30] sm:$0xff]  ;;  %v276_v13 = vld [vmem:[%s3855_s13 + $0xc0] sm:$0xff] }
  0xde   :  { %1405 = vst [vmem:[#allocation19 + $0x118] sm:$0xff] %v1277_v25  ;;  %v1118_v38 = vmul.f32 %v4061_v4, %v256_v16  ;;  %v1119_v39 = vmul.f32 %v4061_v4, %v257_v17  ;;  %v398_v40 = vpack.c.bf16 %v289_v23, %v288_v22  ;;  %v1022_v44 = vmul.f32 %v4059_v3, %v4151_v34  ;;  %v4181_v6 = vld [vmem:[#allocation3 + $0x38] sm:$0xff]  ;;  %v4191_v12 = vld [vmem:[#allocation3 + $0x130] sm:$0xff]  ;;  %v277_v14 = vld [vmem:[%s3855_s13 + $0xc8] sm:$0xff] }
  0xdf   :  { %3012 = vmatpush3.bf16.msra.mxu0 %v382_v32  ;;  %v1023_v45 = vmul.f32 %v4059_v3, %v4159_v41  ;;  %v1150_v46 = vmul.f32 %v4061_v4, %v288_v22  ;;  %v1151_v47 = vmul.f32 %v4061_v4, %v289_v23  ;;  %v391_v55 = vpack.c.bf16 %v275_v36, %v274_v35  ;;  %v4199_v19 = vld [vmem:[#allocation3 + $0x138] sm:$0xff]  ;;  %v308_v20 = vld [vmem:[%s3855_s13 + $0x1c0] sm:$0xff]  ;;  %v309_v22 = vld [vmem:[%s3855_s13 + $0x1c8] sm:$0xff] }
  0xe0   :  { %v1246_v51 = vadd.f32 %v1118_v38, %v990_v33  ;;  %v1247_v53 = vadd.f32 %v1119_v39, %v991_v37  ;;  %3034 = vmatpush3.bf16.msra.mxu1 %v398_v40  ;;  %v4172_v58 = vmul.f32 %v4061_v4, %v274_v35  ;;  %v4177_v1 = vmul.f32 %v4061_v4, %v275_v36  ;;  %v260_v32 = vld [vmem:[%s3855_s13 + $0x40] sm:$0xff]  ;;  %v261_v33 = vld [vmem:[%s3855_s13 + $0x48] sm:$0xff] }
  0xe1   :  { %v1278_v62 = vadd.f32 %v1150_v46, %v1022_v44  ;;  %v1279_v63 = vadd.f32 %v1151_v47, %v1023_v45  ;;  %v407_v2 = vpack.c.bf16 %v307_v43, %v306_v42  ;;  %3013 = vmatprep.subr.bf16.mxu0 %v391_v55  ;;  %v4184_v7 = vmul.f32 %v4061_v4, %v306_v42  ;;  %v292_v39 = vld [vmem:[%s3855_s13 + $0x140] sm:$0xff]  ;;  %v293_v40 = vld [vmem:[%s3855_s13 + $0x148] sm:$0xff] }
  0xe2   :  { %1374 = vst [vmem:[#allocation19 + $0x20] sm:$0xff] %v1246_v51  ;;  %1375 = vst [vmem:[#allocation19 + $0x28] sm:$0xff] %v1247_v53  ;;  %v4187_v8 = vmul.f32 %v4061_v4, %v307_v43  ;;  %v383_v10 = vpack.c.bf16 %v259_v49, %v258_v48  ;;  %v992_v11 = vmul.f32 %v4059_v3, %v4179_v5  ;;  %v4219_v46 = vld [vmem:[#allocation3 + $0x40] sm:$0xff]  ;;  %v4221_v47 = vld [vmem:[#allocation3 + $0x48] sm:$0xff] }
  0xe3   :  { %1406 = vst [vmem:[#allocation19 + $0x120] sm:$0xff] %v1278_v62  ;;  %1407 = vst [vmem:[#allocation19 + $0x128] sm:$0xff] %v1279_v63  ;;  %3035 = vmatprep.subr.bf16.mxu1 %v407_v2  ;;  %v993_v15 = vmul.f32 %v4059_v3, %v4181_v6  ;;  %v1120_v16 = vmul.f32 %v4061_v4, %v258_v48  ;;  %v1121_v17 = vmul.f32 %v4061_v4, %v259_v49  ;;  %v4231_v55 = vld [vmem:[#allocation3 + $0x140] sm:$0xff] }
  0xe4   :  { %v399_v18 = vpack.c.bf16 %v291_v60, %v290_v59  ;;  %3014 = vmatpush3.bf16.msra.mxu0 %v383_v10  ;;  %v1024_v23 = vmul.f32 %v4059_v3, %v4191_v12  ;;  %v1025_v24 = vmul.f32 %v4059_v3, %v4199_v19  ;;  %v1152_v25 = vmul.f32 %v4061_v4, %v290_v59  ;;  %v278_v59 = vld [vmem:[%s3855_s13 + $0xd0] sm:$0xff] }
  0xe5   :  { %v1153_v27 = vmul.f32 %v4061_v4, %v291_v60  ;;  %v1248_v35 = vadd.f32 %v1120_v16, %v992_v11  ;;  %v1249_v36 = vadd.f32 %v1121_v17, %v993_v15  ;;  %v392_v37 = vpack.c.bf16 %v277_v14, %v276_v13  ;;  %v279_v60 = vld [vmem:[%s3855_s13 + $0xd8] sm:$0xff]  ;;  %v4239_v11 = vld [vmem:[#allocation3 + $0x148] sm:$0xff] }
  0xe6   :  { %3036 = vmatpush3.bf16.msra.mxu1 %v399_v18  ;;  %v4212_v38 = vmul.f32 %v4061_v4, %v276_v13  ;;  %v1280_v42 = vadd.f32 %v1152_v25, %v1024_v23  ;;  %v4217_v44 = vmul.f32 %v4061_v4, %v277_v14  ;;  %v408_v45 = vpack.c.bf16 %v309_v22, %v308_v20  ;;  %v310_v13 = vld [vmem:[%s3855_s13 + $0x1d0] sm:$0xff]  ;;  %v311_v14 = vld [vmem:[%s3855_s13 + $0x1d8] sm:$0xff] }
  0xe7   :  { %v1281_v43 = vadd.f32 %v1153_v27, %v1025_v24  ;;  %1376 = vst [vmem:[#allocation19 + $0x30] sm:$0xff] %v1248_v35  ;;  %1377 = vst [vmem:[#allocation19 + $0x38] sm:$0xff] %v1249_v36  ;;  %3015 = vmatprep.subr.bf16.mxu0 %v392_v37  ;;  %v4224_v48 = vmul.f32 %v4061_v4, %v308_v20  ;;  %v4227_v49 = vmul.f32 %v4061_v4, %v309_v22  ;;  %v262_v20 = vld [vmem:[%s3855_s13 + $0x50] sm:$0xff]  ;;  %v263_v22 = vld [vmem:[%s3855_s13 + $0x58] sm:$0xff] }
  0xe8   :  { %v384_v51 = vpack.c.bf16 %v261_v33, %v260_v32  ;;  %v994_v53 = vmul.f32 %v4059_v3, %v4219_v46  ;;  %1408 = vst [vmem:[#allocation19 + $0x130] sm:$0xff] %v1280_v42  ;;  %3037 = vmatprep.subr.bf16.mxu1 %v408_v45  ;;  %v995_v62 = vmul.f32 %v4059_v3, %v4221_v47  ;;  %v4261_v42 = vld [vmem:[#allocation3 + $0x58] sm:$0xff] }
  0xe9   :  { %6059 = vst [vmem:[#allocation57_spill] sm:$0xff] %v4224_v48  ;;  %6060 = vst [vmem:[#allocation58_spill] sm:$0xff] %v4227_v49  ;;  %v1122_v63 = vmul.f32 %v4061_v4, %v260_v32  ;;  %v1123_v2 = vmul.f32 %v4061_v4, %v261_v33  ;;  %v400_v10 = vpack.c.bf16 %v293_v40, %v292_v39  ;;  %v294_v32 = vld [vmem:[%s3855_s13 + $0x150] sm:$0xff]  ;;  %v295_v33 = vld [vmem:[%s3855_s13 + $0x158] sm:$0xff] }
  0xea   :  { %1409 = vst [vmem:[#allocation19 + $0x138] sm:$0xff] %v1281_v43  ;;  %3016 = vmatpush3.bf16.msra.mxu0 %v384_v51  ;;  %v1026_v15 = vmul.f32 %v4059_v3, %v4231_v55  ;;  %v1027_v16 = vmul.f32 %v4059_v3, %v4239_v11  ;;  %v1154_v17 = vmul.f32 %v4061_v4, %v292_v39  ;;  %6064 = vst [vmem:[#allocation62_spill] sm:$0xff] %v4261_v42  ;;  %v317_v49 = vld [vmem:[%s3855_s13 + $0x208] sm:$0xff]  ;;  %v348_v48 = vld [vmem:[%s3855_s13 + $0x300] sm:$0xff] }
  0xeb   :  { %v1155_v18 = vmul.f32 %v4061_v4, %v293_v40  ;;  %v1250_v23 = vadd.f32 %v1122_v63, %v994_v53  ;;  %v1251_v24 = vadd.f32 %v1123_v2, %v995_v62  ;;  %3038 = vmatpush3.bf16.msra.mxu1 %v400_v10  ;;  %v393_v25 = vpack.c.bf16 %v279_v60, %v278_v59  ;;  %v4259_v40 = vld [vmem:[#allocation3 + $0x50] sm:$0xff]  ;;  %v281_v62 = vld [vmem:[%s3855_s13 + $0xe8] sm:$0xff] }
  0xec   :  { %v4252_v27 = vmul.f32 %v4061_v4, %v278_v59  ;;  %v1282_v35 = vadd.f32 %v1154_v17, %v1026_v15  ;;  %v4257_v37 = vmul.f32 %v4061_v4, %v279_v60  ;;  %v409_v39 = vpack.c.bf16 %v311_v14, %v310_v13  ;;  %6063 = vst [vmem:[#allocation61_spill] sm:$0xff] %v4259_v40  ;;  %v4271_v59 = vld [vmem:[#allocation3 + $0x150] sm:$0xff]  ;;  %v280_v60 = vld [vmem:[%s3855_s13 + $0xe0] sm:$0xff] }
  0xed   :  { %v1283_v36 = vadd.f32 %v1155_v18, %v1027_v16  ;;  %1378 = vst [vmem:[#allocation19 + $0x40] sm:$0xff] %v1250_v23  ;;  %1379 = vst [vmem:[#allocation19 + $0x48] sm:$0xff] %v1251_v24  ;;  %3017 = vmatprep.subr.bf16.mxu0 %v393_v25  ;;  %v4264_v43 = vmul.f32 %v4061_v4, %v310_v13  ;;  %v4267_v45 = vmul.f32 %v4061_v4, %v311_v14  ;;  %v4279_v14 = vld [vmem:[#allocation3 + $0x158] sm:$0xff]  ;;  %v312_v15 = vld [vmem:[%s3855_s13 + $0x1e0] sm:$0xff] }
  0xee   :  { %6061 = vst [vmem:[#allocation59_spill] sm:$0xff] %v4252_v27  ;;  %6062 = vst [vmem:[#allocation60_spill] sm:$0xff] %v4257_v37  ;;  %v385_v51 = vpack.c.bf16 %v263_v22, %v262_v20  ;;  %v996_v53 = vmul.f32 %v4059_v3, %v4259_v40  ;;  %3039 = vmatprep.subr.bf16.mxu1 %v409_v39  ;;  %v997_v63 = vmul.f32 %v4059_v3, %v4261_v42  ;;  %v313_v16 = vld [vmem:[%s3855_s13 + $0x1e8] sm:$0xff]  ;;  %v264_v24 = vld [vmem:[%s3855_s13 + $0x60] sm:$0xff] }
  0xef   :  { %6065 = vst [vmem:[#allocation63_spill] sm:$0xff] %v4264_v43  ;;  %6066 = vst [vmem:[#allocation64_spill] sm:$0xff] %v4267_v45  ;;  %v1124_v2 = vmul.f32 %v4061_v4, %v262_v20  ;;  %v1125_v10 = vmul.f32 %v4061_v4, %v263_v22  ;;  %v401_v13 = vpack.c.bf16 %v295_v33, %v294_v32  ;;  %v265_v22 = vld [vmem:[%s3855_s13 + $0x68] sm:$0xff] }
  0xf0   :  { %6067 = vst [vmem:[#allocation65_spill] sm:$0xff] %v4271_v59  ;;  %1410 = vst [vmem:[#allocation19 + $0x140] sm:$0xff] %v1282_v35  ;;  %3018 = vmatpush3.bf16.msra.mxu0 %v385_v51  ;;  %v1028_v17 = vmul.f32 %v4059_v3, %v4271_v59  ;;  %v1029_v18 = vmul.f32 %v4059_v3, %v4279_v14  ;;  %v1156_v23 = vmul.f32 %v4061_v4, %v294_v32  ;;  %v296_v51 = vld [vmem:[%s3855_s13 + $0x160] sm:$0xff]  ;;  %v297_v45 = vld [vmem:[%s3855_s13 + $0x168] sm:$0xff] }
  0xf1   :  { %1411 = vst [vmem:[#allocation19 + $0x148] sm:$0xff] %v1283_v36  ;;  %6068 = vst [vmem:[#allocation66_spill] sm:$0xff] %v4279_v14  ;;  %v1157_v20 = vmul.f32 %v4061_v4, %v295_v33  ;;  %v1252_v25 = vadd.f32 %v1124_v2, %v996_v53  ;;  %v1253_v35 = vadd.f32 %v1125_v10, %v997_v63  ;;  %3040 = vmatpush3.bf16.msra.mxu1 %v401_v13  ;;  %v4299_v33 = vld [vmem:[#allocation3 + $0x60] sm:$0xff]  ;;  %v4301_v37 = vld [vmem:[#allocation3 + $0x68] sm:$0xff] }
  0xf2   :  { %v394_v36 = vpack.c.bf16 %v281_v62, %v280_v60  ;;  %v4292_v39 = vmul.f32 %v4061_v4, %v280_v60  ;;  %v1284_v43 = vadd.f32 %v1156_v23, %v1028_v17  ;;  %v4297_v14 = vmul.f32 %v4061_v4, %v281_v62  ;;  %6071 = vst [vmem:[#allocation69_spill] sm:$0xff] %v4299_v33  ;;  %v4311_v2 = vld [vmem:[#allocation3 + $0x160] sm:$0xff]  ;;  %v282_v10 = vld [vmem:[%s3855_s13 + $0xf0] sm:$0xff]  ;;  %v283_v13 = vld [vmem:[%s3855_s13 + $0xf8] sm:$0xff] }
  0xf3   :  { %v1285_v59 = vadd.f32 %v1157_v20, %v1029_v18  ;;  %v410_v32 = vpack.c.bf16 %v313_v16, %v312_v15  ;;  %6072 = vst [vmem:[#allocation70_spill] sm:$0xff] %v4301_v37  ;;  %1380 = vst [vmem:[#allocation19 + $0x50] sm:$0xff] %v1252_v25  ;;  %v4304_v53 = vmul.f32 %v4061_v4, %v312_v15  ;;  %v4319_v23 = vld [vmem:[#allocation3 + $0x168] sm:$0xff]  ;;  %v314_v20 = vld [vmem:[%s3855_s13 + $0x1f0] sm:$0xff] }
  0xf4   :  { %6069 = vst [vmem:[#allocation67_spill] sm:$0xff] %v4292_v39  ;;  %6070 = vst [vmem:[#allocation68_spill] sm:$0xff] %v4297_v14  ;;  %3019 = vmatprep.subr.bf16.mxu0 %v394_v36  ;;  %v4307_v60 = vmul.f32 %v4061_v4, %v313_v16  ;;  %v386_v63 = vpack.c.bf16 %v265_v22, %v264_v24  ;;  %v998_v62 = vmul.f32 %v4059_v3, %v4299_v33  ;;  %v315_v25 = vld [vmem:[%s3855_s13 + $0x1f8] sm:$0xff]  ;;  %v266_v36 = vld [vmem:[%s3855_s13 + $0x70] sm:$0xff] }
  0xf5   :  { %1381 = vst [vmem:[#allocation19 + $0x58] sm:$0xff] %v1253_v35  ;;  %6073 = vst [vmem:[#allocation71_spill] sm:$0xff] %v4304_v53  ;;  %3041 = vmatprep.subr.bf16.mxu1 %v410_v32  ;;  %v999_v15 = vmul.f32 %v4059_v3, %v4301_v37  ;;  %v1126_v17 = vmul.f32 %v4061_v4, %v264_v24  ;;  %v1127_v16 = vmul.f32 %v4061_v4, %v265_v22  ;;  %v267_v22 = vld [vmem:[%s3855_s13 + $0x78] sm:$0xff]  ;;  %v4331_v32 = vld [vmem:[#allocation3 + $0x70] sm:$0xff] }
  0xf6   :  { %6074 = vst [vmem:[#allocation72_spill] sm:$0xff] %v4307_v60  ;;  %6075 = vst [vmem:[#allocation73_spill] sm:$0xff] %v4311_v2  ;;  %v402_v18 = vpack.c.bf16 %v297_v45, %v296_v51  ;;  %3020 = vmatpush3.bf16.msra.mxu0 %v386_v63  ;;  %v1158_v35 = vmul.f32 %v4061_v4, %v296_v51  ;;  %v1159_v24 = vmul.f32 %v4061_v4, %v297_v45  ;;  %v299_v39 = vld [vmem:[%s3855_s13 + $0x178] sm:$0xff]  ;;  %v365_v27 = vld [vmem:[%s3855_s13 + $0x388] sm:$0xff] }
  0xf7   :  { %1412 = vst [vmem:[#allocation19 + $0x150] sm:$0xff] %v1284_v43  ;;  %1413 = vst [vmem:[#allocation19 + $0x158] sm:$0xff] %v1285_v59  ;;  %v1030_v43 = vmul.f32 %v4059_v3, %v4311_v2  ;;  %v1031_v59 = vmul.f32 %v4059_v3, %v4319_v23  ;;  %v1254_v60 = vadd.f32 %v1126_v17, %v998_v62  ;;  %v4336_v2 = vld [vmem:[#allocation3 + $0x78] sm:$0xff]  ;;  %v4343_v62 = vld [vmem:[#allocation3 + $0x170] sm:$0xff] }
  0xf8   :  { %6076 = vst [vmem:[#allocation74_spill] sm:$0xff] %v4319_v23  ;;  %6077 = vst [vmem:[#allocation75_spill] sm:$0xff] %v4331_v32  ;;  %v1255_v53 = vadd.f32 %v1127_v16, %v999_v15  ;;  %3042 = vmatpush3.bf16.msra.mxu1 %v402_v18  ;;  %v395_v63 = vpack.c.bf16 %v283_v13, %v282_v10  ;;  %v4334_v14 = vmul.f32 %v4061_v4, %v282_v10  ;;  %v298_v23 = vld [vmem:[%s3855_s13 + $0x170] sm:$0xff]  ;;  %v4345_v15 = vld [vmem:[#allocation3 + $0x178] sm:$0xff] }
  0xf9   :  { %6079 = vst [vmem:[#allocation77_spill] sm:$0xff] %v4336_v2  ;;  %v1286_v51 = vadd.f32 %v1158_v35, %v1030_v43  ;;  %v1287_v45 = vadd.f32 %v1159_v24, %v1031_v59  ;;  %v4341_v37 = vmul.f32 %v4061_v4, %v283_v13  ;;  %v411_v33 = vpack.c.bf16 %v315_v25, %v314_v20  ;;  %v229_v17 = vld [vmem:[%s3850_s9 + $0x8] sm:$0xff]  ;;  %v231_v59 = vld [vmem:[%s3850_s9 + $0x18] sm:$0xff]  ;;  %v228_v24 = vld [vmem:[%s3850_s9] sm:$0xff] }
  0xfa   :  { %6078 = vst [vmem:[#allocation76_spill] sm:$0xff] %v4334_v14  ;;  %6081 = vst [vmem:[#allocation79_spill] sm:$0xff] %v4343_v62  ;;  %v237_v10 = vld [vmem:[%s3850_s9 + $0x48] sm:$0xff]  ;;  %3021 = vmatprep.subr.bf16.mxu0 %v395_v63  ;;  %v4350_v16 = vmul.f32 %v4061_v4, %v314_v20  ;;  %v4353_v18 = vmul.f32 %v4061_v4, %v315_v25  ;;  %v387_v13 = vpack.c.bf16 %v267_v22, %v266_v36  ;;  %v239_v35 = vld [vmem:[%s3850_s9 + $0x58] sm:$0xff] }
  0xfb   :  { %6080 = vst [vmem:[#allocation78_spill] sm:$0xff] %v4341_v37  ;;  %6082 = vst [vmem:[#allocation80_spill] sm:$0xff] %v4345_v15  ;;  %v1000_v43 = vmul.f32 %v4059_v3, %v4331_v32  ;;  %3043 = vmatprep.subr.bf16.mxu1 %v411_v33  ;;  %v1129_v20 = vmul.f32 %v4061_v4, %v267_v22  ;;  %v403_v25 = vpack.c.bf16 %v299_v39, %v298_v23  ;;  %v236_v63 = vld [vmem:[%s3850_s9 + $0x40] sm:$0xff]  ;;  %v333_v37 = vld [vmem:[%s3855_s13 + $0x288] sm:$0xff] }
  0xfc   :  { %1382 = vst [vmem:[#allocation19 + $0x60] sm:$0xff] %v1254_v60  ;;  %1383 = vst [vmem:[#allocation19 + $0x68] sm:$0xff] %v1255_v53  ;;  %v1001_v53 = vmul.f32 %v4059_v3, %v4336_v2  ;;  %v1128_v60 = vmul.f32 %v4061_v4, %v266_v36  ;;  %3022 = vmatpush3.bf16.msra.mxu0 %v387_v13  ;;  %v1033_v33 = vmul.f32 %v4059_v3, %v4345_v15  ;;  %v332_v22 = vld [vmem:[%s3855_s13 + $0x280] sm:$0xff] }
  0xfd   :  { %6083 = vst [vmem:[#allocation81_spill] sm:$0xff] %v4350_v16  ;;  %6084 = vst [vmem:[#allocation82_spill] sm:$0xff] %v4353_v18  ;;  %v230_v18 = vld [vmem:[%s3850_s9 + $0x10] sm:$0xff]  ;;  %v1161_v36 = vmul.f32 %v4061_v4, %v299_v39  ;;  %3044 = vmatpush3.bf16.msra.mxu1 %v403_v25  ;;  %v4375_v32 = vpack.c.bf16 %v237_v10, %v229_v17  ;;  %v4377_v13 = vpack.c.bf16 %v239_v35, %v231_v59  ;;  %v316_v15 = vld [vmem:[%s3855_s13 + $0x200] sm:$0xff] }
  0xfe   :  { %1414 = vst [vmem:[#allocation19 + $0x160] sm:$0xff] %v1286_v51  ;;  %1415 = vst [vmem:[#allocation19 + $0x168] sm:$0xff] %v1287_v45  ;;  %v238_v16 = vld [vmem:[%s3850_s9 + $0x50] sm:$0xff]  ;;  %v1032_v51 = vmul.f32 %v4059_v3, %v4343_v62  ;;  %v1160_v45 = vmul.f32 %v4061_v4, %v298_v23  ;;  %v1256_v14 = vadd.f32 %v1128_v60, %v1000_v43  ;;  %v364_v62 = vld [vmem:[%s3855_s13 + $0x380] sm:$0xff] }
  0xff   :  { %v1257_v2 = vadd.f32 %v1129_v20, %v1001_v53  ;;  %v1289_v42 = vadd.f32 %v1161_v36, %v1033_v33  ;;  %v4382_v40 = vpack.c.bf16 %v236_v63, %v228_v24  ;;  %v4384_v39 = vpack.c.bf16 %v238_v16, %v230_v18  ;;  %v349_v43 = vld [vmem:[%s3855_s13 + $0x308] sm:$0xff]  ;;  %483 = vmatprep.mubr.bf16.mxu0 %v4375_v32  ;;  %v334_v16 = vld [vmem:[%s3855_s13 + $0x290] sm:$0xff]  ;;  %v335_v18 = vld [vmem:[%s3855_s13 + $0x298] sm:$0xff] }
 0x100   :  { %v1288_v23 = vadd.f32 %v1160_v45, %v1032_v51  ;;  %1384 = vst [vmem:[#allocation19 + $0x70] sm:$0xff] %v1256_v14  ;;  %524 = vmatprep.mubr.bf16.mxu1 %v4377_v13  ;;  %v420_v17 = vpack.c.bf16 %v333_v37, %v332_v22  ;;  %v4392_v10 = vmul.f32 %v4061_v4, %v332_v22  ;;  %v367_v24 = vld [vmem:[%s3855_s13 + $0x398] sm:$0xff]  ;;  %v318_v25 = vld [vmem:[%s3855_s13 + $0x210] sm:$0xff]  ;;  %v336_v45 = vld [vmem:[%s3855_s13 + $0x2a0] sm:$0xff] }
 0x101   :  { %6085 = vst [vmem:[#allocation83_spill] sm:$0xff] %v4382_v40  ;;  %6086 = vst [vmem:[#allocation84_spill] sm:$0xff] %v4384_v39  ;;  %v4395_v59 = vmul.f32 %v4061_v4, %v333_v37  ;;  %484 = vmatmul.mubr.bf16.vlgmr.msra.gmra.mrb[0].mxu0 %v4382_v40  ;;  %525 = vmatmul.mubr.bf16.vlgmr.msra.gmra.mrb[0].mxu1 %v4384_v39  ;;  %v436_v14 = vpack.c.bf16 %v365_v27, %v364_v62  ;;  %v366_v37 = vld [vmem:[%s3855_s13 + $0x390] sm:$0xff]  ;;  %v337_v36 = vld [vmem:[%s3855_s13 + $0x2a8] sm:$0xff] }
 0x102   :  { %1385 = vst [vmem:[#allocation19 + $0x78] sm:$0xff] %v1257_v2  ;;  %6087 = vst [vmem:[#allocation85_spill] sm:$0xff] %v4392_v10  ;;  %v4402_v2 = vmul.f32 %v4061_v4, %v364_v62  ;;  %v4405_v35 = vmul.f32 %v4061_v4, %v365_v27  ;;  %3051 = vmatprep.subr.bf16.mxu0 %v420_v17  ;;  %v412_v53 = vpack.c.bf16 %v317_v49, %v316_v15  ;;  %v319_v62 = vld [vmem:[%s3855_s13 + $0x218] sm:$0xff]  ;;  %v350_v27 = vld [vmem:[%s3855_s13 + $0x310] sm:$0xff] }
 0x103   :  { %6088 = vst [vmem:[#allocation86_spill] sm:$0xff] %v4395_v59  ;;  %1416 = vst [vmem:[#allocation19 + $0x170] sm:$0xff] %v1288_v23  ;;  %v4413_v60 = vmul.f32 %v4061_v4, %v317_v49  ;;  %v428_v20 = vpack.c.bf16 %v349_v43, %v348_v48  ;;  %3073 = vmatprep.subr.bf16.mxu1 %v436_v14  ;;  %v4419_v63 = vmul.f32 %v4061_v4, %v348_v48  ;;  %v351_v49 = vld [vmem:[%s3855_s13 + $0x318] sm:$0xff]  ;;  %v369_v17 = vld [vmem:[%s3855_s13 + $0x3a8] sm:$0xff] }
 0x104   :  { %1417 = vst [vmem:[#allocation19 + $0x178] sm:$0xff] %v1289_v42  ;;  %6089 = vst [vmem:[#allocation87_spill] sm:$0xff] %v4402_v2  ;;  %v4410_v42 = vmul.f32 %v4061_v4, %v316_v15  ;;  %v4422_v51 = vmul.f32 %v4061_v4, %v349_v43  ;;  %v421_v33 = vpack.c.bf16 %v335_v18, %v334_v16  ;;  %3052 = vmatpush3.bf16.msra.mxu0 %v412_v53  ;;  %v368_v43 = vld [vmem:[%s3855_s13 + $0x3a0] sm:$0xff]  ;;  %v665_v59 = vld [vmem:[#allocation3 + $0x190] sm:$0xff] }
 0x105   :  { %6090 = vst [vmem:[#allocation88_spill] sm:$0xff] %v4405_v35  ;;  %6092 = vst [vmem:[#allocation90_spill] sm:$0xff] %v4413_v60  ;;  %v4425_v15 = vmul.f32 %v4061_v4, %v334_v16  ;;  %3074 = vmatpush3.bf16.msra.mxu1 %v428_v20  ;;  %v4431_v22 = vmul.f32 %v4061_v4, %v335_v18  ;;  %v437_v23 = vpack.c.bf16 %v367_v24, %v366_v37  ;;  %v320_v20 = vld [vmem:[%s3855_s13 + $0x220] sm:$0xff]  ;;  %v3392_v60 = vld [vmem:[#allocation3 + $0x8] sm:$0xff] }
 0x106   :  { %6091 = vst [vmem:[#allocation89_spill] sm:$0xff] %v4410_v42  ;;  %6093 = vst [vmem:[#allocation91_spill] sm:$0xff] %v4419_v63  ;;  %v4434_v48 = vmul.f32 %v4061_v4, %v366_v37  ;;  %3053 = vmatprep.subr.bf16.mxu0 %v421_v33  ;;  %v4439_v16 = vmul.f32 %v4061_v4, %v367_v24  ;;  %v413_v14 = vpack.c.bf16 %v319_v62, %v318_v25  ;;  %v321_v37 = vld [vmem:[%s3855_s13 + $0x228] sm:$0xff]  ;;  %v240_v2 = vld [vmem:[%s3850_s9 + $0x60] sm:$0xff] }
 0x107   :  { %6094 = vst [vmem:[#allocation92_spill] sm:$0xff] %v4422_v51  ;;  %6095 = vst [vmem:[#allocation93_spill] sm:$0xff] %v4425_v15  ;;  %v4442_v53 = vmul.f32 %v4061_v4, %v318_v25  ;;  %v4445_v18 = vmul.f32 %v4061_v4, %v319_v62  ;;  %3075 = vmatprep.subr.bf16.mxu1 %v437_v23  ;;  %v429_v39 = vpack.c.bf16 %v351_v49, %v350_v27  ;;  %v352_v25 = vld [vmem:[%s3855_s13 + $0x320] sm:$0xff]  ;;  %v666_v10 = vld [vmem:[#allocation3 + $0x198] sm:$0xff] }
 0x108   :  { %6096 = vst [vmem:[#allocation94_spill] sm:$0xff] %v4431_v22  ;;  %6097 = vst [vmem:[#allocation95_spill] sm:$0xff] %v4434_v48  ;;  %v4450_v40 = vmul.f32 %v4061_v4, %v350_v27  ;;  %v4453_v24 = vmul.f32 %v4061_v4, %v351_v49  ;;  %v422_v33 = vpack.c.bf16 %v337_v36, %v336_v45  ;;  %v338_v27 = vld [vmem:[%s3855_s13 + $0x2b0] sm:$0xff]  ;;  %v339_v49 = vld [vmem:[%s3855_s13 + $0x2b8] sm:$0xff]  ;;  %3054 = vmatpush3.bf16.msra.mxu0 %v413_v14 }
 0x109   :  { %6098 = vst [vmem:[#allocation96_spill] sm:$0xff] %v4439_v16  ;;  %6099 = vst [vmem:[#allocation97_spill] sm:$0xff] %v4442_v53  ;;  %v353_v16 = vld [vmem:[%s3855_s13 + $0x328] sm:$0xff]  ;;  %v4458_v62 = vmul.f32 %v4061_v4, %v336_v45  ;;  %v4461_v48 = vmul.f32 %v4061_v4, %v337_v36  ;;  %v438_v23 = vpack.c.bf16 %v369_v17, %v368_v43  ;;  %3076 = vmatpush3.bf16.msra.mxu1 %v429_v39  ;;  %v371_v36 = vld [vmem:[%s3855_s13 + $0x3b8] sm:$0xff] }
 0x10a   :  { %6100 = vst [vmem:[#allocation98_spill] sm:$0xff] %v4445_v18  ;;  %6101 = vst [vmem:[#allocation99_spill] sm:$0xff] %v4450_v40  ;;  %v4464_v18 = vmul.f32 %v4061_v4, %v368_v43  ;;  %v4470_v40 = vmul.f32 %v4061_v4, %v369_v17  ;;  %v414_v53 = vpack.c.bf16 %v321_v37, %v320_v20  ;;  %v323_v43 = vld [vmem:[%s3855_s13 + $0x238] sm:$0xff]  ;;  %3055 = vmatprep.subr.bf16.mxu0 %v422_v33  ;;  %v354_v14 = vld [vmem:[%s3855_s13 + $0x330] sm:$0xff] }
 0x10b   :  { %6102 = vst [vmem:[#allocation100_spill] sm:$0xff] %v4453_v24  ;;  %6103 = vst [vmem:[#allocation101_spill] sm:$0xff] %v4458_v62  ;;  %v370_v24 = vld [vmem:[%s3855_s13 + $0x3b0] sm:$0xff]  ;;  %v4473_v45 = vmul.f32 %v4061_v4, %v320_v20  ;;  %3077 = vmatprep.subr.bf16.mxu1 %v438_v23  ;;  %v430_v39 = vpack.c.bf16 %v353_v16, %v352_v25  ;;  %v4482_v17 = vmul.f32 %v4061_v4, %v352_v25  ;;  %v341_v23 = vld [vmem:[%s3855_s13 + $0x2c8] sm:$0xff] }
 0x10c   :  { %6104 = vst [vmem:[#allocation102_spill] sm:$0xff] %v4461_v48  ;;  %6105 = vst [vmem:[#allocation103_spill] sm:$0xff] %v4464_v18  ;;  %v322_v48 = vld [vmem:[%s3855_s13 + $0x230] sm:$0xff]  ;;  %v4479_v18 = vmul.f32 %v4061_v4, %v321_v37  ;;  %v4487_v20 = vmul.f32 %v4061_v4, %v353_v16  ;;  %v4490_v62 = vmul.f32 %v4061_v4, %v338_v27  ;;  %v340_v37 = vld [vmem:[%s3855_s13 + $0x2c0] sm:$0xff]  ;;  %3056 = vmatpush3.bf16.msra.mxu0 %v414_v53 }
 0x10d   :  { %6106 = vst [vmem:[#allocation104_spill] sm:$0xff] %v4470_v40  ;;  %6107 = vst [vmem:[#allocation105_spill] sm:$0xff] %v4473_v45  ;;  %v355_v40 = vld [vmem:[%s3855_s13 + $0x338] sm:$0xff]  ;;  %v423_v45 = vpack.c.bf16 %v339_v49, %v338_v27  ;;  %v4493_v33 = vmul.f32 %v4061_v4, %v339_v49  ;;  %v4498_v25 = vmul.f32 %v4061_v4, %v370_v24  ;;  %v373_v22 = vld [vmem:[%s3855_s13 + $0x3c8] sm:$0xff]  ;;  %3078 = vmatpush3.bf16.msra.mxu1 %v430_v39 }
 0x10e   :  { %6108 = vst [vmem:[#allocation106_spill] sm:$0xff] %v4479_v18  ;;  %6109 = vst [vmem:[#allocation107_spill] sm:$0xff] %v4482_v17  ;;  %v439_v18 = vpack.c.bf16 %v371_v36, %v370_v24  ;;  %v4501_v17 = vmul.f32 %v4061_v4, %v371_v36  ;;  %v415_v16 = vpack.c.bf16 %v323_v43, %v322_v48  ;;  %v325_v36 = vld [vmem:[%s3855_s13 + $0x248] sm:$0xff]  ;;  %v356_v39 = vld [vmem:[%s3855_s13 + $0x340] sm:$0xff] }
 0x10f   :  { %6110 = vst [vmem:[#allocation108_spill] sm:$0xff] %v4487_v20  ;;  %6111 = vst [vmem:[#allocation109_spill] sm:$0xff] %v4490_v62  ;;  %v372_v20 = vld [vmem:[%s3855_s13 + $0x3c0] sm:$0xff]  ;;  %v4506_v27 = vmul.f32 %v4061_v4, %v322_v48  ;;  %v4509_v49 = vmul.f32 %v4061_v4, %v323_v43  ;;  %v431_v24 = vpack.c.bf16 %v355_v40, %v354_v14  ;;  %3057 = vmatprep.subr.bf16.mxu0 %v423_v45  ;;  %v357_v43 = vld [vmem:[%s3855_s13 + $0x348] sm:$0xff] }
 0x110   :  { %6112 = vst [vmem:[#allocation110_spill] sm:$0xff] %v4493_v33  ;;  %6113 = vst [vmem:[#allocation111_spill] sm:$0xff] %v4498_v25  ;;  %v324_v25 = vld [vmem:[%s3855_s13 + $0x240] sm:$0xff]  ;;  %3079 = vmatprep.subr.bf16.mxu1 %v439_v18  ;;  %v4517_v53 = vmul.f32 %v4061_v4, %v355_v40  ;;  %v424_v48 = vpack.c.bf16 %v341_v23, %v340_v37  ;;  %v440_v45 = vpack.c.bf16 %v373_v22, %v372_v20  ;;  %v343_v40 = vld [vmem:[%s3855_s13 + $0x2d8] sm:$0xff] }
 0x111   :  { %6114 = vst [vmem:[#allocation112_spill] sm:$0xff] %v4501_v17  ;;  %6115 = vst [vmem:[#allocation113_spill] sm:$0xff] %v4506_v27  ;;  %v4514_v17 = vmul.f32 %v4061_v4, %v354_v14  ;;  %v4525_v27 = vmul.f32 %v4061_v4, %v341_v23  ;;  %v4528_v18 = vmul.f32 %v4061_v4, %v372_v20  ;;  %v342_v14 = vld [vmem:[%s3855_s13 + $0x2d0] sm:$0xff]  ;;  %v375_v23 = vld [vmem:[%s3855_s13 + $0x3d8] sm:$0xff]  ;;  %3058 = vmatpush3.bf16.msra.mxu0 %v415_v16 }
 0x112   :  { %6116 = vst [vmem:[#allocation114_spill] sm:$0xff] %v4509_v49  ;;  %6118 = vst [vmem:[#allocation116_spill] sm:$0xff] %v4517_v53  ;;  %v4522_v49 = vmul.f32 %v4061_v4, %v340_v37  ;;  %v374_v53 = vld [vmem:[%s3855_s13 + $0x3d0] sm:$0xff]  ;;  %v416_v33 = vpack.c.bf16 %v325_v36, %v324_v25  ;;  %v4537_v62 = vmul.f32 %v4061_v4, %v324_v25  ;;  %3080 = vmatpush3.bf16.msra.mxu1 %v431_v24  ;;  %v344_v24 = vld [vmem:[%s3855_s13 + $0x2e0] sm:$0xff] }
 0x113   :  { %6117 = vst [vmem:[#allocation115_spill] sm:$0xff] %v4514_v17  ;;  %6120 = vst [vmem:[#allocation118_spill] sm:$0xff] %v4525_v27  ;;  %v4534_v17 = vmul.f32 %v4061_v4, %v373_v22  ;;  %v4540_v37 = vmul.f32 %v4061_v4, %v325_v36  ;;  %v326_v20 = vld [vmem:[%s3855_s13 + $0x250] sm:$0xff]  ;;  %v432_v27 = vpack.c.bf16 %v357_v43, %v356_v39  ;;  %3059 = vmatprep.subr.bf16.mxu0 %v424_v48 }
 0x114   :  { %6119 = vst [vmem:[#allocation117_spill] sm:$0xff] %v4522_v49  ;;  %6121 = vst [vmem:[#allocation119_spill] sm:$0xff] %v4528_v18  ;;  %v327_v18 = vld [vmem:[%s3855_s13 + $0x258] sm:$0xff]  ;;  %v4546_v49 = vmul.f32 %v4061_v4, %v356_v39  ;;  %v4549_v22 = vmul.f32 %v4061_v4, %v357_v43  ;;  %v358_v25 = vld [vmem:[%s3855_s13 + $0x350] sm:$0xff]  ;;  %3081 = vmatprep.subr.bf16.mxu1 %v440_v45  ;;  %v425_v36 = vpack.c.bf16 %v343_v40, %v342_v14 }
 0x115   :  { %6122 = vst [vmem:[#allocation120_spill] sm:$0xff] %v4534_v17  ;;  %6123 = vst [vmem:[#allocation121_spill] sm:$0xff] %v4537_v62  ;;  %v359_v17 = vld [vmem:[%s3855_s13 + $0x358] sm:$0xff]  ;;  %v4557_v16 = vmul.f32 %v4061_v4, %v343_v40  ;;  %v345_v39 = vld [vmem:[%s3855_s13 + $0x2e8] sm:$0xff]  ;;  %v4562_v43 = vmul.f32 %v4061_v4, %v374_v53  ;;  %v417_v48 = vpack.c.bf16 %v327_v18, %v326_v20  ;;  %3060 = vmatpush3.bf16.msra.mxu0 %v416_v33 }
 0x116   :  { %6124 = vst [vmem:[#allocation122_spill] sm:$0xff] %v4540_v37  ;;  %6125 = vst [vmem:[#allocation123_spill] sm:$0xff] %v4546_v49  ;;  %v4554_v37 = vmul.f32 %v4061_v4, %v342_v14  ;;  %v441_v49 = vpack.c.bf16 %v375_v23, %v374_v53  ;;  %v376_v45 = vld [vmem:[%s3855_s13 + $0x3e0] sm:$0xff]  ;;  %v377_v14 = vld [vmem:[%s3855_s13 + $0x3e8] sm:$0xff]  ;;  %v4573_v40 = vmul.f32 %v4061_v4, %v327_v18  ;;  %3082 = vmatpush3.bf16.msra.mxu1 %v432_v27 }
 0x117   :  { %6126 = vst [vmem:[#allocation124_spill] sm:$0xff] %v4549_v22  ;;  %6128 = vst [vmem:[#allocation126_spill] sm:$0xff] %v4557_v16  ;;  %v4565_v22 = vmul.f32 %v4061_v4, %v375_v23  ;;  %v433_v16 = vpack.c.bf16 %v359_v17, %v358_v25  ;;  %v4576_v62 = vmul.f32 %v4061_v4, %v358_v25  ;;  %v328_v53 = vld [vmem:[%s3855_s13 + $0x260] sm:$0xff]  ;;  %v329_v23 = vld [vmem:[%s3855_s13 + $0x268] sm:$0xff]  ;;  %3061 = vmatprep.subr.bf16.mxu0 %v425_v36 }
 0x118   :  { %6127 = vst [vmem:[#allocation125_spill] sm:$0xff] %v4554_v37  ;;  %6129 = vst [vmem:[#allocation127_spill] sm:$0xff] %v4562_v43  ;;  %v4570_v37 = vmul.f32 %v4061_v4, %v326_v20  ;;  %v4582_v43 = vmul.f32 %v4061_v4, %v359_v17  ;;  %v426_v20 = vpack.c.bf16 %v345_v39, %v344_v24  ;;  %v361_v18 = vld [vmem:[%s3855_s13 + $0x368] sm:$0xff]  ;;  %v346_v25 = vld [vmem:[%s3855_s13 + $0x2f0] sm:$0xff]  ;;  %3083 = vmatprep.subr.bf16.mxu1 %v441_v49 }
 0x119   :  { %6130 = vst [vmem:[#allocation128_spill] sm:$0xff] %v4565_v22  ;;  %6132 = vst [vmem:[#allocation130_spill] sm:$0xff] %v4573_v40  ;;  %v360_v22 = vld [vmem:[%s3855_s13 + $0x360] sm:$0xff]  ;;  %v4591_v40 = vmul.f32 %v4061_v4, %v345_v39  ;;  %v442_v33 = vpack.c.bf16 %v377_v14, %v376_v45  ;;  %v4594_v17 = vmul.f32 %v4061_v4, %v376_v45  ;;  %v378_v27 = vld [vmem:[%s3855_s13 + $0x3f0] sm:$0xff]  ;;  %3062 = vmatpush3.bf16.msra.mxu0 %v417_v48 }
 0x11a   :  { %6131 = vst [vmem:[#allocation129_spill] sm:$0xff] %v4570_v37  ;;  %6133 = vst [vmem:[#allocation131_spill] sm:$0xff] %v4576_v62  ;;  %v4585_v37 = vmul.f32 %v4061_v4, %v344_v24  ;;  %v347_v62 = vld [vmem:[%s3855_s13 + $0x2f8] sm:$0xff]  ;;  %v418_v15 = vpack.c.bf16 %v329_v23, %v328_v53  ;;  %v4605_v49 = vmul.f32 %v4061_v4, %v328_v53  ;;  %v4614_v45 = vld [vmem:[%s3855_s13 + $0x370] sm:$0xff]  ;;  %3084 = vmatpush3.bf16.msra.mxu1 %v433_v16 }
 0x11b   :  { %6134 = vst [vmem:[#allocation132_spill] sm:$0xff] %v4582_v43  ;;  %6136 = vst [vmem:[#allocation134_spill] sm:$0xff] %v4591_v40  ;;  %v379_v24 = vld [vmem:[%s3855_s13 + $0x3f8] sm:$0xff]  ;;  %v4602_v43 = vmul.f32 %v4061_v4, %v377_v14  ;;  %v4608_v36 = vmul.f32 %v4061_v4, %v329_v23  ;;  %v434_v40 = vpack.c.bf16 %v361_v18, %v360_v22  ;;  %v241_v23 = vld [vmem:[%s3850_s9 + $0x68] sm:$0xff]  ;;  %3063 = vmatprep.subr.bf16.mxu0 %v426_v20 }
 0x11c   :  { %6135 = vst [vmem:[#allocation133_spill] sm:$0xff] %v4585_v37  ;;  %6137 = vst [vmem:[#allocation135_spill] sm:$0xff] %v4594_v17  ;;  %v4599_v37 = vld [vmem:[%s3855_s13 + $0x270] sm:$0xff]  ;;  %v4611_v39 = vld [vmem:[%s3855_s13 + $0x278] sm:$0xff]  ;;  %v4620_v14 = vmul.f32 %v4061_v4, %v360_v22  ;;  %v427_v53 = vpack.c.bf16 %v347_v62, %v346_v25  ;;  %v4629_v51 = vmul.f32 %v4061_v4, %v346_v25  ;;  %3085 = vmatprep.subr.bf16.mxu1 %v442_v33 }
 0x11d   :  { %6138 = vst [vmem:[#allocation136_spill] sm:$0xff] %v4602_v43  ;;  %6139 = vst [vmem:[#allocation137_spill] sm:$0xff] %v4605_v49  ;;  %v4617_v17 = vld [vmem:[%s3855_s13 + $0x378] sm:$0xff]  ;;  %v4623_v43 = vmul.f32 %v4061_v4, %v361_v18  ;;  %v233_v49 = vld [vmem:[%s3850_s9 + $0x28] sm:$0xff]  ;;  %v4632_v63 = vmul.f32 %v4061_v4, %v347_v62  ;;  %v443_v35 = vpack.c.bf16 %v379_v24, %v378_v27  ;;  %3064 = vmatpush3.bf16.msra.mxu0 %v418_v15  ;;  %s6248_s13 = sld [smem:[#allocation43_spill]] }
 0x11e   :  { %6140 = vst [vmem:[#allocation138_spill] sm:$0xff] %v4608_v36  ;;  %6141 = vst [vmem:[#allocation139_spill] sm:$0xff] %v4620_v14  ;;  %v235_v36 = vld [vmem:[%s3850_s9 + $0x38] sm:$0xff]  ;;  %v232_v14 = vld [vmem:[%s3850_s9 + $0x20] sm:$0xff]  ;;  %v4638_v18 = vmul.f32 %v4061_v4, %v378_v27  ;;  %v419_v16 = vpack.c.bf16 %v4611_v39, %v4599_v37  ;;  %v4649_v62 = vmul.f32 %v4061_v4, %v4599_v37  ;;  %3086 = vmatpush3.bf16.msra.mxu1 %v434_v40 }
 0x11f   :  { %6142 = vst [vmem:[#allocation140_spill] sm:$0xff] %v4623_v43  ;;  %6143 = vst [vmem:[#allocation141_spill] sm:$0xff] %v4629_v51  ;;  %v243_v22 = vld [vmem:[%s3850_s9 + $0x78] sm:$0xff]  ;;  %v4641_v43 = vmul.f32 %v4061_v4, %v379_v24  ;;  %v234_v48 = vld [vmem:[%s3850_s9 + $0x30] sm:$0xff]  ;;  %v435_v20 = vpack.c.bf16 %v4617_v17, %v4614_v45  ;;  %v4659_v33 = vmul.f32 %v4061_v4, %v4614_v45  ;;  %3065 = vmatprep.subr.bf16.mxu0 %v427_v53 }
 0x120   :  { %6144 = vst [vmem:[#allocation142_spill] sm:$0xff] %v4632_v63  ;;  %6145 = vst [vmem:[#allocation143_spill] sm:$0xff] %v4638_v18  ;;  %v242_v25 = vld [vmem:[%s3850_s9 + $0x70] sm:$0xff]  ;;  %v4653_v63 = vmul.f32 %v4061_v4, %v4611_v39  ;;  %v4663_v24 = vld [vmem:[#allocation3 + $0x98] sm:$0xff]  ;;  %v4669_v37 = vpack.c.bf16 %v241_v23, %v233_v49  ;;  %v4671_v18 = vpack.c.bf16 %v243_v22, %v235_v36  ;;  %3087 = vmatprep.subr.bf16.mxu1 %v443_v35  ;;  %s6247_s9 = sld [smem:[#allocation42_spill]] }
 0x121   :  { %6146 = vst [vmem:[#allocation144_spill] sm:$0xff] %v4641_v43  ;;  %6147 = vst [vmem:[#allocation145_spill] sm:$0xff] %v4649_v62  ;;  %v4661_v27 = vld [vmem:[#allocation3 + $0x90] sm:$0xff]  ;;  %v4667_v43 = vmul.f32 %v4061_v4, %v4617_v17  ;;  %v4673_v39 = vpack.c.bf16 %v240_v2, %v232_v14  ;;  %v3389_v45 = vld [vmem:[#allocation3 + $0x80] sm:$0xff]  ;;  %v768_v53 = vpack.c.bf16 %v666_v10, %v665_v59  ;;  %3066 = vmatpush3.bf16.msra.mxu0 %v419_v16 }
 0x122   :  { %6148 = vst [vmem:[#allocation146_spill] sm:$0xff] %v4653_v63  ;;  %6149 = vst [vmem:[#allocation147_spill] sm:$0xff] %v4659_v33  ;;  %v4675_v63 = vpack.c.bf16 %v242_v25, %v234_v48  ;;  %v3390_v33 = vld [vmem:[#allocation3 + $0x88] sm:$0xff]  ;;  %v3391_v51 = vld [vmem:[#allocation3] sm:$0xff]  ;;  %v752_v15 = vpack.c.bf16 %v4663_v24, %v4661_v27  ;;  %565 = vmatprep.mubr.bf16.mxu0 %v4669_v37  ;;  %606 = vmatprep.mubr.bf16.mxu1 %v4671_v18 }
 0x123   :  { %v751_v62 = vpack.c.bf16 %v3390_v33, %v3389_v45  ;;  %v743_v42 = vpack.c.bf16 %v3392_v60, %v3391_v51  ;;  %v3393_v17 = vld [vmem:[#allocation3 + $0x180] sm:$0xff]  ;;  %v3394_v49 = vld [vmem:[#allocation3 + $0x188] sm:$0xff]  ;;  %v1004_v35 = vmul.f32 %v4059_v3, %v4661_v27  ;;  %v1005_v60 = vmul.f32 %v4059_v3, %v4663_v24  ;;  %3088 = vmatpush3.bf16.msra.mxu1 %v435_v20 }
 0x124   :  { %v767_v36 = vpack.c.bf16 %v3394_v49, %v3393_v17  ;;  %v3395_v23 = vld [vmem:[#allocation3 + $0x100] sm:$0xff]  ;;  %v3396_v2 = vld [vmem:[#allocation3 + $0x108] sm:$0xff]  ;;  %v744_v51 = vpack.c.bf16 %v4102_v57, %v4094_v52  ;;  %v1036_v48 = vmul.f32 %v4059_v3, %v665_v59  ;;  %v1037_v25 = vmul.f32 %v4059_v3, %v666_v10  ;;  %v4709_v59 = vld [vmem:[#allocation3 + $0xb8] sm:$0xff]  ;;  %566 = vmatmul.mubr.bf16.vlgmr.msra.gmra.mrb[4].mxu0 %v4673_v39 }
 0x125   :  { %v759_v14 = vpack.c.bf16 %v3396_v2, %v3395_v23  ;;  %v4679_v40 = vld [vmem:[#allocation3 + $0xa0] sm:$0xff]  ;;  %v4681_v22 = vld [vmem:[#allocation3 + $0xa8] sm:$0xff]  ;;  %v760_v33 = vpack.c.bf16 %v4119_v9, %v4111_v0  ;;  %v1260_v27 = vadd.f32 %v4091_v50, %v1004_v35  ;;  %v1261_v24 = vadd.f32 %v4097_v54, %v1005_v60  ;;  %3095 = vmatprep.subr.bf16.mxu0 %v751_v62  ;;  %v4707_v9 = vld [vmem:[#allocation3 + $0xb0] sm:$0xff] }
 0x126   :  { %v4695_v45 = vld [vmem:[#allocation3 + $0x1a0] sm:$0xff]  ;;  %v4697_v17 = vld [vmem:[#allocation3 + $0x1a8] sm:$0xff]  ;;  %v753_v52 = vpack.c.bf16 %v4681_v22, %v4679_v40  ;;  %3117 = vmatprep.subr.bf16.mxu1 %v767_v36  ;;  %v1292_v57 = vadd.f32 %v4100_v56, %v1036_v48  ;;  %v1293_v10 = vadd.f32 %v4107_v61, %v1037_v25  ;;  %v1006_v0 = vmul.f32 %v4059_v3, %v4679_v40  ;;  %v4726_v49 = vld [vmem:[#allocation3 + $0x1b0] sm:$0xff] }
 0x127   :  { %1388 = vst [vmem:[#allocation19 + $0x90] sm:$0xff] %v1260_v27  ;;  %1389 = vst [vmem:[#allocation19 + $0x98] sm:$0xff] %v1261_v24  ;;  %v1007_v50 = vmul.f32 %v4059_v3, %v4681_v22  ;;  %v745_v54 = vpack.c.bf16 %v4141_v29, %v4139_v28  ;;  %v769_v56 = vpack.c.bf16 %v4697_v17, %v4695_v45  ;;  %607 = vmatmul.mubr.bf16.vlgmr.msra.gmra.mrb[4].mxu1 %v4675_v63  ;;  %v4728_v36 = vld [vmem:[#allocation3 + $0x1b8] sm:$0xff]  ;;  %v4736_v22 = vld [vmem:[#allocation3 + $0xc8] sm:$0xff] }
 0x128   :  { %v1038_v61 = vmul.f32 %v4059_v3, %v4695_v45  ;;  %1420 = vst [vmem:[#allocation19 + $0x190] sm:$0xff] %v1292_v57  ;;  %1421 = vst [vmem:[#allocation19 + $0x198] sm:$0xff] %v1293_v10  ;;  %v1262_v16 = vadd.f32 %v4132_v21, %v1006_v0  ;;  %v1039_v62 = vmul.f32 %v4059_v3, %v4697_v17  ;;  %3096 = vmatpush3.bf16.msra.mxu0 %v743_v42  ;;  %v4734_v21 = vld [vmem:[#allocation3 + $0xc0] sm:$0xff]  ;;  %v4753_v35 = vld [vmem:[#allocation3 + $0x1c8] sm:$0xff] }
 0x129   :  { %v761_v20 = vpack.c.bf16 %v4159_v41, %v4151_v34  ;;  %3118 = vmatpush3.bf16.msra.mxu1 %v759_v14  ;;  %v1263_v23 = vadd.f32 %v4137_v26, %v1007_v50  ;;  %v754_v40 = vpack.c.bf16 %v4709_v59, %v4707_v9  ;;  %3097 = vmatprep.subr.bf16.mxu0 %v752_v15  ;;  %v4751_v15 = vld [vmem:[#allocation3 + $0x1c0] sm:$0xff]  ;;  %v4784_v27 = vld [vmem:[#allocation3 + $0x1d0] sm:$0xff]  ;;  %v4786_v24 = vld [vmem:[#allocation3 + $0x1d8] sm:$0xff] }
 0x12a   :  { %v1294_v2 = vadd.f32 %v4144_v30, %v1038_v61  ;;  %3119 = vmatprep.subr.bf16.mxu1 %v768_v53  ;;  %1390 = vst [vmem:[#allocation19 + $0xa0] sm:$0xff] %v1262_v16  ;;  %v1295_v34 = vadd.f32 %v4147_v31, %v1039_v62  ;;  %v1008_v41 = vmul.f32 %v4059_v3, %v4707_v9  ;;  %v4795_v0 = vld [vmem:[#allocation3 + $0xe0] sm:$0xff]  ;;  %v4797_v9 = vld [vmem:[#allocation3 + $0xe8] sm:$0xff]  ;;  %v6152_v61 = vld [vmem:[#allocation61_spill] sm:$0xff] }
 0x12b   :  { %v1009_v26 = vmul.f32 %v4059_v3, %v4709_v59  ;;  %1391 = vst [vmem:[#allocation19 + $0xa8] sm:$0xff] %v1263_v23  ;;  %v746_v30 = vpack.c.bf16 %v4181_v6, %v4179_v5  ;;  %v770_v42 = vpack.c.bf16 %v4728_v36, %v4726_v49  ;;  %v1040_v14 = vmul.f32 %v4059_v3, %v4726_v49  ;;  %v6151_v50 = vld [vmem:[#allocation58_spill] sm:$0xff]  ;;  %v6154_v23 = vld [vmem:[#allocation59_spill] sm:$0xff]  ;;  %v6155_v28 = vld [vmem:[#allocation60_spill] sm:$0xff] }
 0x12c   :  { %1422 = vst [vmem:[#allocation19 + $0x1a0] sm:$0xff] %v1294_v2  ;;  %v1041_v31 = vmul.f32 %v4059_v3, %v4728_v36  ;;  %846 = vmatprep.mubr.bf16.mxu0 %v4375_v32  ;;  %1423 = vst [vmem:[#allocation19 + $0x1a8] sm:$0xff] %v1295_v34  ;;  %v1264_v60 = vadd.f32 %v4172_v58, %v1008_v41  ;;  %v762_v48 = vpack.c.bf16 %v4199_v19, %v4191_v12  ;;  %v4767_v58 = vld [vmem:[#allocation3 + $0xd0] sm:$0xff]  ;;  %v6153_v16 = vld [vmem:[#allocation62_spill] sm:$0xff] }
 0x12d   :  { %v1265_v53 = vadd.f32 %v4177_v1, %v1009_v26  ;;  %v755_v25 = vpack.c.bf16 %v4736_v22, %v4734_v21  ;;  %887 = vmatprep.mubr.bf16.mxu1 %v4377_v13  ;;  %3098 = vmatpush3.bf16.msra.mxu0 %v744_v51  ;;  %v1296_v45 = vadd.f32 %v4184_v7, %v1040_v14  ;;  %v4769_v1 = vld [vmem:[#allocation3 + $0xd8] sm:$0xff]  ;;  %v4806_v49 = vld [vmem:[#allocation3 + $0x1e0] sm:$0xff]  ;;  %v4808_v36 = vld [vmem:[#allocation3 + $0x1e8] sm:$0xff] }
 0x12e   :  { %3120 = vmatpush3.bf16.msra.mxu1 %v760_v33  ;;  %v1297_v17 = vadd.f32 %v4187_v8, %v1041_v31  ;;  %v1010_v32 = vmul.f32 %v4059_v3, %v4734_v21  ;;  %3099 = vmatprep.subr.bf16.mxu0 %v753_v52  ;;  %1392 = vst [vmem:[#allocation19 + $0xb0] sm:$0xff] %v1264_v60  ;;  %v4816_v34 = vld [vmem:[#allocation3 + $0xf8] sm:$0xff]  ;;  %v6163_v6 = vld [vmem:[#allocation68_spill] sm:$0xff] }
 0x12f   :  { %3121 = vmatprep.subr.bf16.mxu1 %v769_v56  ;;  %1393 = vst [vmem:[#allocation19 + $0xb8] sm:$0xff] %v1265_v53  ;;  %v1011_v12 = vmul.f32 %v4059_v3, %v4736_v22  ;;  %v747_v19 = vpack.c.bf16 %v4221_v47, %v4219_v46  ;;  %v771_v7 = vpack.c.bf16 %v4753_v35, %v4751_v15  ;;  %1424 = vst [vmem:[#allocation19 + $0x1b0] sm:$0xff] %v1296_v45  ;;  %v6156_v26 = vld [vmem:[#allocation65_spill] sm:$0xff]  ;;  %v4863_v22 = vld [vmem:[#allocation3 + $0x200] sm:$0xff] }
 0x130   :  { %1425 = vst [vmem:[#allocation19 + $0x1b8] sm:$0xff] %v1297_v17  ;;  %v1266_v8 = vadd.f32 %v4212_v38, %v1010_v32  ;;  %v1042_v13 = vmul.f32 %v4059_v3, %v4751_v15  ;;  %v1043_v51 = vmul.f32 %v4059_v3, %v4753_v35  ;;  %v763_v33 = vpack.c.bf16 %v4239_v11, %v4231_v55  ;;  %v4826_v15 = vld [vmem:[#allocation3 + $0x1f0] sm:$0xff]  ;;  %v4828_v35 = vld [vmem:[#allocation3 + $0x1f8] sm:$0xff] }
 0x131   :  { %v1267_v52 = vadd.f32 %v4217_v44, %v1011_v12  ;;  %v756_v57 = vpack.c.bf16 %v4769_v1, %v4767_v58  ;;  %v1012_v38 = vmul.f32 %v4059_v3, %v4767_v58  ;;  %v1013_v10 = vmul.f32 %v4059_v3, %v4769_v1  ;;  %3100 = vmatpush3.bf16.msra.mxu0 %v745_v54  ;;  %v6150_v44 = vld [vmem:[#allocation57_spill] sm:$0xff]  ;;  %v6159_v17 = vld [vmem:[#allocation70_spill] sm:$0xff]  ;;  %v6173_v55 = vld [vmem:[#allocation80_spill] sm:$0xff] }
 0x132   :  { %3122 = vmatpush3.bf16.msra.mxu1 %v761_v20  ;;  %1394 = vst [vmem:[#allocation19 + $0xc0] sm:$0xff] %v1266_v8  ;;  %v1298_v59 = vadd.f32 %v6150_v44, %v1042_v13  ;;  %v1299_v56 = vadd.f32 %v6151_v50, %v1043_v51  ;;  %v748_v62 = vpack.c.bf16 %v6153_v16, %v6152_v61  ;;  %v4814_v20 = vld [vmem:[#allocation3 + $0xf0] sm:$0xff]  ;;  %v6160_v8 = vld [vmem:[#allocation63_spill] sm:$0xff]  ;;  %v6171_v46 = vld [vmem:[#allocation78_spill] sm:$0xff] }
 0x133   :  { %3101 = vmatprep.subr.bf16.mxu0 %v754_v40  ;;  %3123 = vmatprep.subr.bf16.mxu1 %v770_v42  ;;  %1395 = vst [vmem:[#allocation19 + $0xc8] sm:$0xff] %v1267_v52  ;;  %v1268_v2 = vadd.f32 %v6154_v23, %v1012_v38  ;;  %v1269_v29 = vadd.f32 %v6155_v28, %v1013_v10  ;;  %v6157_v42 = vld [vmem:[#allocation66_spill] sm:$0xff]  ;;  %v6158_v45 = vld [vmem:[#allocation69_spill] sm:$0xff]  ;;  %v6161_v51 = vld [vmem:[#allocation64_spill] sm:$0xff] }
 0x134   :  { %v772_v54 = vpack.c.bf16 %v4786_v24, %v4784_v27  ;;  %1426 = vst [vmem:[#allocation19 + $0x1c0] sm:$0xff] %v1298_v59  ;;  %1427 = vst [vmem:[#allocation19 + $0x1c8] sm:$0xff] %v1299_v56  ;;  %v1044_v41 = vmul.f32 %v4059_v3, %v4784_v27  ;;  %v1045_v40 = vmul.f32 %v4059_v3, %v4786_v24  ;;  %v4845_v52 = vld [vmem:[#allocation3 + $0x280] sm:$0xff]  ;;  %v4847_v38 = vld [vmem:[#allocation3 + $0x288] sm:$0xff] }
 0x135   :  { %v764_v14 = vpack.c.bf16 %v6157_v42, %v6156_v26  ;;  %v757_v31 = vpack.c.bf16 %v4797_v9, %v4795_v0  ;;  %1396 = vst [vmem:[#allocation19 + $0xd0] sm:$0xff] %v1268_v2  ;;  %1397 = vst [vmem:[#allocation19 + $0xd8] sm:$0xff] %v1269_v29  ;;  %v1014_v60 = vmul.f32 %v4059_v3, %v4795_v0  ;;  %3102 = vmatpush3.bf16.msra.mxu0 %v746_v30  ;;  %v6162_v10 = vld [vmem:[#allocation67_spill] sm:$0xff]  ;;  %v6165_v50 = vld [vmem:[#allocation73_spill] sm:$0xff] }
 0x136   :  { %v1015_v53 = vmul.f32 %v4059_v3, %v4797_v9  ;;  %v749_v32 = vpack.c.bf16 %v6159_v17, %v6158_v45  ;;  %v773_v12 = vpack.c.bf16 %v4808_v36, %v4806_v49  ;;  %3124 = vmatpush3.bf16.msra.mxu1 %v762_v48  ;;  %v1300_v13 = vadd.f32 %v6160_v8, %v1044_v41  ;;  %v6164_v44 = vld [vmem:[#allocation71_spill] sm:$0xff]  ;;  %v6166_v56 = vld [vmem:[#allocation74_spill] sm:$0xff]  ;;  %v6167_v2 = vld [vmem:[#allocation72_spill] sm:$0xff] }
 0x137   :  { %v1301_v27 = vadd.f32 %v6161_v51, %v1045_v40  ;;  %v1046_v24 = vmul.f32 %v4059_v3, %v4806_v49  ;;  %3103 = vmatprep.subr.bf16.mxu0 %v755_v25  ;;  %3125 = vmatprep.subr.bf16.mxu1 %v771_v7  ;;  %v1270_v5 = vadd.f32 %v6162_v10, %v1014_v60  ;;  %v4865_v25 = vld [vmem:[#allocation3 + $0x208] sm:$0xff]  ;;  %v4867_v7 = vld [vmem:[#allocation3 + $0x380] sm:$0xff]  ;;  %v6169_v40 = vld [vmem:[#allocation77_spill] sm:$0xff] }
 0x138   :  { %v1271_v30 = vadd.f32 %v6163_v6, %v1015_v53  ;;  %v1047_v48 = vmul.f32 %v4059_v3, %v4808_v36  ;;  %1428 = vst [vmem:[#allocation19 + $0x1d0] sm:$0xff] %v1300_v13  ;;  %v765_v49 = vpack.c.bf16 %v6166_v56, %v6165_v50  ;;  %v758_v23 = vpack.c.bf16 %v4816_v34, %v4814_v20  ;;  %v4869_v36 = vld [vmem:[#allocation3 + $0x388] sm:$0xff]  ;;  %v6178_v61 = vld [vmem:[#allocation89_spill] sm:$0xff] }
 0x139   :  { %1429 = vst [vmem:[#allocation19 + $0x1d8] sm:$0xff] %v1301_v27  ;;  %v1302_v59 = vadd.f32 %v6164_v44, %v1046_v24  ;;  %v1016_v21 = vmul.f32 %v4059_v3, %v4814_v20  ;;  %1398 = vst [vmem:[#allocation19 + $0xe0] sm:$0xff] %v1270_v5  ;;  %v1017_v29 = vmul.f32 %v4059_v3, %v4816_v34  ;;  %v6168_v41 = vld [vmem:[#allocation75_spill] sm:$0xff]  ;;  %3104 = vmatpush3.bf16.msra.mxu0 %v747_v19  ;;  %v6170_v8 = vld [vmem:[#allocation76_spill] sm:$0xff] }
 0x13a   :  { %1399 = vst [vmem:[#allocation19 + $0xe8] sm:$0xff] %v1271_v30  ;;  %v1303_v28 = vadd.f32 %v6167_v2, %v1047_v48  ;;  %v750_v60 = vpack.c.bf16 %v6169_v40, %v6168_v41  ;;  %v774_v53 = vpack.c.bf16 %v4828_v35, %v4826_v15  ;;  %3126 = vmatpush3.bf16.msra.mxu1 %v763_v33  ;;  %v6172_v19 = vld [vmem:[#allocation79_spill] sm:$0xff]  ;;  %v6174_v5 = vld [vmem:[#allocation81_spill] sm:$0xff]  ;;  %v6175_v30 = vld [vmem:[#allocation82_spill] sm:$0xff] }
 0x13b   :  { %1430 = vst [vmem:[#allocation19 + $0x1e0] sm:$0xff] %v1302_v59  ;;  %v1272_v13 = vadd.f32 %v6170_v8, %v1016_v21  ;;  %v1048_v51 = vmul.f32 %v4059_v3, %v4826_v15  ;;  %v1049_v27 = vmul.f32 %v4059_v3, %v4828_v35  ;;  %3105 = vmatprep.subr.bf16.mxu0 %v756_v57  ;;  %v4897_v24 = vld [vmem:[#allocation3 + $0x300] sm:$0xff]  ;;  %v4899_v10 = vld [vmem:[#allocation3 + $0x308] sm:$0xff]  ;;  %v4909_v48 = vld [vmem:[#allocation3 + $0x298] sm:$0xff] }
 0x13c   :  { %3127 = vmatprep.subr.bf16.mxu1 %v772_v54  ;;  %1431 = vst [vmem:[#allocation19 + $0x1e8] sm:$0xff] %v1303_v28  ;;  %v1273_v47 = vadd.f32 %v6171_v46, %v1017_v29  ;;  %v766_v11 = vpack.c.bf16 %v6173_v55, %v6172_v19  ;;  %v783_v33 = vpack.c.bf16 %v4847_v38, %v4845_v52  ;;  %v4907_v54 = vld [vmem:[#allocation3 + $0x290] sm:$0xff]  ;;  %v6177_v8 = vld [vmem:[#allocation86_spill] sm:$0xff]  ;;  %v6180_v46 = vld [vmem:[#allocation87_spill] sm:$0xff] }
 0x13d   :  { %1400 = vst [vmem:[#allocation19 + $0xf0] sm:$0xff] %v1272_v13  ;;  %v1304_v6 = vadd.f32 %v6174_v5, %v1048_v51  ;;  %v1305_v58 = vadd.f32 %v6175_v30, %v1049_v27  ;;  %v1066_v1 = vmul.f32 %v4059_v3, %v4845_v52  ;;  %v1067_v57 = vmul.f32 %v4059_v3, %v4847_v38  ;;  %v6176_v28 = vld [vmem:[#allocation85_spill] sm:$0xff]  ;;  %v4990_v35 = vld [vmem:[#allocation3 + $0x2a0] sm:$0xff] }
 0x13e   :  { %1401 = vst [vmem:[#allocation19 + $0xf8] sm:$0xff] %v1273_v47  ;;  %v775_v44 = vpack.c.bf16 %v4865_v25, %v4863_v22  ;;  %v1050_v59 = vmul.f32 %v4059_v3, %v4863_v22  ;;  %v1051_v21 = vmul.f32 %v4059_v3, %v4865_v25  ;;  %v799_v2 = vpack.c.bf16 %v4869_v36, %v4867_v7  ;;  %v4936_v42 = vld [vmem:[#allocation3 + $0x210] sm:$0xff]  ;;  %v6190_v41 = vld [vmem:[#allocation99_spill] sm:$0xff]  ;;  %v6197_v22 = vld [vmem:[#allocation106_spill] sm:$0xff] }
 0x13f   :  { %3106 = vmatpush3.bf16.msra.mxu0 %v748_v62  ;;  %3128 = vmatpush3.bf16.msra.mxu1 %v764_v14  ;;  %1432 = vst [vmem:[#allocation19 + $0x1f0] sm:$0xff] %v1304_v6  ;;  %1433 = vst [vmem:[#allocation19 + $0x1f8] sm:$0xff] %v1305_v58  ;;  %v1322_v29 = vadd.f32 %v6176_v28, %v1066_v1  ;;  %v1323_v13 = vadd.f32 %v6177_v8, %v1067_v57  ;;  %v6179_v62 = vld [vmem:[#allocation90_spill] sm:$0xff]  ;;  %v4954_v1 = vld [vmem:[#allocation3 + $0x390] sm:$0xff] }
 0x140   :  { %v1098_v51 = vmul.f32 %v4059_v3, %v4867_v7  ;;  %3107 = vmatprep.subr.bf16.mxu0 %v757_v31  ;;  %3129 = vmatprep.subr.bf16.mxu1 %v773_v12  ;;  %v1306_v16 = vadd.f32 %v6178_v61, %v1050_v59  ;;  %v1307_v27 = vadd.f32 %v6179_v62, %v1051_v21  ;;  %v4938_v14 = vld [vmem:[#allocation3 + $0x218] sm:$0xff]  ;;  %v6181_v12 = vld [vmem:[#allocation88_spill] sm:$0xff]  ;;  %v6182_v59 = vld [vmem:[#allocation91_spill] sm:$0xff] }
 0x141   :  { %v1099_v26 = vmul.f32 %v4059_v3, %v4869_v36  ;;  %1450 = vst [vmem:[#allocation19 + $0x280] sm:$0xff] %v1322_v29  ;;  %1451 = vst [vmem:[#allocation19 + $0x288] sm:$0xff] %v1323_v13  ;;  %v791_v0 = vpack.c.bf16 %v4899_v10, %v4897_v24  ;;  %v1082_v9 = vmul.f32 %v4059_v3, %v4897_v24  ;;  %v4956_v57 = vld [vmem:[#allocation3 + $0x398] sm:$0xff]  ;;  %v6183_v28 = vld [vmem:[#allocation92_spill] sm:$0xff] }
 0x142   :  { %v1354_v47 = vadd.f32 %v6180_v46, %v1098_v51  ;;  %v1083_v31 = vmul.f32 %v4059_v3, %v4899_v10  ;;  %1434 = vst [vmem:[#allocation19 + $0x200] sm:$0xff] %v1306_v16  ;;  %1435 = vst [vmem:[#allocation19 + $0x208] sm:$0xff] %v1307_v27  ;;  %v784_v6 = vpack.c.bf16 %v4909_v48, %v4907_v54  ;;  %v4968_v13 = vld [vmem:[#allocation3 + $0x310] sm:$0xff]  ;;  %v4970_v51 = vld [vmem:[#allocation3 + $0x318] sm:$0xff] }
 0x143   :  { %v1355_v5 = vadd.f32 %v6181_v12, %v1099_v26  ;;  %v1068_v30 = vmul.f32 %v4059_v3, %v4907_v54  ;;  %v1069_v58 = vmul.f32 %v4059_v3, %v4909_v48  ;;  %3108 = vmatpush3.bf16.msra.mxu0 %v749_v32  ;;  %3130 = vmatpush3.bf16.msra.mxu1 %v765_v49  ;;  %v6184_v45 = vld [vmem:[#allocation93_spill] sm:$0xff]  ;;  %v6185_v32 = vld [vmem:[#allocation94_spill] sm:$0xff]  ;;  %v5003_v46 = vld [vmem:[#allocation3 + $0x228] sm:$0xff] }
 0x144   :  { %1482 = vst [vmem:[#allocation19 + $0x380] sm:$0xff] %v1354_v47  ;;  %v1338_v21 = vadd.f32 %v6182_v59, %v1082_v9  ;;  %v1339_v29 = vadd.f32 %v6183_v28, %v1083_v31  ;;  %v776_v8 = vpack.c.bf16 %v4938_v14, %v4936_v42  ;;  %3109 = vmatprep.subr.bf16.mxu0 %v758_v23  ;;  %v4992_v23 = vld [vmem:[#allocation3 + $0x2a8] sm:$0xff]  ;;  %v5001_v26 = vld [vmem:[#allocation3 + $0x220] sm:$0xff] }
 0x145   :  { %3131 = vmatprep.subr.bf16.mxu1 %v774_v53  ;;  %1483 = vst [vmem:[#allocation19 + $0x388] sm:$0xff] %v1355_v5  ;;  %v1324_v17 = vadd.f32 %v6184_v45, %v1068_v30  ;;  %v1325_v50 = vadd.f32 %v6185_v32, %v1069_v58  ;;  %v1052_v56 = vmul.f32 %v4059_v3, %v4936_v42  ;;  %v6186_v53 = vld [vmem:[#allocation97_spill] sm:$0xff]  ;;  %v6187_v47 = vld [vmem:[#allocation98_spill] sm:$0xff]  ;;  %v6188_v31 = vld [vmem:[#allocation95_spill] sm:$0xff] }
 0x146   :  { %1466 = vst [vmem:[#allocation19 + $0x300] sm:$0xff] %v1338_v21  ;;  %1467 = vst [vmem:[#allocation19 + $0x308] sm:$0xff] %v1339_v29  ;;  %v1053_v49 = vmul.f32 %v4059_v3, %v4938_v14  ;;  %v800_v20 = vpack.c.bf16 %v4956_v57, %v4954_v1  ;;  %v1100_v34 = vmul.f32 %v4059_v3, %v4954_v1  ;;  %v6189_v5 = vld [vmem:[#allocation96_spill] sm:$0xff]  ;;  %v5014_v58 = vld [vmem:[#allocation3 + $0x3a0] sm:$0xff] }
 0x147   :  { %v1101_v15 = vmul.f32 %v4059_v3, %v4956_v57  ;;  %1452 = vst [vmem:[#allocation19 + $0x290] sm:$0xff] %v1324_v17  ;;  %1453 = vst [vmem:[#allocation19 + $0x298] sm:$0xff] %v1325_v50  ;;  %v1308_v61 = vadd.f32 %v6186_v53, %v1052_v56  ;;  %v792_v16 = vpack.c.bf16 %v4970_v51, %v4968_v13  ;;  %3110 = vmatpush3.bf16.msra.mxu0 %v750_v60  ;;  %v732_v1 = vld [vmem:[#allocation3 + $0x3a8] sm:$0xff]  ;;  %v5034_v36 = vld [vmem:[#allocation3 + $0x320] sm:$0xff] }
 0x148   :  { %v1084_v62 = vmul.f32 %v4059_v3, %v4968_v13  ;;  %v1085_v27 = vmul.f32 %v4059_v3, %v4970_v51  ;;  %3132 = vmatpush3.bf16.msra.mxu1 %v766_v11  ;;  %v1309_v9 = vadd.f32 %v6187_v47, %v1053_v49  ;;  %v1356_v12 = vadd.f32 %v6188_v31, %v1100_v34  ;;  %v6191_v60 = vld [vmem:[#allocation100_spill] sm:$0xff]  ;;  %v5045_v45 = vld [vmem:[#allocation3 + $0x2b8] sm:$0xff]  ;;  %v6198_v10 = vld [vmem:[#allocation103_spill] sm:$0xff] }
 0x149   :  { %v1357_v30 = vadd.f32 %v6189_v5, %v1101_v15  ;;  %3139 = vmatprep.subr.bf16.mxu0 %v783_v33  ;;  %3161 = vmatprep.subr.bf16.mxu1 %v799_v2  ;;  %1436 = vst [vmem:[#allocation19 + $0x210] sm:$0xff] %v1308_v61  ;;  %v785_v55 = vpack.c.bf16 %v4992_v23, %v4990_v35  ;;  %v6192_v33 = vld [vmem:[#allocation83_spill] sm:$0xff]  ;;  %v6193_v2 = vld [vmem:[#allocation84_spill] sm:$0xff]  ;;  %v6194_v17 = vld [vmem:[#allocation101_spill] sm:$0xff] }
 0x14a   :  { %v1340_v40 = vadd.f32 %v6190_v41, %v1084_v62  ;;  %v1341_v19 = vadd.f32 %v6191_v60, %v1085_v27  ;;  %1437 = vst [vmem:[#allocation19 + $0x218] sm:$0xff] %v1309_v9  ;;  %1484 = vst [vmem:[#allocation19 + $0x390] sm:$0xff] %v1356_v12  ;;  %v1070_v11 = vmul.f32 %v4059_v3, %v4990_v35  ;;  %847 = vmatmul.mubr.bf16.vlgmr.msra.gmra.mrb[8].mxu0 %v6192_v33  ;;  %v716_v28 = vld [vmem:[#allocation3 + $0x328] sm:$0xff]  ;;  %v5043_v29 = vld [vmem:[#allocation3 + $0x2b0] sm:$0xff] }
 0x14b   :  { %1485 = vst [vmem:[#allocation19 + $0x398] sm:$0xff] %v1357_v30  ;;  %v1071_v52 = vmul.f32 %v4059_v3, %v4992_v23  ;;  %v777_v38 = vpack.c.bf16 %v5003_v46, %v5001_v26  ;;  %v1054_v7 = vmul.f32 %v4059_v3, %v5001_v26  ;;  %888 = vmatmul.mubr.bf16.vlgmr.msra.gmra.mrb[8].mxu1 %v6193_v2  ;;  %v6195_v50 = vld [vmem:[#allocation102_spill] sm:$0xff]  ;;  %v6196_v49 = vld [vmem:[#allocation105_spill] sm:$0xff]  ;;  %v6199_v48 = vld [vmem:[#allocation104_spill] sm:$0xff] }
 0x14c   :  { %1468 = vst [vmem:[#allocation19 + $0x310] sm:$0xff] %v1340_v40  ;;  %1469 = vst [vmem:[#allocation19 + $0x318] sm:$0xff] %v1341_v19  ;;  %v1055_v57 = vmul.f32 %v4059_v3, %v5003_v46  ;;  %v801_v59 = vpack.c.bf16 %v732_v1, %v5014_v58  ;;  %v1102_v21 = vmul.f32 %v4059_v3, %v5014_v58  ;;  %3140 = vmatpush3.bf16.msra.mxu0 %v775_v44  ;;  %v5056_v15 = vld [vmem:[#allocation3 + $0x230] sm:$0xff]  ;;  %v5058_v35 = vld [vmem:[#allocation3 + $0x238] sm:$0xff] }
 0x14d   :  { %3162 = vmatpush3.bf16.msra.mxu1 %v791_v0  ;;  %v1326_v32 = vadd.f32 %v6194_v17, %v1070_v11  ;;  %v1327_v56 = vadd.f32 %v6195_v50, %v1071_v52  ;;  %v1310_v34 = vadd.f32 %v6196_v49, %v1054_v7  ;;  %3141 = vmatprep.subr.bf16.mxu0 %v784_v6  ;;  %v733_v27 = vld [vmem:[#allocation3 + $0x3b0] sm:$0xff]  ;;  %v734_v47 = vld [vmem:[#allocation3 + $0x3b8] sm:$0xff]  ;;  %v703_v13 = vld [vmem:[#allocation3 + $0x2c0] sm:$0xff] }
 0x14e   :  { %3163 = vmatprep.subr.bf16.mxu1 %v800_v20  ;;  %v1311_v25 = vadd.f32 %v6197_v22, %v1055_v57  ;;  %v1103_v24 = vmul.f32 %v4059_v3, %v732_v1  ;;  %v1358_v44 = vadd.f32 %v6198_v10, %v1102_v21  ;;  %v793_v0 = vpack.c.bf16 %v716_v28, %v5034_v36  ;;  %v6201_v31 = vld [vmem:[#allocation108_spill] sm:$0xff]  ;;  %v718_v58 = vld [vmem:[#allocation3 + $0x338] sm:$0xff]  ;;  %v687_v33 = vld [vmem:[#allocation3 + $0x240] sm:$0xff] }
 0x14f   :  { %1454 = vst [vmem:[#allocation19 + $0x2a0] sm:$0xff] %v1326_v32  ;;  %1455 = vst [vmem:[#allocation19 + $0x2a8] sm:$0xff] %v1327_v56  ;;  %v1086_v23 = vmul.f32 %v4059_v3, %v5034_v36  ;;  %v1087_v53 = vmul.f32 %v4059_v3, %v716_v28  ;;  %v786_v54 = vpack.c.bf16 %v5045_v45, %v5043_v29  ;;  %928 = vmatprep.mubr.bf16.mxu0 %v4669_v37  ;;  %v6200_v37 = vld [vmem:[#allocation107_spill] sm:$0xff]  ;;  %v717_v30 = vld [vmem:[#allocation3 + $0x330] sm:$0xff] }
 0x150   :  { %1438 = vst [vmem:[#allocation19 + $0x220] sm:$0xff] %v1310_v34  ;;  %1439 = vst [vmem:[#allocation19 + $0x228] sm:$0xff] %v1311_v25  ;;  %v1359_v6 = vadd.f32 %v6199_v48, %v1103_v24  ;;  %v1072_v20 = vmul.f32 %v4059_v3, %v5043_v29  ;;  %v1073_v61 = vmul.f32 %v4059_v3, %v5045_v45  ;;  %969 = vmatprep.mubr.bf16.mxu1 %v4671_v18  ;;  %v6202_v18 = vld [vmem:[#allocation109_spill] sm:$0xff]  ;;  %v6203_v42 = vld [vmem:[#allocation110_spill] sm:$0xff] }
 0x151   :  { %1486 = vst [vmem:[#allocation19 + $0x3a0] sm:$0xff] %v1358_v44  ;;  %v778_v62 = vpack.c.bf16 %v5058_v35, %v5056_v15  ;;  %3142 = vmatpush3.bf16.msra.mxu0 %v776_v8  ;;  %3164 = vmatpush3.bf16.msra.mxu1 %v792_v16  ;;  %v1342_v9 = vadd.f32 %v6200_v37, %v1086_v23  ;;  %v704_v51 = vld [vmem:[#allocation3 + $0x2c8] sm:$0xff]  ;;  %v6204_v16 = vld [vmem:[#allocation113_spill] sm:$0xff]  ;;  %v735_v45 = vld [vmem:[#allocation3 + $0x3c0] sm:$0xff] }
 0x152   :  { %v1343_v12 = vadd.f32 %v6201_v31, %v1087_v53  ;;  %v1056_v5 = vmul.f32 %v4059_v3, %v5056_v15  ;;  %3143 = vmatprep.subr.bf16.mxu0 %v785_v55  ;;  %3165 = vmatprep.subr.bf16.mxu1 %v801_v59  ;;  %1487 = vst [vmem:[#allocation19 + $0x3a8] sm:$0xff] %v1359_v6  ;;  %v6205_v55 = vld [vmem:[#allocation114_spill] sm:$0xff]  ;;  %v688_v2 = vld [vmem:[#allocation3 + $0x248] sm:$0xff]  ;;  %v6210_v25 = vld [vmem:[#allocation117_spill] sm:$0xff] }
 0x153   :  { %v1328_v1 = vadd.f32 %v6202_v18, %v1072_v20  ;;  %v1329_v14 = vadd.f32 %v6203_v42, %v1073_v61  ;;  %v1057_v8 = vmul.f32 %v4059_v3, %v5058_v35  ;;  %1470 = vst [vmem:[#allocation19 + $0x320] sm:$0xff] %v1342_v9  ;;  %v802_v40 = vpack.c.bf16 %v734_v47, %v733_v27  ;;  %v6206_v57 = vld [vmem:[#allocation111_spill] sm:$0xff]  ;;  %v6207_v21 = vld [vmem:[#allocation112_spill] sm:$0xff]  ;;  %v706_v53 = vld [vmem:[#allocation3 + $0x2d8] sm:$0xff] }
 0x154   :  { %1471 = vst [vmem:[#allocation19 + $0x328] sm:$0xff] %v1343_v12  ;;  %v1312_v41 = vadd.f32 %v6204_v16, %v1056_v5  ;;  %v1104_v60 = vmul.f32 %v4059_v3, %v733_v27  ;;  %v1105_v19 = vmul.f32 %v4059_v3, %v734_v47  ;;  %v794_v52 = vpack.c.bf16 %v718_v58, %v717_v30  ;;  %v736_v17 = vld [vmem:[#allocation3 + $0x3c8] sm:$0xff]  ;;  %v719_v35 = vld [vmem:[#allocation3 + $0x340] sm:$0xff]  ;;  %v705_v23 = vld [vmem:[#allocation3 + $0x2d0] sm:$0xff] }
 0x155   :  { %1456 = vst [vmem:[#allocation19 + $0x2b0] sm:$0xff] %v1328_v1  ;;  %1457 = vst [vmem:[#allocation19 + $0x2b8] sm:$0xff] %v1329_v14  ;;  %v1313_v11 = vadd.f32 %v6205_v55, %v1057_v8  ;;  %v1088_v7 = vmul.f32 %v4059_v3, %v717_v30  ;;  %v1089_v36 = vmul.f32 %v4059_v3, %v718_v58  ;;  %3144 = vmatpush3.bf16.msra.mxu0 %v777_v38  ;;  %v6208_v32 = vld [vmem:[#allocation115_spill] sm:$0xff]  ;;  %v6209_v56 = vld [vmem:[#allocation116_spill] sm:$0xff] }
 0x156   :  { %3166 = vmatpush3.bf16.msra.mxu1 %v793_v0  ;;  %1440 = vst [vmem:[#allocation19 + $0x230] sm:$0xff] %v1312_v41  ;;  %v1360_v59 = vadd.f32 %v6206_v57, %v1104_v60  ;;  %v1361_v28 = vadd.f32 %v6207_v21, %v1105_v19  ;;  %v787_v29 = vpack.c.bf16 %v704_v51, %v703_v13  ;;  %v720_v22 = vld [vmem:[#allocation3 + $0x348] sm:$0xff]  ;;  %v6212_v6 = vld [vmem:[#allocation121_spill] sm:$0xff]  ;;  %v6213_v61 = vld [vmem:[#allocation122_spill] sm:$0xff] }
 0x157   :  { %3145 = vmatprep.subr.bf16.mxu0 %v786_v54  ;;  %1441 = vst [vmem:[#allocation19 + $0x238] sm:$0xff] %v1313_v11  ;;  %3167 = vmatprep.subr.bf16.mxu1 %v802_v40  ;;  %v1344_v50 = vadd.f32 %v6208_v32, %v1088_v7  ;;  %v1345_v49 = vadd.f32 %v6209_v56, %v1089_v36  ;;  %v6211_v54 = vld [vmem:[#allocation118_spill] sm:$0xff]  ;;  %v689_v47 = vld [vmem:[#allocation3 + $0x250] sm:$0xff]  ;;  %v6214_v9 = vld [vmem:[#allocation119_spill] sm:$0xff] }
 0x158   :  { %v1074_v34 = vmul.f32 %v4059_v3, %v703_v13  ;;  %1488 = vst [vmem:[#allocation19 + $0x3b0] sm:$0xff] %v1360_v59  ;;  %1489 = vst [vmem:[#allocation19 + $0x3b8] sm:$0xff] %v1361_v28  ;;  %v1075_v26 = vmul.f32 %v4059_v3, %v704_v51  ;;  %v779_v46 = vpack.c.bf16 %v688_v2, %v687_v33  ;;  %v690_v37 = vld [vmem:[#allocation3 + $0x258] sm:$0xff]  ;;  %v6215_v12 = vld [vmem:[#allocation120_spill] sm:$0xff] }
 0x159   :  { %v1058_v38 = vmul.f32 %v4059_v3, %v687_v33  ;;  %v1059_v15 = vmul.f32 %v4059_v3, %v688_v2  ;;  %1472 = vst [vmem:[#allocation19 + $0x330] sm:$0xff] %v1344_v50  ;;  %1473 = vst [vmem:[#allocation19 + $0x338] sm:$0xff] %v1345_v49  ;;  %v803_v10 = vpack.c.bf16 %v736_v17, %v735_v45  ;;  %3146 = vmatpush3.bf16.msra.mxu0 %v778_v62  ;;  %v737_v42 = vld [vmem:[#allocation3 + $0x3d0] sm:$0xff]  ;;  %v738_v14 = vld [vmem:[#allocation3 + $0x3d8] sm:$0xff] }
 0x15a   :  { %v1330_v24 = vadd.f32 %v6210_v25, %v1074_v34  ;;  %v1106_v44 = vmul.f32 %v4059_v3, %v735_v45  ;;  %v1107_v0 = vmul.f32 %v4059_v3, %v736_v17  ;;  %3168 = vmatpush3.bf16.msra.mxu1 %v794_v52  ;;  %v1331_v48 = vadd.f32 %v6211_v54, %v1075_v26  ;;  %v721_v41 = vld [vmem:[#allocation3 + $0x350] sm:$0xff]  ;;  %v722_v40 = vld [vmem:[#allocation3 + $0x358] sm:$0xff]  ;;  %v6216_v60 = vld [vmem:[#allocation123_spill] sm:$0xff] }
 0x15b   :  { %v1314_v20 = vadd.f32 %v6212_v6, %v1058_v38  ;;  %v1315_v27 = vadd.f32 %v6213_v61, %v1059_v15  ;;  %3147 = vmatprep.subr.bf16.mxu0 %v787_v29  ;;  %3169 = vmatprep.subr.bf16.mxu1 %v803_v10  ;;  %v795_v30 = vpack.c.bf16 %v720_v22, %v719_v35  ;;  %v6217_v55 = vld [vmem:[#allocation124_spill] sm:$0xff]  ;;  %v6218_v52 = vld [vmem:[#allocation125_spill] sm:$0xff]  ;;  %v707_v36 = vld [vmem:[#allocation3 + $0x2e0] sm:$0xff] }
 0x15c   :  { %1458 = vst [vmem:[#allocation19 + $0x2c0] sm:$0xff] %v1330_v24  ;;  %v1362_v31 = vadd.f32 %v6214_v9, %v1106_v44  ;;  %v1363_v5 = vadd.f32 %v6215_v12, %v1107_v0  ;;  %1459 = vst [vmem:[#allocation19 + $0x2c8] sm:$0xff] %v1331_v48  ;;  %v1090_v62 = vmul.f32 %v4059_v3, %v719_v35  ;;  %v708_v33 = vld [vmem:[#allocation3 + $0x2e8] sm:$0xff]  ;;  %v6219_v2 = vld [vmem:[#allocation126_spill] sm:$0xff] }
 0x15d   :  { %1442 = vst [vmem:[#allocation19 + $0x240] sm:$0xff] %v1314_v20  ;;  %1443 = vst [vmem:[#allocation19 + $0x248] sm:$0xff] %v1315_v27  ;;  %v1091_v58 = vmul.f32 %v4059_v3, %v720_v22  ;;  %v788_v18 = vpack.c.bf16 %v706_v53, %v705_v23  ;;  %v1076_v1 = vmul.f32 %v4059_v3, %v705_v23  ;;  %3148 = vmatpush3.bf16.msra.mxu0 %v779_v46  ;;  %v6220_v59 = vld [vmem:[#allocation129_spill] sm:$0xff]  ;;  %v6221_v28 = vld [vmem:[#allocation130_spill] sm:$0xff] }
 0x15e   :  { %1490 = vst [vmem:[#allocation19 + $0x3c0] sm:$0xff] %v1362_v31  ;;  %1491 = vst [vmem:[#allocation19 + $0x3c8] sm:$0xff] %v1363_v5  ;;  %v1077_v8 = vmul.f32 %v4059_v3, %v706_v53  ;;  %v780_v13 = vpack.c.bf16 %v690_v37, %v689_v47  ;;  %v1060_v51 = vmul.f32 %v4059_v3, %v689_v47  ;;  %3170 = vmatpush3.bf16.msra.mxu1 %v795_v30  ;;  %v691_v49 = vld [vmem:[#allocation3 + $0x260] sm:$0xff]  ;;  %v692_v34 = vld [vmem:[#allocation3 + $0x268] sm:$0xff] }
 0x15f   :  { %v1061_v16 = vmul.f32 %v4059_v3, %v690_v37  ;;  %v1346_v19 = vadd.f32 %v6216_v60, %v1090_v62  ;;  %v1347_v11 = vadd.f32 %v6217_v55, %v1091_v58  ;;  %v1332_v7 = vadd.f32 %v6218_v52, %v1076_v1  ;;  %3149 = vmatprep.subr.bf16.mxu0 %v788_v18  ;;  %v739_v35 = vld [vmem:[#allocation3 + $0x3e0] sm:$0xff]  ;;  %v740_v22 = vld [vmem:[#allocation3 + $0x3e8] sm:$0xff]  ;;  %v6226_v20 = vld [vmem:[#allocation133_spill] sm:$0xff] }
 0x160   :  { %v1333_v57 = vadd.f32 %v6219_v2, %v1077_v8  ;;  %v1316_v21 = vadd.f32 %v6220_v59, %v1060_v51  ;;  %v804_v45 = vpack.c.bf16 %v738_v14, %v737_v42  ;;  %v1108_v17 = vmul.f32 %v4059_v3, %v737_v42  ;;  %v6222_v25 = vld [vmem:[#allocation127_spill] sm:$0xff]  ;;  %v6223_v10 = vld [vmem:[#allocation128_spill] sm:$0xff]  ;;  %v6227_v27 = vld [vmem:[#allocation134_spill] sm:$0xff] }
 0x161   :  { %v1317_v29 = vadd.f32 %v6221_v28, %v1061_v16  ;;  %1474 = vst [vmem:[#allocation19 + $0x340] sm:$0xff] %v1346_v19  ;;  %1475 = vst [vmem:[#allocation19 + $0x348] sm:$0xff] %v1347_v11  ;;  %v1109_v32 = vmul.f32 %v4059_v3, %v738_v14  ;;  %v796_v50 = vpack.c.bf16 %v722_v40, %v721_v41  ;;  %3150 = vmatpush3.bf16.msra.mxu0 %v780_v13  ;;  %v6224_v0 = vld [vmem:[#allocation131_spill] sm:$0xff]  ;;  %v6225_v48 = vld [vmem:[#allocation132_spill] sm:$0xff] }
 0x162   :  { %1460 = vst [vmem:[#allocation19 + $0x2d0] sm:$0xff] %v1332_v7  ;;  %v1092_v56 = vmul.f32 %v4059_v3, %v721_v41  ;;  %1461 = vst [vmem:[#allocation19 + $0x2d8] sm:$0xff] %v1333_v57  ;;  %3171 = vmatprep.subr.bf16.mxu1 %v804_v45  ;;  %v1093_v26 = vmul.f32 %v4059_v3, %v722_v40  ;;  %v789_v46 = vpack.c.bf16 %v708_v33, %v707_v36  ;;  %v723_v53 = vld [vmem:[#allocation3 + $0x360] sm:$0xff]  ;;  %v724_v54 = vld [vmem:[#allocation3 + $0x368] sm:$0xff] }
 0x163   :  { %1444 = vst [vmem:[#allocation19 + $0x250] sm:$0xff] %v1316_v21  ;;  %1445 = vst [vmem:[#allocation19 + $0x258] sm:$0xff] %v1317_v29  ;;  %v1078_v38 = vmul.f32 %v4059_v3, %v707_v36  ;;  %v1079_v15 = vmul.f32 %v4059_v3, %v708_v33  ;;  %v1364_v24 = vadd.f32 %v6222_v25, %v1108_v17  ;;  %3172 = vmatpush3.bf16.msra.mxu1 %v796_v50  ;;  %v709_v30 = vld [vmem:[#allocation3 + $0x2f0] sm:$0xff]  ;;  %v710_v62 = vld [vmem:[#allocation3 + $0x2f8] sm:$0xff] }
 0x164   :  { %v1365_v44 = vadd.f32 %v6223_v10, %v1109_v32  ;;  %v1348_v23 = vadd.f32 %v6224_v0, %v1092_v56  ;;  %v1349_v6 = vadd.f32 %v6225_v48, %v1093_v26  ;;  %3151 = vmatprep.subr.bf16.mxu0 %v789_v46  ;;  %v781_v37 = vpack.c.bf16 %v692_v34, %v691_v49  ;;  %v693_v14 = vld [vmem:[#allocation3 + $0x270] sm:$0xff]  ;;  %v694_v8 = vld [vmem:[#allocation3 + $0x278] sm:$0xff]  ;;  %v6230_v40 = vld [vmem:[#allocation135_spill] sm:$0xff] }
 0x165   :  { %v1334_v61 = vadd.f32 %v6226_v20, %v1078_v38  ;;  %v1335_v47 = vadd.f32 %v6227_v27, %v1079_v15  ;;  %1492 = vst [vmem:[#allocation19 + $0x3d0] sm:$0xff] %v1364_v24  ;;  %v1062_v9 = vmul.f32 %v4059_v3, %v691_v49  ;;  %v1063_v31 = vmul.f32 %v4059_v3, %v692_v34  ;;  %v6228_v13 = vld [vmem:[#allocation137_spill] sm:$0xff]  ;;  %v6229_v16 = vld [vmem:[#allocation138_spill] sm:$0xff]  ;;  %v6231_v11 = vld [vmem:[#allocation136_spill] sm:$0xff] }
 0x166   :  { %1493 = vst [vmem:[#allocation19 + $0x3d8] sm:$0xff] %v1365_v44  ;;  %1476 = vst [vmem:[#allocation19 + $0x350] sm:$0xff] %v1348_v23  ;;  %v805_v12 = vpack.c.bf16 %v740_v22, %v739_v35  ;;  %v1110_v5 = vmul.f32 %v4059_v3, %v739_v35  ;;  %v1111_v58 = vmul.f32 %v4059_v3, %v740_v22  ;;  %3152 = vmatpush3.bf16.msra.mxu0 %v781_v37  ;;  %v741_v19 = vld [vmem:[#allocation3 + $0x3f0] sm:$0xff]  ;;  %v742_v55 = vld [vmem:[#allocation3 + $0x3f8] sm:$0xff] }
 0x167   :  { %1477 = vst [vmem:[#allocation19 + $0x358] sm:$0xff] %v1349_v6  ;;  %1462 = vst [vmem:[#allocation19 + $0x2e0] sm:$0xff] %v1334_v61  ;;  %v797_v18 = vpack.c.bf16 %v724_v54, %v723_v53  ;;  %v1094_v1 = vmul.f32 %v4059_v3, %v723_v53  ;;  %v1095_v42 = vmul.f32 %v4059_v3, %v724_v54  ;;  %v6232_v7 = vld [vmem:[#allocation139_spill] sm:$0xff]  ;;  %v6233_v33 = vld [vmem:[#allocation140_spill] sm:$0xff] }
 0x168   :  { %1463 = vst [vmem:[#allocation19 + $0x2e8] sm:$0xff] %v1335_v47  ;;  %v1318_v51 = vadd.f32 %v6228_v13, %v1062_v9  ;;  %v1319_v41 = vadd.f32 %v6229_v16, %v1063_v31  ;;  %3173 = vmatprep.subr.bf16.mxu1 %v805_v12  ;;  %v1366_v60 = vadd.f32 %v6230_v40, %v1110_v5  ;;  %v725_v59 = vld [vmem:[#allocation3 + $0x370] sm:$0xff]  ;;  %v726_v21 = vld [vmem:[#allocation3 + $0x378] sm:$0xff]  ;;  %v5160_v32 = vld [vmem:[%s3865_s21 + $0x8] sm:$0xff] }
 0x169   :  { %v1367_v52 = vadd.f32 %v6231_v11, %v1111_v58  ;;  %3174 = vmatpush3.bf16.msra.mxu1 %v797_v18  ;;  %v1350_v36 = vadd.f32 %v6232_v7, %v1094_v1  ;;  %v1351_v2 = vadd.f32 %v6233_v33, %v1095_v42  ;;  %v790_v57 = vpack.c.bf16 %v710_v62, %v709_v30  ;;  %v5163_v50 = vld [vmem:[%s3865_s21 + $0x18] sm:$0xff]  ;;  %v5166_v56 = vld [vmem:[%s3865_s21] sm:$0xff]  ;;  %v5172_v38 = vld [vmem:[%s3865_s21 + $0x10] sm:$0xff] }
 0x16a   :  { %1446 = vst [vmem:[#allocation19 + $0x260] sm:$0xff] %v1318_v51  ;;  %1447 = vst [vmem:[#allocation19 + $0x268] sm:$0xff] %v1319_v41  ;;  %v1080_v28 = vmul.f32 %v4059_v3, %v709_v30  ;;  %v1081_v29 = vmul.f32 %v4059_v3, %v710_v62  ;;  %v782_v45 = vpack.c.bf16 %v694_v8, %v693_v14  ;;  %v5175_v15 = vld [vmem:[%s3865_s21 + $0x28] sm:$0xff]  ;;  %v5178_v35 = vld [vmem:[%s3865_s21 + $0x38] sm:$0xff] }
 0x16b   :  { %1494 = vst [vmem:[#allocation19 + $0x3e0] sm:$0xff] %v1366_v60  ;;  %v1064_v17 = vmul.f32 %v4059_v3, %v693_v14  ;;  %1495 = vst [vmem:[#allocation19 + $0x3e8] sm:$0xff] %v1367_v52  ;;  %3153 = vmatprep.subr.bf16.mxu0 %v790_v57  ;;  %v1065_v49 = vmul.f32 %v4059_v3, %v694_v8  ;;  %v806_v34 = vpack.c.bf16 %v742_v55, %v741_v19  ;;  %v6234_v22 = vld [vmem:[#allocation141_spill] sm:$0xff]  ;;  %v6235_v24 = vld [vmem:[#allocation142_spill] sm:$0xff] }
 0x16c   :  { %1478 = vst [vmem:[#allocation19 + $0x360] sm:$0xff] %v1350_v36  ;;  %1479 = vst [vmem:[#allocation19 + $0x368] sm:$0xff] %v1351_v2  ;;  %v1112_v26 = vmul.f32 %v4059_v3, %v741_v19  ;;  %v1113_v46 = vmul.f32 %v4059_v3, %v742_v55  ;;  %v1336_v25 = vadd.f32 %v6234_v22, %v1080_v28  ;;  %3154 = vmatpush3.bf16.msra.mxu0 %v782_v45  ;;  %v6236_v44 = vld [vmem:[#allocation145_spill] sm:$0xff]  ;;  %v6237_v53 = vld [vmem:[#allocation146_spill] sm:$0xff] }
 0x16d   :  { %v1337_v10 = vadd.f32 %v6235_v24, %v1081_v29  ;;  %v1320_v0 = vadd.f32 %v6236_v44, %v1064_v17  ;;  %v798_v23 = vpack.c.bf16 %v726_v21, %v725_v59  ;;  %v1321_v54 = vadd.f32 %v6237_v53, %v1065_v49  ;;  %3175 = vmatprep.subr.bf16.mxu1 %v806_v34  ;;  %v6238_v48 = vld [vmem:[#allocation143_spill] sm:$0xff]  ;;  %v6239_v20 = vld [vmem:[#allocation144_spill] sm:$0xff]  ;;  %v5206_v18 = vld [vmem:[%s3865_s21 + $0x58] sm:$0xff] }
 0x16e   :  { %v1368_v6 = vadd.f32 %v6238_v48, %v1112_v26  ;;  %v1369_v61 = vadd.f32 %v6239_v20, %v1113_v46  ;;  %v1096_v27 = vmul.f32 %v4059_v3, %v725_v59  ;;  %1464 = vst [vmem:[#allocation19 + $0x2f0] sm:$0xff] %v1336_v25  ;;  %v1097_v47 = vmul.f32 %v4059_v3, %v726_v21  ;;  %v5195_v12 = vld [vmem:[%s3865_s21 + $0x20] sm:$0xff]  ;;  %v5198_v5 = vld [vmem:[%s3865_s21 + $0x30] sm:$0xff]  ;;  %v5203_v58 = vld [vmem:[%s3865_s21 + $0x48] sm:$0xff] }
 0x16f   :  { %1465 = vst [vmem:[#allocation19 + $0x2f8] sm:$0xff] %v1337_v10  ;;  %1448 = vst [vmem:[#allocation19 + $0x270] sm:$0xff] %v1320_v0  ;;  %3176 = vmatpush3.bf16.msra.mxu1 %v798_v23  ;;  %v1986_v37 = vpack.c.bf16 %v5163_v50, %v5160_v32  ;;  %v1985_v9 = vpack.c.bf16 %v5172_v38, %v5166_v56  ;;  %v1988_v31 = vpack.c.bf16 %v5178_v35, %v5175_v15  ;;  %v6240_v30 = vld [vmem:[#allocation147_spill] sm:$0xff]  ;;  %v5234_v41 = vld [vmem:[%s3865_s21 + $0x70] sm:$0xff]  ;;  %v6034_v44 = vmov 0  }
 0x170   :  { %1449 = vst [vmem:[#allocation19 + $0x278] sm:$0xff] %v1321_v54  ;;  %1496 = vst [vmem:[#allocation19 + $0x3f0] sm:$0xff] %v1368_v6  ;;  %v1352_v62 = vadd.f32 %v6240_v30, %v1096_v27  ;;  %929 = vmatmul.mubr.bf16.vlgmr.msra.gmra.mrb[12].mxu0 %v4673_v39  ;;  %v1353_v1 = vadd.f32 %v4667_v43, %v1097_v47  ;;  %v1987_v42 = vpack.c.bf16 %v5198_v5, %v5195_v12  ;;  %v5215_v14 = vld [vmem:[%s3865_s21 + $0x40] sm:$0xff]  ;;  %v5218_v43 = vld [vmem:[%s3865_s21 + $0x50] sm:$0xff] }
 0x171   :  { %1497 = vst [vmem:[#allocation19 + $0x3f8] sm:$0xff] %v1369_v61  ;;  %2012 = vmatprep.subr.bf16.mxu0 %v1986_v37  ;;  %v1990_v39 = vpack.c.bf16 %v5206_v18, %v5203_v58  ;;  %v5221_v8 = vld [vmem:[%s3865_s21 + $0x68] sm:$0xff]  ;;  %v1989_v13 = vpack.c.bf16 %v5218_v43, %v5215_v14  ;;  %v5231_v16 = vld [vmem:[%s3865_s21 + $0x60] sm:$0xff]  ;;  %v5240_v60 = vld [vmem:[%s3865_s21 + $0x98] sm:$0xff]  ;;  %2044 = vmatprep.mubr.bf16.mxu0 %v6034_v44 }
 0x172   :  { %1480 = vst [vmem:[#allocation19 + $0x370] sm:$0xff] %v1352_v62  ;;  %970 = vmatmul.mubr.bf16.vlgmr.msra.gmra.mrb[12].mxu1 %v4675_v63  ;;  %2013 = vmatpush1.bf16.msra.mxu0 %v1985_v9  ;;  %1481 = vst [vmem:[#allocation19 + $0x378] sm:$0xff] %v1353_v1  ;;  %v5224_v63 = vld [vmem:[%s3865_s21 + $0x78] sm:$0xff]  ;;  %v5237_v40 = vld [vmem:[%s3865_s21 + $0x88] sm:$0xff]  ;;  %v1991_v19 = vpack.c.bf16 %v5234_v41, %v5231_v16 }
 0x173   :  { %2014 = vmatprep.subr.bf16.mxu0 %v1988_v31  ;;  %v1992_v51 = vpack.c.bf16 %v5224_v63, %v5221_v8  ;;  %v1994_v55 = vpack.c.bf16 %v5240_v60, %v5237_v40  ;;  %v5247_v11 = vld [vmem:[%s3865_s21 + $0x80] sm:$0xff]  ;;  %v5250_v52 = vld [vmem:[%s3865_s21 + $0x90] sm:$0xff]  ;;  %v5255_v36 = vld [vmem:[%s3865_s21 + $0xa8] sm:$0xff] }
 0x174   :  { %v1993_v7 = vpack.c.bf16 %v5250_v52, %v5247_v11  ;;  %v5258_v33 = vld [vmem:[%s3865_s21 + $0xb8] sm:$0xff]  ;;  %v5263_v57 = vld [vmem:[%s3865_s21 + $0xa0] sm:$0xff]  ;;  %v5266_v59 = vld [vmem:[%s3865_s21 + $0xb0] sm:$0xff] }
 0x175   :  { %v1996_v2 = vpack.c.bf16 %v5258_v33, %v5255_v36  ;;  %v1995_v21 = vpack.c.bf16 %v5266_v59, %v5263_v57  ;;  %v5271_v28 = vld [vmem:[%s3865_s21 + $0xc8] sm:$0xff]  ;;  %v5274_v29 = vld [vmem:[%s3865_s21 + $0xd8] sm:$0xff]  ;;  %v5279_v17 = vld [vmem:[%s3865_s21 + $0xc0] sm:$0xff] }
 0x176   :  { %2015 = vmatpush1.bf16.msra.mxu0 %v1987_v42  ;;  %v1998_v45 = vpack.c.bf16 %v5274_v29, %v5271_v28  ;;  %v5282_v49 = vld [vmem:[%s3865_s21 + $0xd0] sm:$0xff]  ;;  %v5287_v26 = vld [vmem:[%s3865_s21 + $0xe8] sm:$0xff]  ;;  %v5290_v46 = vld [vmem:[%s3865_s21 + $0xf8] sm:$0xff] }
 0x177   :  { %2016 = vmatprep.subr.bf16.mxu0 %v1990_v39  ;;  %v1997_v34 = vpack.c.bf16 %v5282_v49, %v5279_v17  ;;  %6241 = vst [vmem:[#allocation57_spill] sm:$0xff] %v5290_v46  ;;  %v2000_v22 = vpack.c.bf16 %v5290_v46, %v5287_v26  ;;  %v5295_v25 = vld [vmem:[%s3865_s21 + $0xe0] sm:$0xff]  ;;  %v5298_v24 = vld [vmem:[%s3865_s21 + $0xf0] sm:$0xff]  ;;  %s6249_s21 = sld [smem:[#allocation44_spill]] }
 0x178   :  { %6242 = vst [vmem:[#allocation58_spill] sm:$0xff] %v5295_v25  ;;  %6243 = vst [vmem:[#allocation61_spill] sm:$0xff] %v5298_v24  ;;  %v1999_v10 = vpack.c.bf16 %v5298_v24, %v5295_v25  ;;  %v2984_v53 = vld [vmem:[%s3860_s17] ss:$0 sm:$0xff] }
 0x17a   :  { %2017 = vmatpush1.bf16.msra.mxu0 %v1989_v13 }
 0x17b   :  { %2018 = vmatprep.subr.bf16.mxu0 %v1992_v51 }
 0x17e   :  { %2019 = vmatpush1.bf16.msra.mxu0 %v1991_v19 }
 0x17f   :  { %2020 = vmatprep.subr.bf16.mxu0 %v1994_v55 }
 0x182   :  { %2021 = vmatpush1.bf16.msra.mxu0 %v1993_v7 }
 0x183   :  { %2022 = vmatprep.subr.bf16.mxu0 %v1996_v2 }
 0x186   :  { %2023 = vmatpush1.bf16.msra.mxu0 %v1995_v21 }
 0x187   :  { %2024 = vmatprep.subr.bf16.mxu0 %v1998_v45 }
 0x18a   :  { %2025 = vmatpush1.bf16.msra.mxu0 %v1997_v34 }
 0x18b   :  { %2026 = vmatprep.subr.bf16.mxu0 %v2000_v22 }
 0x18e   :  { %2027 = vmatpush1.bf16.msra.mxu0 %v1999_v10 }
 0x1d4   :  { %v3023_v0 = vpop.f32.mrb[0].mxu0  ;;  %v3045_v23 = vpop.f32.mrb[0].mxu1 }
 0x1d5   :  { %v3024_v54 = vpop.f32.mrb[1].mxu0  ;;  %v3046_v48 = vpop.f32.mrb[1].mxu1 }
 0x1d6   :  { %v3025_v6 = vadd.f32 %v3024_v54, %v3023_v0  ;;  %v3047_v20 = vadd.f32 %v3046_v48, %v3045_v23  ;;  %v3026_v61 = vpop.f32.mrb[2].mxu0  ;;  %v3048_v27 = vpop.f32.mrb[2].mxu1 }
 0x1d7   :  { %v3027_v47 = vpop.f32.mrb[3].mxu0  ;;  %v3049_v37 = vpop.f32.mrb[3].mxu1 }
 0x1d8   :  { %v486_v9 = vadd.f32 %v3025_v6, %v2984_v53  ;;  %v3028_v31 = vadd.f32 %v3027_v47, %v3026_v61  ;;  %v3050_v30 = vadd.f32 %v3049_v37, %v3048_v27  ;;  %v2985_v61 = vld [vmem:[#allocation7] ss:$0 sm:$0xff] }
 0x1da   :  { %v527_v62 = vadd.f32 %v3047_v20, %v486_v9  ;;  %v489_v1 = vadd.f32 %v3028_v31, %v2984_v53 }
 0x1dc   :  { %v530_v42 = vadd.f32 %v3050_v30, %v489_v1 }
 0x1f7   :  { %v3067_v39 = vpop.f32.mrb[4].mxu0 }
 0x1f8   :  { %v3068_v51 = vpop.f32.mrb[5].mxu0 }
 0x1f9   :  { %v3069_v55 = vadd.f32 %v3068_v51, %v3067_v39  ;;  %v3070_v2 = vpop.f32.mrb[6].mxu0 }
 0x1fa   :  { %v3089_v13 = vpop.f32.mrb[4].mxu1  ;;  %v3071_v45 = vpop.f32.mrb[7].mxu0 }
 0x1fb   :  { %v3090_v19 = vpop.f32.mrb[5].mxu1  ;;  %v568_v22 = vadd.f32 %v3069_v55, %v527_v62  ;;  %v3072_v10 = vadd.f32 %v3071_v45, %v3070_v2 }
 0x1fc   :  { %v3091_v7 = vadd.f32 %v3090_v19, %v3089_v13  ;;  %v3092_v21 = vpop.f32.mrb[6].mxu1 }
 0x1fd   :  { %v3093_v34 = vpop.f32.mrb[7].mxu1  ;;  %v571_v54 = vadd.f32 %v3072_v10, %v530_v42 }
 0x1fe   :  { %v3094_v0 = vadd.f32 %v3093_v34, %v3092_v21  ;;  %v609_v23 = vadd.f32 %v3091_v7, %v568_v22 }
 0x200   :  { %v612_v48 = vadd.f32 %v3094_v0, %v571_v54 }
 0x202   :  { %v1984_v6 = vpack.c.bf16 %v612_v48, %v609_v23 }
 0x204   :  { %2045 = vmatmul.mubr.bf16.vlgmr.msra.gmra.mrb[16].mxu0 %v1984_v6 }
 0x21d   :  { %v3111_v53 = vpop.f32.mrb[8].mxu0 }
 0x21e   :  { %v3133_v20 = vpop.f32.mrb[8].mxu1  ;;  %v3112_v27 = vpop.f32.mrb[9].mxu0 }
 0x21f   :  { %v3134_v47 = vpop.f32.mrb[9].mxu1  ;;  %v3113_v37 = vadd.f32 %v3112_v27, %v3111_v53  ;;  %v3114_v9 = vpop.f32.mrb[10].mxu0 }
 0x220   :  { %v3135_v31 = vadd.f32 %v3134_v47, %v3133_v20  ;;  %v3136_v30 = vpop.f32.mrb[10].mxu1  ;;  %v3115_v1 = vpop.f32.mrb[11].mxu0 }
 0x221   :  { %v3137_v39 = vpop.f32.mrb[11].mxu1  ;;  %v849_v13 = vadd.f32 %v3113_v37, %v2985_v61  ;;  %v3116_v62 = vadd.f32 %v3115_v1, %v3114_v9  ;;  %v982_v37 = vmul.f32 %v4061_v4, %v609_v23  ;;  %v1968_v23 = vld [vmem:[%s3885_s8 + $0x88] sm:$0xff] }
 0x222   :  { %v3138_v51 = vadd.f32 %v3137_v39, %v3136_v30  ;;  %v983_v30 = vmul.f32 %v4061_v4, %v612_v48 }
 0x223   :  { %v852_v19 = vadd.f32 %v3116_v62, %v2985_v61  ;;  %v890_v55 = vadd.f32 %v3135_v31, %v849_v13 }
 0x225   :  { %v893_v42 = vadd.f32 %v3138_v51, %v852_v19  ;;  %v1967_v51 = vld [vmem:[%s3885_s8 + $0x80] sm:$0xff] }
 0x226   :  { %v2176_v19 = vpack.c.bf16 %v1968_v23, %v1967_v51  ;;  %v1959_v23 = vld [vmem:[%s3885_s8 + $0x40] sm:$0xff] }
 0x228   :  { %3183 = vmatprep.subr.bf16.mxu1 %v2176_v19  ;;  %v1960_v19 = vld [vmem:[%s3885_s8 + $0x48] sm:$0xff] }
 0x243   :  { %v3155_v7 = vpop.f32.mrb[12].mxu0 }
 0x244   :  { %v3156_v2 = vpop.f32.mrb[13].mxu0 }
 0x245   :  { %v3157_v21 = vadd.f32 %v3156_v2, %v3155_v7  ;;  %v3158_v45 = vpop.f32.mrb[14].mxu0  ;;  %v3177_v34 = vpop.f32.mrb[12].mxu1  ;;  %v1969_v7 = vld [vmem:[%s3885_s8 + $0x90] sm:$0xff]  ;;  %v1970_v2 = vld [vmem:[%s3885_s8 + $0x98] sm:$0xff] }
 0x246   :  { %v3159_v22 = vpop.f32.mrb[15].mxu0  ;;  %v3178_v10 = vpop.f32.mrb[13].mxu1 }
 0x247   :  { %v931_v0 = vadd.f32 %v3157_v21, %v890_v55  ;;  %v3160_v54 = vadd.f32 %v3159_v22, %v3158_v45  ;;  %v3179_v6 = vadd.f32 %v3178_v10, %v3177_v34  ;;  %v3180_v53 = vpop.f32.mrb[14].mxu1  ;;  %v1951_v55 = vld [vmem:[%s3885_s8] sm:$0xff]  ;;  %v2177_v21 = vpack.c.bf16 %v1970_v2, %v1969_v7  ;;  %v1953_v45 = vld [vmem:[%s3885_s8 + $0x10] sm:$0xff]  ;;  %v1954_v34 = vld [vmem:[%s3885_s8 + $0x18] sm:$0xff] }
 0x248   :  { %v3181_v20 = vpop.f32.mrb[15].mxu1  ;;  %v2169_v22 = vpack.c.bf16 %v1954_v34, %v1953_v45  ;;  %v1971_v10 = vld [vmem:[%s3885_s8 + $0xa0] sm:$0xff]  ;;  %v1961_v2 = vld [vmem:[%s3885_s8 + $0x50] sm:$0xff] }
 0x249   :  { %v934_v27 = vadd.f32 %v3160_v54, %v893_v42  ;;  %v972_v61 = vadd.f32 %v3179_v6, %v931_v0  ;;  %v3182_v47 = vadd.f32 %v3181_v20, %v3180_v53  ;;  %v1952_v42 = vld [vmem:[%s3885_s8 + $0x8] sm:$0xff]  ;;  %v1955_v6 = vld [vmem:[%s3885_s8 + $0x20] sm:$0xff] }
 0x24a   :  { %v2168_v48 = vpack.c.bf16 %v1952_v42, %v1951_v55  ;;  %v1972_v0 = vld [vmem:[%s3885_s8 + $0xa8] sm:$0xff]  ;;  %v2172_v55 = vpack.c.bf16 %v1960_v19, %v1959_v23  ;;  %v1977_v42 = vld [vmem:[%s3885_s8 + $0xd0] sm:$0xff]  ;;  %v1979_v34 = vld [vmem:[%s3885_s8 + $0xe0] sm:$0xff] }
 0x24b   :  { %v979_v9 = vmul.f32 %v4059_v3, %v972_v61  ;;  %v975_v31 = vadd.f32 %v3182_v47, %v934_v27  ;;  %v2178_v54 = vpack.c.bf16 %v1972_v0, %v1971_v10  ;;  %v1956_v53 = vld [vmem:[%s3885_s8 + $0x28] sm:$0xff]  ;;  %v1973_v27 = vld [vmem:[%s3885_s8 + $0xb0] sm:$0xff]  ;;  %v1974_v61 = vld [vmem:[%s3885_s8 + $0xb8] sm:$0xff] }
 0x24c   :  { %3184 = vmatpush3.bf16.msra.mxu1 %v2168_v48  ;;  %v2170_v20 = vpack.c.bf16 %v1956_v53, %v1955_v6  ;;  %v2179_v47 = vpack.c.bf16 %v1974_v61, %v1973_v27  ;;  %v1978_v48 = vld [vmem:[%s3885_s8 + $0xd8] sm:$0xff]  ;;  %v1963_v0 = vld [vmem:[%s3885_s8 + $0x60] sm:$0xff]  ;;  %v1981_v6 = vld [vmem:[%s3885_s8 + $0xf0] sm:$0xff] }
 0x24d   :  { %v5307_v1 = vadd.f32 %v982_v37, %v979_v9  ;;  %v980_v39 = vmul.f32 %v4059_v3, %v975_v31  ;;  %3185 = vmatprep.subr.bf16.mxu1 %v2177_v21  ;;  %v1957_v37 = vld [vmem:[%s3885_s8 + $0x30] sm:$0xff]  ;;  %v1958_v9 = vld [vmem:[%s3885_s8 + $0x38] sm:$0xff]  ;;  %v2181_v7 = vpack.c.bf16 %v1978_v48, %v1977_v42  ;;  %v3349_v23 = vld [vmem:[%s6246_s5 + $0x20] sm:$0xff]  }
 0x24e   :  { %v2171_v31 = vpack.c.bf16 %v1958_v9, %v1957_v37  ;;  %v1962_v21 = vld [vmem:[%s3885_s8 + $0x58] sm:$0xff]  ;;  %v1965_v27 = vld [vmem:[%s3885_s8 + $0x70] sm:$0xff]  ;;  %v3345_v9 = vld [vmem:[%s6246_s5] sm:$0xff]  }
 0x24f   :  { %6244 = vst [vmem:[#allocation62_spill] sm:$0xff] %v5307_v1  ;;  %v5310_v13 = vadd.f32 %v983_v30, %v980_v39  ;;  %v1975_v30 = vld [vmem:[%s3885_s8 + $0xc0] sm:$0xff]  ;;  %v1976_v39 = vld [vmem:[%s3885_s8 + $0xc8] sm:$0xff]  ;;  %v2173_v45 = vpack.c.bf16 %v1962_v21, %v1961_v2  ;;  %v1966_v61 = vld [vmem:[%s3885_s8 + $0x78] sm:$0xff] }
 0x250   :  { %3186 = vmatpush3.bf16.msra.mxu1 %v2169_v22  ;;  %v2180_v51 = vpack.c.bf16 %v1976_v39, %v1975_v30  ;;  %v1980_v22 = vld [vmem:[%s3885_s8 + $0xe8] sm:$0xff]  ;;  %v2175_v37 = vpack.c.bf16 %v1966_v61, %v1965_v27  ;;  %v3347_v39 = vld [vmem:[%s6246_s5 + $0x10] sm:$0xff]  }
 0x251   :  { %6245 = vst [vmem:[#allocation59_spill] sm:$0xff] %v5310_v13  ;;  %3187 = vmatprep.subr.bf16.mxu1 %v2178_v54  ;;  %v2182_v10 = vpack.c.bf16 %v1980_v22, %v1979_v34  ;;  %v1964_v54 = vld [vmem:[%s3885_s8 + $0x68] sm:$0xff] }
 0x252   :  { %v2174_v53 = vpack.c.bf16 %v1964_v54, %v1963_v0  ;;  %v3346_v30 = vld [vmem:[%s6246_s5 + $0x8] sm:$0xff]  }
 0x253   :  { %v3350_v19 = vld [vmem:[%s6246_s5 + $0x28] sm:$0xff]  }
 0x254   :  { %3188 = vmatpush3.bf16.msra.mxu1 %v2170_v20  ;;  %v1982_v20 = vld [vmem:[%s3885_s8 + $0xf8] sm:$0xff] }
 0x255   :  { %3189 = vmatprep.subr.bf16.mxu1 %v2179_v47  ;;  %v2183_v47 = vpack.c.bf16 %v1982_v20, %v1981_v6 }
 0x258   :  { %3190 = vmatpush3.bf16.msra.mxu1 %v2171_v31  ;;  %v6035_v31 = vmov 0.0  }
 0x259   :  { %3191 = vmatprep.subr.bf16.mxu1 %v2180_v51  ;;  %3245 = vmatprep.subr.bf16.mxu0 %v6035_v31  ;;  %v3348_v51 = vld [vmem:[%s6246_s5 + $0x18] sm:$0xff]  }
 0x25a   :  { %3246 = vmatpush3.bf16.msra.mxu0 %v3345_v9 }
 0x25b   :  { %3247 = vmatprep.subr.bf16.mxu0 %v6035_v31 }
 0x25c   :  { %3192 = vmatpush3.bf16.msra.mxu1 %v2172_v55  ;;  %v6033_v55 = vlaneseq }
 0x25d   :  { %3193 = vmatprep.subr.bf16.mxu1 %v2181_v7  ;;  %v1948_v7 = vld [vmem:[%s6247_s9] sm:$0x3] }
 0x25e   :  { %3248 = vmatpush3.bf16.msra.mxu0 %v3346_v30  ;;  %v2003_v42 = vshrl.u32 %v6033_v55, 7 }
 0x25f   :  { %3249 = vmatprep.subr.bf16.mxu0 %v6035_v31 }
 0x260   :  { %3194 = vmatpush3.bf16.msra.mxu1 %v2173_v45  ;;  %v5361_v48 = vsub.s32 0, %v2003_v42  ;;  %v5364_v2 = vsub.s32 1, %v2003_v42 }
 0x261   :  { %3195 = vmatprep.subr.bf16.mxu1 %v2182_v10 }
 0x262   :  { %3250 = vmatpush3.bf16.msra.mxu0 %v3347_v39  ;;  %v2005_v21 = vrot.slane %v1948_v7, %v5361_v48  ;;  %v2009_v45 = vrot.slane %v1948_v7, %v5364_v2 }
 0x263   :  { %3251 = vmatprep.subr.bf16.mxu0 %v6035_v31 }
 0x264   :  { %3196 = vmatpush3.bf16.msra.mxu1 %v2174_v53 }
 0x265   :  { %3197 = vmatprep.subr.bf16.mxu1 %v2183_v47 }
 0x266   :  { %3252 = vmatpush3.bf16.msra.mxu0 %v3348_v51 }
 0x267   :  { %3253 = vmatprep.subr.bf16.mxu0 %v6035_v31 }
 0x268   :  { %3198 = vmatpush3.bf16.msra.mxu1 %v2175_v37 }
 0x269   :  { %3265 = vmatprep.subr.bf16.mxu1 %v6035_v31 }
 0x26a   :  { %3254 = vmatpush3.bf16.msra.mxu0 %v3349_v23 }
 0x26b   :  { %3255 = vmatprep.subr.bf16.mxu0 %v6035_v31 }
 0x26e   :  { %3256 = vmatpush3.bf16.msra.mxu0 %v3350_v19 }
 0x26f   :  { %3257 = vmatprep.subr.bf16.mxu0 %v6035_v31 }
 0x2d7   :  { %v2046_v34 = vpop.f32.mrb[16].mxu0 }
 0x2d8   :  { %v2047_v22 = vadd.f32 %v2046_v34, %v2005_v21  ;;  %v2048_v10 = vpop.f32.mrb[17].mxu0 }
 0x2d9   :  { %v2049_v0 = vadd.f32 %v2048_v10, %v2009_v45  ;;  %v2050_v54 = vpop.f32.mrb[18].mxu0 }
 0x2da   :  { %v2055_v6 = vrot.slane %v2047_v22, 4  ;;  %v2051_v53 = vadd.f32 %v2050_v54, %v2005_v21  ;;  %v2052_v20 = vpop.f32.mrb[19].mxu0 }
 0x2db   :  { %v2061_v27 = vrot.slane %v2049_v0, 4  ;;  %v2053_v61 = vadd.f32 %v2052_v20, %v2009_v45 }
 0x2dc   :  { %v2056_v47 = vadd.f32 %v2055_v6, %v2047_v22  ;;  %v2067_v37 = vrot.slane %v2051_v53, 4 }
 0x2dd   :  { %v2062_v9 = vadd.f32 %v2061_v27, %v2049_v0  ;;  %v2073_v30 = vrot.slane %v2053_v61, 4 }
 0x2de   :  { %v2057_v39 = vrot.slane %v2056_v47, 2  ;;  %v2068_v51 = vadd.f32 %v2067_v37, %v2051_v53 }
 0x2df   :  { %v2063_v23 = vrot.slane %v2062_v9, 2  ;;  %v2074_v19 = vadd.f32 %v2073_v30, %v2053_v61 }
 0x2e0   :  { %v2058_v42 = vadd.f32 %v2057_v39, %v2056_v47  ;;  %v2069_v7 = vrot.slane %v2068_v51, 2 }
 0x2e1   :  { %v2064_v55 = vadd.f32 %v2063_v23, %v2062_v9  ;;  %v2075_v34 = vrot.slane %v2074_v19, 2 }
 0x2e2   :  { %v2059_v62 = vrot.slane %v2058_v42, 1  ;;  %v2070_v10 = vadd.f32 %v2069_v7, %v2068_v51 }
 0x2e3   :  { %v2065_v44 = vrot.slane %v2064_v55, 1  ;;  %v2076_v31 = vadd.f32 %v2075_v34, %v2074_v19 }
 0x2e4   :  { %v2060_v21 = vadd.f32 %v2059_v62, %v2058_v42  ;;  %v2071_v54 = vrot.slane %v2070_v10, 1 }
 0x2e5   :  { %v2066_v1 = vadd.f32 %v2065_v44, %v2064_v55  ;;  %v2077_v45 = vrot.slane %v2076_v31, 1 }
 0x2e6   :  { %v2080_v6 = vmul.f32 0.125, %v2060_v21  ;;  %v2072_v20 = vadd.f32 %v2071_v54, %v2070_v10 }
 0x2e7   :  { %v2081_v27 = vmul.f32 0.125, %v2066_v1  ;;  %v2078_v13 = vadd.f32 %v2077_v45, %v2076_v31 }
 0x2e8   :  { %v2084_v24 = vsub.f32 %v2047_v22, %v2080_v6  ;;  %v2082_v37 = vmul.f32 0.125, %v2072_v20 }
 0x2e9   :  { %v2085_v25 = vsub.f32 %v2049_v0, %v2081_v27  ;;  %v2083_v30 = vmul.f32 0.125, %v2078_v13 }
 0x2ea   :  { %v2088_v47 = vmul.f32 %v2084_v24, %v2084_v24  ;;  %v2086_v39 = vsub.f32 %v2051_v53, %v2082_v37 }
 0x2eb   :  { %v2089_v9 = vmul.f32 %v2085_v25, %v2085_v25  ;;  %v2087_v23 = vsub.f32 %v2053_v61, %v2083_v30 }
 0x2ec   :  { %v2092_v46 = vrot.slane %v2088_v47, 4  ;;  %v2090_v51 = vmul.f32 %v2086_v39, %v2086_v39 }
 0x2ed   :  { %v2098_v7 = vrot.slane %v2089_v9, 4  ;;  %v2091_v19 = vmul.f32 %v2087_v23, %v2087_v23 }
 0x2ee   :  { %v2093_v62 = vadd.f32 %v2092_v46, %v2088_v47  ;;  %v2104_v42 = vrot.slane %v2090_v51, 4 }
 0x2ef   :  { %v2099_v44 = vadd.f32 %v2098_v7, %v2089_v9  ;;  %v2110_v55 = vrot.slane %v2091_v19, 4 }
 0x2f0   :  { %v2094_v34 = vrot.slane %v2093_v62, 2  ;;  %v2105_v10 = vadd.f32 %v2104_v42, %v2090_v51 }
 0x2f1   :  { %v2100_v1 = vrot.slane %v2099_v44, 2  ;;  %v2111_v31 = vadd.f32 %v2110_v55, %v2091_v19  ;;  %v1949_v55 = vld [vmem:[%s6248_s13] sm:$0x3] }
 0x2f2   :  { %v2095_v22 = vadd.f32 %v2094_v34, %v2093_v62  ;;  %v2106_v21 = vrot.slane %v2105_v10, 2  ;;  %v1950_v34 = vld [vmem:[%s6249_s21] sm:$0x3] }
 0x2f3   :  { %v2101_v0 = vadd.f32 %v2100_v1, %v2099_v44  ;;  %v2112_v13 = vrot.slane %v2111_v31, 2 }
 0x2f4   :  { %v2096_v54 = vrot.slane %v2095_v22, 1  ;;  %v2107_v53 = vadd.f32 %v2106_v21, %v2105_v10  ;;  %v2136_v10 = vrot.slane %v1949_v55, %v5361_v48 }
 0x2f5   :  { %v2102_v45 = vrot.slane %v2101_v0, 1  ;;  %v2113_v61 = vadd.f32 %v2112_v13, %v2111_v31  ;;  %v2140_v31 = vrot.slane %v1949_v55, %v5364_v2  ;;  %v6250_v55 = vmov 0.0  }
 0x2f6   :  { %v2097_v6 = vadd.f32 %v2096_v54, %v2095_v22  ;;  %v2108_v20 = vrot.slane %v2107_v53, 1  ;;  %3261 = vmatprep.mubr.msk.bf16.mxu0 %vm3827_vm0, %v6250_v55 }
 0x2f7   :  { %v2103_v27 = vadd.f32 %v2102_v45, %v2101_v0  ;;  %v2114_v46 = vrot.slane %v2113_v61, 1  ;;  %v2151_v0 = vrot.slane %v1950_v34, %v5361_v48 }
 0x2f8   :  { %v2116_v37 = vmul.f32 0.125, %v2097_v6  ;;  %v2109_v30 = vadd.f32 %v2108_v20, %v2107_v53  ;;  %v2155_v53 = vrot.slane %v1950_v34, %v5364_v2 }
 0x2f9   :  { %v2117_v47 = vmul.f32 0.125, %v2103_v27  ;;  %v2115_v9 = vadd.f32 %v2114_v46, %v2113_v61 }
 0x2fa   :  { %v2120_v51 = vadd.f32 1e-05, %v2116_v37  ;;  %v2118_v7 = vmul.f32 0.125, %v2109_v30 }
 0x2fb   :  { %v2121_v19 = vadd.f32 1e-05, %v2117_v47  ;;  %v2119_v62 = vmul.f32 0.125, %v2115_v9 }
 0x2fc   :  { %3361 = vrsqrt.f32 %v2120_v51  ;;  %v2122_v42 = vadd.f32 1e-05, %v2118_v7 }
 0x2fd   :  { %3363 = vrsqrt.f32 %v2121_v19  ;;  %v2123_v44 = vadd.f32 1e-05, %v2119_v62 }
 0x2fe   :  { %3365 = vrsqrt.f32 %v2122_v42 }
 0x2ff   :  { %3367 = vrsqrt.f32 %v2123_v44  ;;  %v3351_v44 = vld [vmem:[%s6246_s5 + $0x30] sm:$0xff]  }
 0x300   :  { %3258 = vmatpush3.bf16.msra.mxu0 %v3351_v44  ;;  %v1515_v44 = vld [vmem:[#allocation9 + $0x58] sm:$0xff] }
 0x301   :  { %3259 = vmatprep.subr.bf16.mxu0 %v6250_v55 }
 0x306   :  { %v3362_v1 = vpop.eup %3361 }
 0x307   :  { %v3364_v22 = vpop.eup %3363  ;;  %v2128_v21 = vmul.f32 %v3362_v1, %v2084_v24  ;;  %v1601_v1 = vmul.f32 %v5160_v32, %v4061_v4 }
 0x308   :  { %v3366_v13 = vpop.eup %3365  ;;  %v2129_v54 = vmul.f32 %v3364_v22, %v2085_v25  ;;  %v1504_v22 = vld [vmem:[#allocation9] sm:$0xff] }
 0x309   :  { %v3368_v45 = vpop.eup %3367  ;;  %v2143_v61 = vmul.f32 %v2136_v10, %v2128_v21  ;;  %v2130_v6 = vmul.f32 %v3366_v13, %v2086_v39  ;;  %v1505_v39 = vld [vmem:[#allocation9 + $0x8] sm:$0xff]  ;;  %v1506_v21 = vld [vmem:[#allocation9 + $0x10] sm:$0xff]  ;;  %v1568_v13 = vmul.f32 %v1504_v22, %v4059_v3 }
 0x30a   :  { %v2131_v20 = vmul.f32 %v3368_v45, %v2087_v23  ;;  %v2144_v27 = vmul.f32 %v2140_v31, %v2129_v54  ;;  %v1507_v23 = vld [vmem:[#allocation9 + $0x18] sm:$0xff]  ;;  %v1569_v34 = vmul.f32 %v1505_v39, %v4059_v3  ;;  %v1570_v54 = vmul.f32 %v1506_v21, %v4059_v3 }
 0x30b   :  { %v2145_v46 = vmul.f32 %v2136_v10, %v2130_v6  ;;  %v2158_v37 = vadd.f32 %v2151_v0, %v2143_v61  ;;  %v1571_v10 = vmul.f32 %v1507_v23, %v4059_v3  ;;  %v1602_v45 = vmul.f32 %v5172_v38, %v4061_v4 }
 0x30c   :  { %v2146_v30 = vmul.f32 %v2140_v31, %v2131_v20  ;;  %v2159_v47 = vadd.f32 %v2155_v53, %v2144_v27  ;;  %v1603_v31 = vmul.f32 %v5163_v50, %v4061_v4  ;;  %v1633_v61 = vadd.f32 %v1601_v1, %v1569_v34  ;;  %v1509_v27 = vld [vmem:[#allocation9 + $0x28] sm:$0xff] }
 0x30d   :  { %v2160_v9 = vadd.f32 %v2151_v0, %v2145_v46  ;;  %v2162_v7 = vmax.f32 %v2158_v37, 0.0  ;;  %v3352_v0 = vld [vmem:[%s6246_s5 + $0x38] sm:$0xff]   ;;  %v5391_v20 = vadd.f32 %v1602_v45, %v1570_v54  ;;  %v1573_v38 = vmul.f32 %v1509_v27, %v4059_v3 }
 0x30e   :  { %v2161_v51 = vadd.f32 %v2155_v53, %v2146_v30  ;;  %v2163_v19 = vmax.f32 %v2159_v47, 0.0  ;;  %v1600_v53 = vmul.f32 %v5166_v56, %v4061_v4  ;;  %v1635_v6 = vadd.f32 %v1603_v31, %v1571_v10  ;;  %3260 = vmatpush3.bf16.msra.mxu0 %v3352_v0  ;;  %1665 = vst [vmem:[#allocation22 + $0x8] sm:$0xff] %v1633_v61  ;;  %v1511_v46 = vld [vmem:[#allocation9 + $0x38] sm:$0xff]  ;;  %v1508_v30 = vld [vmem:[#allocation9 + $0x20] sm:$0xff]  ;;  %v1510_v47 = vld [vmem:[#allocation9 + $0x30] sm:$0xff] }
 0x30f   :  { %v2164_v24 = vmax.f32 %v2160_v9, 0.0  ;;  %1666 = vst [vmem:[#allocation22 + $0x10] sm:$0xff] %v5391_v20  ;;  %v1575_v37 = vmul.f32 %v1511_v46, %v4059_v3  ;;  %v1605_v9 = vmul.f32 %v5175_v15, %v4061_v4  ;;  %v1513_v15 = vld [vmem:[#allocation9 + $0x48] sm:$0xff]  ;;  %v1579_v34 = vmul.f32 %v1515_v44, %v4059_v3  ;;  %v1514_v10 = vld [vmem:[#allocation9 + $0x50] sm:$0xff]  ;;  %v1519_v45 = vld [vmem:[#allocation9 + $0x78] sm:$0xff] }
 0x310   :  { %v2165_v62 = vmax.f32 %v2161_v51, 0.0  ;;  %v5389_v32 = vadd.f32 %v1600_v53, %v1568_v13  ;;  %1667 = vst [vmem:[#allocation22 + $0x18] sm:$0xff] %v1635_v6  ;;  %v2517_v50 = vpack.c.bf16 %v1635_v6, %v1633_v61  ;;  %v1607_v51 = vmul.f32 %v5178_v35, %v4061_v4  ;;  %v1517_v53 = vld [vmem:[#allocation9 + $0x68] sm:$0xff]  ;;  %v1516_v46 = vld [vmem:[#allocation9 + $0x60] sm:$0xff] }
 0x311   :  { %v2166_v25 = vpack.c.bf16 %v2164_v24, %v2162_v7  ;;  %v1572_v7 = vmul.f32 %v1508_v30, %v4059_v3  ;;  %v1574_v24 = vmul.f32 %v1510_v47, %v4059_v3  ;;  %v1577_v23 = vmul.f32 %v1513_v15, %v4059_v3 }
 0x312   :  { %v2167_v42 = vpack.c.bf16 %v2165_v62, %v2163_v19  ;;  %1664 = vst [vmem:[#allocation22] sm:$0xff] %v5389_v32  ;;  %v2516_v56 = vpack.c.bf16 %v5391_v20, %v5389_v32  ;;  %2543 = vmatprep.subr.bf16.mxu0 %v2517_v50  ;;  %v1604_v19 = vmul.f32 %v5195_v12, %v4061_v4  ;;  %v1512_v12 = vld [vmem:[#allocation9 + $0x40] sm:$0xff] }
 0x313   :  { %v1606_v62 = vmul.f32 %v5198_v5, %v4061_v4  ;;  %v1609_v1 = vmul.f32 %v5203_v58, %v4061_v4  ;;  %v1611_v31 = vmul.f32 %v5206_v18, %v4061_v4  ;;  %v1576_v22 = vmul.f32 %v1512_v12, %v4059_v3  ;;  %v1522_v12 = vld [vmem:[#allocation9 + $0x90] sm:$0xff]  ;;  %v6257_v32 = vld [vmem:[#allocation59_spill] sm:$0xff]  ;;  %v6258_v20 = vld [vmem:[#allocation62_spill] sm:$0xff] }
 0x314   :  { %2222 = vmatprep.mubr.bf16.mxu1 %v2167_v42  ;;  %v5413_v42 = vadd.f32 %v1607_v51, %v1575_v37  ;;  %v5415_v39 = vadd.f32 %v1604_v19, %v1572_v7  ;;  %v1578_v0 = vmul.f32 %v1514_v10, %v4059_v3  ;;  %v1608_v13 = vmul.f32 %v5215_v14, %v4061_v4  ;;  %v1523_v19 = vld [vmem:[#allocation9 + $0x98] sm:$0xff] }
 0x315   :  { %2223 = vmatmul.mubr.bf16.vlgmr.msra.gmra.mrb[16].mxu1 %v2166_v25  ;;  %v5411_v25 = vadd.f32 %v1605_v9, %v1573_v38  ;;  %v5417_v35 = vadd.f32 %v1606_v62, %v1574_v24  ;;  %v1610_v58 = vmul.f32 %v5218_v43, %v4061_v4  ;;  %v5439_v54 = vadd.f32 %v1609_v1, %v1577_v23  ;;  %v1518_v38 = vld [vmem:[#allocation9 + $0x70] sm:$0xff]  ;;  %v1521_v24 = vld [vmem:[#allocation9 + $0x88] sm:$0xff] }
 0x316   :  { %3281 = vmatprep.mubr.msk.bf16.mxu1 %vm3827_vm0, %v6250_v55  ;;  %1671 = vst [vmem:[#allocation22 + $0x38] sm:$0xff] %v5413_v42  ;;  %1668 = vst [vmem:[#allocation22 + $0x20] sm:$0xff] %v5415_v39  ;;  %v5441_v18 = vadd.f32 %v1611_v31, %v1579_v34  ;;  %v5443_v61 = vadd.f32 %v1608_v13, %v1576_v22  ;;  %v1581_v50 = vmul.f32 %v1517_v53, %v4059_v3  ;;  %v1520_v34 = vld [vmem:[#allocation9 + $0x80] sm:$0xff]  ;;  %v1527_v53 = vld [vmem:[#allocation9 + $0xb8] sm:$0xff] }
 0x317   :  { %1669 = vst [vmem:[#allocation22 + $0x28] sm:$0xff] %v5411_v25  ;;  %v2519_v5 = vpack.c.bf16 %v5413_v42, %v5411_v25  ;;  %1670 = vst [vmem:[#allocation22 + $0x30] sm:$0xff] %v5417_v35  ;;  %v2518_v21 = vpack.c.bf16 %v5417_v35, %v5415_v39  ;;  %v5445_v6 = vadd.f32 %v1610_v58, %v1578_v0  ;;  %v1525_v58 = vld [vmem:[#allocation9 + $0xa8] sm:$0xff]  ;;  %v3353_v25 = vld [vmem:[%s6256_s10] sm:$0xff]  }
 0x318   :  { %v1583_v27 = vmul.f32 %v1519_v45, %v4059_v3  ;;  %1673 = vst [vmem:[#allocation22 + $0x48] sm:$0xff] %v5439_v54  ;;  %1675 = vst [vmem:[#allocation22 + $0x58] sm:$0xff] %v5441_v18  ;;  %v2521_v14 = vpack.c.bf16 %v5441_v18, %v5439_v54  ;;  %v1613_v43 = vmul.f32 %v5221_v8, %v4061_v4  ;;  %3266 = vmatpush3.bf16.msra.mxu1 %v3353_v25  ;;  %v3354_v42 = vld [vmem:[%s6256_s10 + $0x8] sm:$0xff]   ;;  %v3355_v39 = vld [vmem:[%s6256_s10 + $0x10] sm:$0xff]  }
 0x319   :  { %v1615_v37 = vmul.f32 %v5224_v63, %v4061_v4  ;;  %v1580_v30 = vmul.f32 %v1516_v46, %v4059_v3  ;;  %1672 = vst [vmem:[#allocation22 + $0x40] sm:$0xff] %v5443_v61  ;;  %1674 = vst [vmem:[#allocation22 + $0x50] sm:$0xff] %v5445_v6  ;;  %v2520_v47 = vpack.c.bf16 %v5445_v6, %v5443_v61  ;;  %3267 = vmatprep.subr.bf16.mxu1 %v6250_v55  ;;  %v3356_v35 = vld [vmem:[%s6256_s10 + $0x18] sm:$0xff]   ;;  %v3359_v54 = vld [vmem:[%s6256_s10 + $0x30] sm:$0xff]  }
 0x31a   :  { %v1582_v9 = vmul.f32 %v1518_v38, %v4059_v3  ;;  %v1612_v51 = vmul.f32 %v5231_v16, %v4061_v4  ;;  %v1614_v8 = vmul.f32 %v5234_v41, %v4061_v4  ;;  %v5467_v7 = vadd.f32 %v1613_v43, %v1581_v50  ;;  %v1524_v38 = vld [vmem:[#allocation9 + $0xa0] sm:$0xff]  ;;  %v1526_v43 = vld [vmem:[#allocation9 + $0xb0] sm:$0xff] }
 0x31b   :  { %v5469_v63 = vadd.f32 %v1615_v37, %v1583_v27  ;;  %v1585_v44 = vmul.f32 %v1521_v24, %v4059_v3  ;;  %v1587_v23 = vmul.f32 %v1523_v19, %v4059_v3  ;;  %v1617_v41 = vmul.f32 %v5237_v40, %v4061_v4  ;;  %v1529_v19 = vld [vmem:[#allocation9 + $0xc8] sm:$0xff]  ;;  %v1766_v6 = vld [vmem:[%s3885_s8 + $0x80] sm:$0xff] }
 0x31c   :  { %v5471_v62 = vadd.f32 %v1612_v51, %v1580_v30  ;;  %v5473_v15 = vadd.f32 %v1614_v8, %v1582_v9  ;;  %1677 = vst [vmem:[#allocation22 + $0x68] sm:$0xff] %v5467_v7  ;;  %v1619_v10 = vmul.f32 %v5240_v60, %v4061_v4  ;;  %v1584_v1 = vmul.f32 %v1520_v34, %v4059_v3  ;;  %v1734_v18 = vld [vmem:[#allocation15 + $0x80] sm:$0xff]  ;;  %v1735_v61 = vld [vmem:[#allocation15 + $0x88] sm:$0xff] }
 0x31d   :  { %1679 = vst [vmem:[#allocation22 + $0x78] sm:$0xff] %v5469_v63  ;;  %v2523_v16 = vpack.c.bf16 %v5469_v63, %v5467_v7  ;;  %v1586_v22 = vmul.f32 %v1522_v12, %v4059_v3  ;;  %v1616_v0 = vmul.f32 %v5247_v11, %v4061_v4  ;;  %v1618_v40 = vmul.f32 %v5250_v52, %v4061_v4 }
 0x31e   :  { %1676 = vst [vmem:[#allocation22 + $0x60] sm:$0xff] %v5471_v62  ;;  %1678 = vst [vmem:[#allocation22 + $0x70] sm:$0xff] %v5473_v15  ;;  %v2522_v31 = vpack.c.bf16 %v5473_v15, %v5471_v62  ;;  %v5495_v13 = vadd.f32 %v1617_v41, %v1585_v44  ;;  %v5497_v60 = vadd.f32 %v1619_v10, %v1587_v23  ;;  %v1531_v44 = vld [vmem:[#allocation9 + $0xd8] sm:$0xff]  ;;  %v1528_v10 = vld [vmem:[#allocation9 + $0xc0] sm:$0xff]  ;;  %3268 = vmatpush3.bf16.msra.mxu1 %v3354_v42 }
 0x31f   :  { %v5499_v45 = vadd.f32 %v1616_v0, %v1584_v1  ;;  %v5501_v50 = vadd.f32 %v1618_v40, %v1586_v22  ;;  %v1589_v27 = vmul.f32 %v1525_v58, %v4059_v3  ;;  %v1591_v46 = vmul.f32 %v1527_v53, %v4059_v3  ;;  %v1530_v1 = vld [vmem:[#allocation9 + $0xd0] sm:$0xff]  ;;  %3269 = vmatprep.subr.bf16.mxu1 %v6250_v55  ;;  %v1718_v15 = vld [vmem:[#allocation15] sm:$0xff]  ;;  %v1754_v42 = vld [vmem:[%s3885_s8 + $0x20] sm:$0xff] }
 0x320   :  { %1681 = vst [vmem:[#allocation22 + $0x88] sm:$0xff] %v5495_v13  ;;  %1683 = vst [vmem:[#allocation22 + $0x98] sm:$0xff] %v5497_v60  ;;  %v2525_v11 = vpack.c.bf16 %v5497_v60, %v5495_v13  ;;  %v1621_v52 = vmul.f32 %v5255_v36, %v4061_v4  ;;  %v1623_v37 = vmul.f32 %v5258_v33, %v4061_v4  ;;  %v1750_v13 = vld [vmem:[%s3885_s8] sm:$0xff]  ;;  %v1751_v60 = vld [vmem:[%s3885_s8 + $0x8] sm:$0xff] }
 0x321   :  { %v1588_v30 = vmul.f32 %v1524_v38, %v4059_v3  ;;  %1680 = vst [vmem:[#allocation22 + $0x80] sm:$0xff] %v5499_v45  ;;  %1682 = vst [vmem:[#allocation22 + $0x90] sm:$0xff] %v5501_v50  ;;  %v2524_v9 = vpack.c.bf16 %v5501_v50, %v5499_v45  ;;  %v1590_v51 = vmul.f32 %v1526_v43, %v4059_v3  ;;  %v1535_v38 = vld [vmem:[#allocation9 + $0xf8] sm:$0xff] }
 0x322   :  { %v1620_v8 = vmul.f32 %v5263_v57, %v4061_v4  ;;  %v1622_v36 = vmul.f32 %v5266_v59, %v4061_v4  ;;  %v5523_v24 = vadd.f32 %v1621_v52, %v1589_v27  ;;  %v5525_v33 = vadd.f32 %v1623_v37, %v1591_v46  ;;  %3270 = vmatpush3.bf16.msra.mxu1 %v3355_v39  ;;  %v1755_v39 = vld [vmem:[%s3885_s8 + $0x28] sm:$0xff] }
 0x323   :  { %v1593_v12 = vmul.f32 %v1529_v19, %v4059_v3  ;;  %v1595_v41 = vmul.f32 %v1531_v44, %v4059_v3  ;;  %v1625_v59 = vmul.f32 %v5271_v28, %v4061_v4  ;;  %v1627_v22 = vmul.f32 %v5274_v29, %v4061_v4  ;;  %v1533_v29 = vld [vmem:[#allocation9 + $0xe8] sm:$0xff]  ;;  %3271 = vmatprep.subr.bf16.mxu1 %v6250_v55 }
 0x324   :  { %v5527_v23 = vadd.f32 %v1620_v8, %v1588_v30  ;;  %v5529_v34 = vadd.f32 %v1622_v36, %v1590_v51  ;;  %1685 = vst [vmem:[#allocation22 + $0xa8] sm:$0xff] %v5523_v24  ;;  %1687 = vst [vmem:[#allocation22 + $0xb8] sm:$0xff] %v5525_v33  ;;  %v2527_v57 = vpack.c.bf16 %v5525_v33, %v5523_v24  ;;  %v1532_v51 = vld [vmem:[#allocation9 + $0xe0] sm:$0xff]  ;;  %v1534_v8 = vld [vmem:[#allocation9 + $0xf0] sm:$0xff] }
 0x325   :  { %v1592_v0 = vmul.f32 %v1528_v10, %v4059_v3  ;;  %v1594_v58 = vmul.f32 %v1530_v1, %v4059_v3  ;;  %v1624_v53 = vmul.f32 %v5279_v17, %v4061_v4  ;;  %v1626_v28 = vmul.f32 %v5282_v49, %v4061_v4  ;;  %v6251_v49 = vld [vmem:[#allocation57_spill] sm:$0xff] }
 0x326   :  { %1684 = vst [vmem:[#allocation22 + $0xa0] sm:$0xff] %v5527_v23  ;;  %1686 = vst [vmem:[#allocation22 + $0xb0] sm:$0xff] %v5529_v34  ;;  %v2526_v40 = vpack.c.bf16 %v5529_v34, %v5527_v23  ;;  %v1657_v27 = vadd.f32 %v1625_v59, %v1593_v12  ;;  %v1659_v46 = vadd.f32 %v1627_v22, %v1595_v41  ;;  %v6252_v23 = vld [vmem:[#allocation58_spill] sm:$0xff]  ;;  %v6253_v12 = vld [vmem:[#allocation61_spill] sm:$0xff]  ;;  %3272 = vmatpush3.bf16.msra.mxu1 %v3356_v35 }
 0x327   :  { %v1656_v43 = vadd.f32 %v1624_v53, %v1592_v0  ;;  %v1658_v52 = vadd.f32 %v1626_v28, %v1594_v58  ;;  %v1597_v37 = vmul.f32 %v1533_v29, %v4059_v3  ;;  %v1599_v30 = vmul.f32 %v1535_v38, %v4059_v3  ;;  %3273 = vmatprep.subr.bf16.mxu1 %v6250_v55 }
 0x328   :  { %1689 = vst [vmem:[#allocation22 + $0xc8] sm:$0xff] %v1657_v27  ;;  %1691 = vst [vmem:[#allocation22 + $0xd8] sm:$0xff] %v1659_v46  ;;  %v2529_v36 = vpack.c.bf16 %v1659_v46, %v1657_v27  ;;  %v1629_v17 = vmul.f32 %v5287_v26, %v4061_v4  ;;  %v1631_v24 = vmul.f32 %v6251_v49, %v4061_v4  ;;  %v2986_v46 = vld [vmem:[%s6254_s14] ss:$0 sm:$0xff]  ;;  %v1769_v49 = vld [vmem:[%s3885_s8 + $0x98] sm:$0xff] }
 0x329   :  { %v1596_v33 = vmul.f32 %v1532_v51, %v4059_v3  ;;  %1688 = vst [vmem:[#allocation22 + $0xc0] sm:$0xff] %v1656_v43  ;;  %1690 = vst [vmem:[#allocation22 + $0xd0] sm:$0xff] %v1658_v52  ;;  %v2528_v19 = vpack.c.bf16 %v1658_v52, %v1656_v43  ;;  %v1598_v44 = vmul.f32 %v1534_v8, %v4059_v3  ;;  %v1768_v8 = vld [vmem:[%s3885_s8 + $0x90] sm:$0xff] }
 0x32a   :  { %v1628_v34 = vmul.f32 %v6252_v23, %v4061_v4  ;;  %v1630_v41 = vmul.f32 %v6253_v12, %v4061_v4  ;;  %v1661_v10 = vadd.f32 %v1629_v17, %v1597_v37  ;;  %v1663_v1 = vadd.f32 %v1631_v24, %v1599_v30  ;;  %v1737_v30 = vld [vmem:[#allocation15 + $0x98] sm:$0xff] }
 0x32b   :  { %v6255_v37 = vmov 0   ;;  %v1798_v7 = vmul.f32 %v1734_v18, %v4059_v3  ;;  %v1799_v63 = vmul.f32 %v1735_v61, %v4059_v3  ;;  %v1830_v62 = vmul.f32 %v1766_v6, %v4061_v4 }
 0x32c   :  { %v1660_v26 = vadd.f32 %v1628_v34, %v1596_v33  ;;  %v1662_v59 = vadd.f32 %v1630_v41, %v1598_v44  ;;  %1693 = vst [vmem:[#allocation22 + $0xe8] sm:$0xff] %v1661_v10  ;;  %1695 = vst [vmem:[#allocation22 + $0xf8] sm:$0xff] %v1663_v1  ;;  %v2531_v22 = vpack.c.bf16 %v1663_v1, %v1661_v10  ;;  %v1721_v44 = vld [vmem:[#allocation15 + $0x18] sm:$0xff]  ;;  %v1752_v41 = vld [vmem:[%s3885_s8 + $0x10] sm:$0xff] }
 0x32d   :  { %v1862_v45 = vadd.f32 %v1830_v62, %v1798_v7  ;;  %v1801_v33 = vmul.f32 %v1737_v30, %v4059_v3  ;;  %v1832_v34 = vmul.f32 %v1768_v8, %v4061_v4  ;;  %v1833_v12 = vmul.f32 %v1769_v49, %v4061_v4  ;;  %v1753_v10 = vld [vmem:[%s3885_s8 + $0x18] sm:$0xff]  ;;  %v1772_v7 = vld [vmem:[%s3885_s8 + $0xb0] sm:$0xff] }
 0x32e   :  { %1692 = vst [vmem:[#allocation22 + $0xe0] sm:$0xff] %v1660_v26  ;;  %1694 = vst [vmem:[#allocation22 + $0xf0] sm:$0xff] %v1662_v59  ;;  %v2530_v0 = vpack.c.bf16 %v1662_v59, %v1660_v26  ;;  %v1785_v59 = vmul.f32 %v1721_v44, %v4059_v3  ;;  %v1819_v18 = vmul.f32 %v1755_v39, %v4061_v4  ;;  %v1743_v44 = vld [vmem:[#allocation15 + $0xc8] sm:$0xff]  ;;  %v1744_v39 = vld [vmem:[#allocation15 + $0xd0] sm:$0xff] }
 0x32f   :  { %1894 = vst [vmem:[#allocation28 + $0x80] sm:$0xff] %v1862_v45 }
 0x3e8   :  { %v3199_v58 = vpop.f32.mrb[16].mxu1 }
 0x3e9   :  { %v3200_v53 = vpop.f32.mrb[17].mxu1 }
 0x3ea   :  { %v3201_v28 = vadd.f32 %v3200_v53, %v3199_v58  ;;  %v3202_v27 = vpop.f32.mrb[18].mxu1  ;;  %v5644_v53 = vadd.f32 %v1833_v12, %v1801_v33 }
 0x3eb   :  { %v3203_v29 = vpop.f32.mrb[19].mxu1 }
 0x3ec   :  { %v3204_v38 = vadd.f32 %v3203_v29, %v3202_v27  ;;  %v2225_v43 = vadd.f32 %v3201_v28, %v2986_v46  ;;  %v1738_v28 = vld [vmem:[#allocation15 + $0xa0] sm:$0xff]  ;;  %v1739_v27 = vld [vmem:[#allocation15 + $0xa8] sm:$0xff]  ;;  %1897 = vst [vmem:[#allocation28 + $0x98] sm:$0xff] %v5644_v53 }
 0x3ee   :  { %v2228_v52 = vadd.f32 %v3204_v38, %v2986_v46  ;;  %v1770_v46 = vld [vmem:[%s3885_s8 + $0xa0] sm:$0xff] }
 0x3f0   :  { %v2267_v51 = vpack.c.bf16 %v2228_v52, %v2225_v43  ;;  %v1771_v43 = vld [vmem:[%s3885_s8 + $0xa8] sm:$0xff]  ;;  %v1802_v52 = vmul.f32 %v1738_v28, %v4059_v3 }
 0x3f1   :  { %v1835_v25 = vmul.f32 %v1771_v43, %v4061_v4  ;;  %v1759_v43 = vld [vmem:[%s3885_s8 + $0x48] sm:$0xff] }
 0x3f2   :  { %3262 = vmatmul.mubr.bf16.vlgmr.msra.gmra.mrb[20].mxu0 %v2267_v51  ;;  %v1803_v51 = vmul.f32 %v1739_v27, %v4059_v3 }
 0x3f3   :  { %2544 = vmatpush1.bf16.msra.mxu0 %v2516_v56  ;;  %2575 = vmatprep.mubr.bf16.mxu0 %v6255_v37  ;;  %v6259_v56 = vpack.c.bf16 %v6257_v32, %v6258_v20  ;;  %v1722_v37 = vld [vmem:[#allocation15 + $0x20] sm:$0xff]  ;;  %v1723_v32 = vld [vmem:[#allocation15 + $0x28] sm:$0xff] }
 0x3f4   :  { %2545 = vmatprep.subr.bf16.mxu0 %v2519_v5  ;;  %v3357_v5 = vld [vmem:[%s6256_s10 + $0x20] sm:$0xff]   ;;  %v1786_v35 = vmul.f32 %v1722_v37, %v4059_v3  ;;  %v5672_v6 = vadd.f32 %v1835_v25, %v1803_v51 }
 0x3f5   :  { %3274 = vmatpush3.bf16.msra.mxu1 %v3357_v5 }
 0x3f6   :  { %3275 = vmatprep.subr.bf16.mxu1 %v6250_v55  ;;  %1899 = vst [vmem:[#allocation28 + $0xa8] sm:$0xff] %v5672_v6 }
 0x3f7   :  { %2546 = vmatpush1.bf16.msra.mxu0 %v2518_v21  ;;  %v3358_v21 = vld [vmem:[%s6256_s10 + $0x28] sm:$0xff]  }
 0x3f8   :  { %2547 = vmatprep.subr.bf16.mxu0 %v2521_v14  ;;  %v3360_v14 = vld [vmem:[%s6256_s10 + $0x38] sm:$0xff]  }
 0x3f9   :  { %3276 = vmatpush3.bf16.msra.mxu1 %v3358_v21  ;;  %v1787_v21 = vmul.f32 %v1723_v32, %v4059_v3 }
 0x3fa   :  { %3277 = vmatprep.subr.bf16.mxu1 %v6250_v55 }
 0x3fb   :  { %2548 = vmatpush1.bf16.msra.mxu0 %v2520_v47  ;;  %v1767_v47 = vld [vmem:[%s3885_s8 + $0x88] sm:$0xff]  ;;  %v5677_v62 = vadd.f32 %v1819_v18, %v1787_v21  ;;  %v1776_v21 = vld [vmem:[%s3885_s8 + $0xd0] sm:$0xff] }
 0x3fc   :  { %2549 = vmatprep.subr.bf16.mxu0 %v2523_v16  ;;  %v1831_v16 = vmul.f32 %v1767_v47, %v4061_v4  ;;  %v1741_v47 = vld [vmem:[#allocation15 + $0xb8] sm:$0xff] }
 0x3fd   :  { %3278 = vmatpush3.bf16.msra.mxu1 %v3359_v54  ;;  %v1818_v54 = vmul.f32 %v1754_v42, %v4061_v4  ;;  %1883 = vst [vmem:[#allocation28 + $0x28] sm:$0xff] %v5677_v62 }
 0x3fe   :  { %3279 = vmatprep.subr.bf16.mxu1 %v6250_v55  ;;  %v1782_v55 = vmul.f32 %v1718_v15, %v4059_v3  ;;  %v1773_v15 = vld [vmem:[%s3885_s8 + $0xb8] sm:$0xff] }
 0x3ff   :  { %2550 = vmatpush1.bf16.msra.mxu0 %v2522_v31  ;;  %v1719_v31 = vld [vmem:[#allocation15 + $0x8] sm:$0xff] }
 0x400   :  { %2551 = vmatprep.subr.bf16.mxu0 %v2525_v11  ;;  %v1783_v50 = vmul.f32 %v1719_v31, %v4059_v3  ;;  %v1814_v11 = vmul.f32 %v1750_v13, %v4061_v4  ;;  %v1805_v31 = vmul.f32 %v1741_v47, %v4059_v3  ;;  %v1724_v13 = vld [vmem:[#allocation15 + $0x30] sm:$0xff]  ;;  %v1808_v47 = vmul.f32 %v1744_v39, %v4059_v3 }
 0x401   :  { %3280 = vmatpush3.bf16.msra.mxu1 %v3360_v14  ;;  %v1740_v14 = vld [vmem:[#allocation15 + $0xb0] sm:$0xff] }
 0x403   :  { %2552 = vmatpush1.bf16.msra.mxu0 %v2524_v9  ;;  %v1815_v9 = vmul.f32 %v1751_v60, %v4061_v4  ;;  %v1725_v60 = vld [vmem:[#allocation15 + $0x38] sm:$0xff] }
 0x404   :  { %2553 = vmatprep.subr.bf16.mxu0 %v2527_v57  ;;  %v1863_v57 = vadd.f32 %v1831_v16, %v1799_v63  ;;  %v5675_v63 = vadd.f32 %v1818_v54, %v1786_v35  ;;  %v1804_v16 = vmul.f32 %v1740_v14, %v4059_v3  ;;  %v1789_v30 = vmul.f32 %v1725_v60, %v4059_v3  ;;  %v1745_v35 = vld [vmem:[#allocation15 + $0xd8] sm:$0xff]  ;;  %v1777_v14 = vld [vmem:[%s3885_s8 + $0xd8] sm:$0xff] }
 0x405   :  { %v5625_v17 = vadd.f32 %v1815_v9, %v1783_v50  ;;  %v1837_v50 = vmul.f32 %v1773_v15, %v4061_v4  ;;  %v1757_v9 = vld [vmem:[%s3885_s8 + $0x38] sm:$0xff]  ;;  %v1841_v60 = vmul.f32 %v1777_v14, %v4061_v4 }
 0x406   :  { %1895 = vst [vmem:[#allocation28 + $0x88] sm:$0xff] %v1863_v57  ;;  %v2706_v23 = vpack.c.bf16 %v1863_v57, %v1862_v45  ;;  %v1836_v45 = vmul.f32 %v1772_v7, %v4061_v4  ;;  %v1788_v57 = vmul.f32 %v1724_v13, %v4059_v3  ;;  %1882 = vst [vmem:[#allocation28 + $0x20] sm:$0xff] %v5675_v63  ;;  %v1728_v15 = vld [vmem:[#allocation15 + $0x50] sm:$0xff] }
 0x407   :  { %2554 = vmatpush1.bf16.msra.mxu0 %v2526_v40  ;;  %v1736_v40 = vld [vmem:[#allocation15 + $0x90] sm:$0xff]  ;;  %1879 = vst [vmem:[#allocation28 + $0x8] sm:$0xff] %v5625_v17  ;;  %v1821_v49 = vmul.f32 %v1757_v9, %v4061_v4  ;;  %v5700_v33 = vadd.f32 %v1837_v50, %v1805_v31  ;;  %v1809_v7 = vmul.f32 %v1745_v35, %v4059_v3  ;;  %v1697_v9 = vld [vmem:[%s6247_s9] sm:$0x3] }
 0x408   :  { %2555 = vmatprep.subr.bf16.mxu0 %v2529_v36  ;;  %v5623_v36 = vadd.f32 %v1814_v11, %v1782_v55  ;;  %v1800_v24 = vmul.f32 %v1736_v40, %v4059_v3  ;;  %3223 = vmatprep.subr.bf16.mxu1 %v2706_v23  ;;  %v1756_v11 = vld [vmem:[%s3885_s8 + $0x30] sm:$0xff]  ;;  %v1774_v23 = vld [vmem:[%s3885_s8 + $0xc0] sm:$0xff]  ;;  %v1840_v13 = vmul.f32 %v1776_v21, %v4061_v4  ;;  %v1761_v50 = vld [vmem:[%s3885_s8 + $0x58] sm:$0xff] }
 0x409   :  { %v1820_v8 = vmul.f32 %v1756_v11, %v4061_v4  ;;  %v5705_v12 = vadd.f32 %v1821_v49, %v1789_v30  ;;  %1901 = vst [vmem:[#allocation28 + $0xb8] sm:$0xff] %v5700_v33  ;;  %v1838_v28 = vmul.f32 %v1774_v23, %v4061_v4  ;;  %v1792_v11 = vmul.f32 %v1728_v15, %v4059_v3  ;;  %v1747_v23 = vld [vmem:[#allocation15 + $0xe8] sm:$0xff] }
 0x40a   :  { %1878 = vst [vmem:[#allocation28] sm:$0xff] %v5623_v36  ;;  %v5642_v58 = vadd.f32 %v1832_v34, %v1800_v24  ;;  %v5698_v24 = vadd.f32 %v1836_v45, %v1804_v16  ;;  %v1729_v16 = vld [vmem:[#allocation15 + $0x58] sm:$0xff]  ;;  %v1760_v45 = vld [vmem:[%s3885_s8 + $0x50] sm:$0xff]  ;;  %v5754_v49 = vadd.f32 %v1840_v13, %v1808_v47 }
 0x40b   :  { %2556 = vmatpush1.bf16.msra.mxu0 %v2528_v19  ;;  %v1720_v19 = vld [vmem:[#allocation15 + $0x10] sm:$0xff]  ;;  %v5703_v34 = vadd.f32 %v1820_v8, %v1788_v57  ;;  %1885 = vst [vmem:[#allocation28 + $0x38] sm:$0xff] %v5705_v12  ;;  %v1793_v57 = vmul.f32 %v1729_v16, %v4059_v3  ;;  %v1824_v30 = vmul.f32 %v1760_v45, %v4061_v4  ;;  %v1749_v13 = vld [vmem:[#allocation15 + $0xf8] sm:$0xff] }
 0x40c   :  { %2557 = vmatprep.subr.bf16.mxu0 %v2531_v22  ;;  %v1784_v1 = vmul.f32 %v1720_v19, %v4059_v3  ;;  %v1816_v22 = vmul.f32 %v1752_v41, %v4061_v4  ;;  %1896 = vst [vmem:[#allocation28 + $0x90] sm:$0xff] %v5642_v58  ;;  %v1742_v19 = vld [vmem:[#allocation15 + $0xc0] sm:$0xff]  ;;  %1900 = vst [vmem:[#allocation28 + $0xb0] sm:$0xff] %v5698_v24  ;;  %v1825_v8 = vmul.f32 %v1761_v50, %v4061_v4  ;;  %v1748_v16 = vld [vmem:[#allocation15 + $0xf0] sm:$0xff] }
 0x40d   :  { %v1775_v41 = vld [vmem:[%s3885_s8 + $0xc8] sm:$0xff]  ;;  %1884 = vst [vmem:[#allocation28 + $0x30] sm:$0xff] %v5703_v34  ;;  %1904 = vst [vmem:[#allocation28 + $0xd0] sm:$0xff] %v5754_v49  ;;  %v1781_v50 = vld [vmem:[%s3885_s8 + $0xf8] sm:$0xff] }
 0x40e   :  { %v5647_v29 = vadd.f32 %v1816_v22, %v1784_v1  ;;  %v1807_v1 = vmul.f32 %v1743_v44, %v4059_v3  ;;  %v1727_v22 = vld [vmem:[#allocation15 + $0x48] sm:$0xff]  ;;  %v1839_v27 = vmul.f32 %v1775_v41, %v4061_v4  ;;  %v1746_v44 = vld [vmem:[#allocation15 + $0xe0] sm:$0xff]  ;;  %v1778_v41 = vld [vmem:[%s3885_s8 + $0xe0] sm:$0xff] }
 0x40f   :  { %2558 = vmatpush1.bf16.msra.mxu0 %v2530_v0  ;;  %v1817_v0 = vmul.f32 %v1753_v10, %v4061_v4  ;;  %v1806_v10 = vmul.f32 %v1742_v19, %v4059_v3  ;;  %v1791_v37 = vmul.f32 %v1727_v22, %v4059_v3  ;;  %v5756_v19 = vadd.f32 %v1841_v60, %v1809_v7  ;;  %v1780_v60 = vld [vmem:[%s3885_s8 + $0xf0] sm:$0xff] }
 0x410   :  { %1880 = vst [vmem:[#allocation28 + $0x10] sm:$0xff] %v5647_v29  ;;  %v5728_v42 = vadd.f32 %v1839_v27, %v1807_v1  ;;  %v5761_v1 = vadd.f32 %v1825_v8, %v1793_v57  ;;  %v1810_v22 = vmul.f32 %v1746_v44, %v4059_v3  ;;  %v1731_v27 = vld [vmem:[#allocation15 + $0x68] sm:$0xff]  ;;  %v1813_v57 = vmul.f32 %v1749_v13, %v4059_v3  ;;  %v1732_v8 = vld [vmem:[#allocation15 + $0x70] sm:$0xff]  ;;  %v1733_v44 = vld [vmem:[#allocation15 + $0x78] sm:$0xff] }
 0x411   :  { %v5649_v38 = vadd.f32 %v1817_v0, %v1785_v59  ;;  %v1726_v59 = vld [vmem:[#allocation15 + $0x40] sm:$0xff]  ;;  %v5726_v25 = vadd.f32 %v1838_v28, %v1806_v10  ;;  %v5759_v10 = vadd.f32 %v1824_v30, %v1792_v11  ;;  %1905 = vst [vmem:[#allocation28 + $0xd8] sm:$0xff] %v5756_v19  ;;  %v1795_v21 = vmul.f32 %v1731_v27, %v4059_v3  ;;  %v2987_v13 = vld [vmem:[%s6260_s11] ss:$0 sm:$0xff] }
 0x412   :  { %2576 = vmatmul.mubr.bf16.vlgmr.msra.gmra.mrb[24].mxu0 %v6259_v56  ;;  %v1834_v56 = vmul.f32 %v1770_v46, %v4061_v4  ;;  %v1758_v46 = vld [vmem:[%s3885_s8 + $0x40] sm:$0xff]  ;;  %1903 = vst [vmem:[#allocation28 + $0xc8] sm:$0xff] %v5728_v42  ;;  %v1730_v28 = vld [vmem:[#allocation15 + $0x60] sm:$0xff]  ;;  %1889 = vst [vmem:[#allocation28 + $0x58] sm:$0xff] %v5761_v1  ;;  %v1812_v11 = vmul.f32 %v1748_v16, %v4059_v3  ;;  %v1844_v30 = vmul.f32 %v1780_v60, %v4061_v4 }
 0x413   :  { %1881 = vst [vmem:[#allocation28 + $0x18] sm:$0xff] %v5649_v38  ;;  %v1822_v32 = vmul.f32 %v1758_v46, %v4061_v4  ;;  %1902 = vst [vmem:[#allocation28 + $0xc0] sm:$0xff] %v5726_v25  ;;  %v1794_v35 = vmul.f32 %v1730_v28, %v4059_v3  ;;  %v1765_v28 = vld [vmem:[%s3885_s8 + $0x78] sm:$0xff]  ;;  %v1796_v27 = vmul.f32 %v1732_v8, %v4059_v3 }
 0x414   :  { %v5670_v61 = vadd.f32 %v1834_v56, %v1802_v52  ;;  %v1790_v52 = vmul.f32 %v1726_v59, %v4059_v3  ;;  %v1823_v56 = vmul.f32 %v1759_v43, %v4061_v4  ;;  %v1779_v59 = vld [vmem:[%s3885_s8 + $0xe8] sm:$0xff]  ;;  %v1811_v43 = vmul.f32 %v1747_v23, %v4059_v3  ;;  %1888 = vst [vmem:[#allocation28 + $0x50] sm:$0xff] %v5759_v10 }
 0x416   :  { %1898 = vst [vmem:[#allocation28 + $0xa0] sm:$0xff] %v5670_v61  ;;  %v5731_v54 = vadd.f32 %v1822_v32, %v1790_v52  ;;  %v5733_v18 = vadd.f32 %v1823_v56, %v1791_v37  ;;  %v1842_v52 = vmul.f32 %v1778_v41, %v4061_v4  ;;  %v1843_v37 = vmul.f32 %v1779_v59, %v4061_v4  ;;  %v1762_v32 = vld [vmem:[%s3885_s8 + $0x60] sm:$0xff]  ;;  %v1763_v56 = vld [vmem:[%s3885_s8 + $0x68] sm:$0xff] }
 0x417   :  { %v1826_v14 = vmul.f32 %v1762_v32, %v4061_v4  ;;  %v1827_v15 = vmul.f32 %v1763_v56, %v4061_v4  ;;  %v1845_v59 = vmul.f32 %v1781_v50, %v4061_v4  ;;  %v1829_v32 = vmul.f32 %v1765_v28, %v4061_v4 }
 0x418   :  { %1886 = vst [vmem:[#allocation28 + $0x40] sm:$0xff] %v5731_v54  ;;  %1887 = vst [vmem:[#allocation28 + $0x48] sm:$0xff] %v5733_v18  ;;  %v5781_v47 = vadd.f32 %v1842_v52, %v1810_v22  ;;  %v5783_v7 = vadd.f32 %v1843_v37, %v1811_v43  ;;  %v1764_v22 = vld [vmem:[%s3885_s8 + $0x70] sm:$0xff]  ;;  %v5804_v43 = vadd.f32 %v1844_v30, %v1812_v11  ;;  %s6263_s8 = sld [smem:[#allocation48_spill]] }
 0x419   :  { %v5787_v45 = vadd.f32 %v1826_v14, %v1794_v35  ;;  %v5797_v41 = vadd.f32 %v1827_v15, %v1795_v21  ;;  %v1797_v52 = vmul.f32 %v1733_v44, %v4059_v3  ;;  %v1828_v37 = vmul.f32 %v1764_v22, %v4061_v4 }
 0x41a   :  { %1906 = vst [vmem:[#allocation28 + $0xe0] sm:$0xff] %v5781_v47  ;;  %1907 = vst [vmem:[#allocation28 + $0xe8] sm:$0xff] %v5783_v7  ;;  %v5812_v35 = vadd.f32 %v1845_v59, %v1813_v57 }
 0x41b   :  { %1890 = vst [vmem:[#allocation28 + $0x60] sm:$0xff] %v5787_v45  ;;  %1891 = vst [vmem:[#allocation28 + $0x68] sm:$0xff] %v5797_v41  ;;  %v5815_v21 = vadd.f32 %v1828_v37, %v1796_v27  ;;  %v5817_v14 = vadd.f32 %v1829_v32, %v1797_v52 }
 0x41c   :  { %1908 = vst [vmem:[#allocation28 + $0xf0] sm:$0xff] %v5804_v43  ;;  %1909 = vst [vmem:[#allocation28 + $0xf8] sm:$0xff] %v5812_v35 }
 0x41d   :  { %6261 = vst [vmem:[#allocation60_spill] sm:$0xff] %v5815_v21  ;;  %1892 = vst [vmem:[#allocation28 + $0x70] sm:$0xff] %v5815_v21 }
 0x41e   :  { %1893 = vst [vmem:[#allocation28 + $0x78] sm:$0xff] %v5817_v14 }
 0x4c5   :  { %v2356_v60 = vpop.f32.mrb[20].mxu0 }
 0x4c6   :  { %v2357_v50 = vadd.f32 %v2987_v13, %v2356_v60  ;;  %v3263_v11 = vpop.f32.mrb[21].mxu0 }
 0x4c7   :  { %v2359_v57 = vpop.f32.mrb[22].mxu0  ;;  %v1696_v11 = vld [vmem:[#allocation10] sm:$0x3] }
 0x4c8   :  { %v2363_v30 = vrot.slane %v2357_v50, 4  ;;  %v2360_v8 = vadd.f32 %v2987_v13, %v2359_v57  ;;  %v3264_v44 = vpop.f32.mrb[23].mxu0 }
 0x4ca   :  { %v2364_v59 = vadd.f32 %v2363_v30, %v2357_v50  ;;  %v2369_v22 = vrot.slane %v2360_v8, 4 }
 0x4cc   :  { %v2365_v28 = vrot.slane %v2364_v59, 2  ;;  %v2370_v27 = vadd.f32 %v2369_v22, %v2360_v8  ;;  %v1699_v22 = vmul.f32 %v1697_v9, %v4061_v4 }
 0x4ce   :  { %v2366_v52 = vadd.f32 %v2365_v28, %v2364_v59  ;;  %v2371_v37 = vrot.slane %v2370_v27, 2  ;;  %v1698_v59 = vmul.f32 %v1696_v11, %v4059_v3 }
 0x4d0   :  { %v2367_v32 = vrot.slane %v2366_v52, 1  ;;  %v2372_v15 = vadd.f32 %v2371_v37, %v2370_v27 }
 0x4d2   :  { %v2368_v56 = vadd.f32 %v2367_v32, %v2366_v52  ;;  %v2373_v23 = vrot.slane %v2372_v15, 1 }
 0x4d4   :  { %v2375_v16 = vmul.f32 0.125, %v2368_v56  ;;  %v2374_v39 = vadd.f32 %v2373_v23, %v2372_v15 }
 0x4d6   :  { %v5827_v46 = vsub.f32 %v2357_v50, %v2375_v16  ;;  %v2376_v60 = vmul.f32 0.125, %v2374_v39  ;;  %v5838_v39 = vadd.f32 %v1699_v22, %v1698_v59 }
 0x4d8   :  { %v2379_v13 = vmul.f32 %v5827_v46, %v5827_v46  ;;  %v5832_v57 = vsub.f32 %v2360_v8, %v2376_v60  ;;  %6262 = vst [vmem:[#allocation65_spill] sm:$0xff] %v5838_v39  ;;  %v2536_v8 = vrot.slane %v5838_v39, %v5361_v48  ;;  %v2540_v37 = vrot.slane %v5838_v39, %v5364_v2 }
 0x4da   :  { %v2381_v30 = vrot.slane %v2379_v13, 4  ;;  %v2380_v44 = vmul.f32 %v5832_v57, %v5832_v57 }
 0x4dc   :  { %v2382_v56 = vadd.f32 %v2381_v30, %v2379_v13  ;;  %v2387_v23 = vrot.slane %v2380_v44, 4 }
 0x4de   :  { %v2383_v15 = vrot.slane %v2382_v56, 2  ;;  %v2388_v16 = vadd.f32 %v2387_v23, %v2380_v44 }
 0x4e0   :  { %v2384_v50 = vadd.f32 %v2383_v15, %v2382_v56  ;;  %v2389_v28 = vrot.slane %v2388_v16, 2 }
 0x4e2   :  { %v2385_v27 = vrot.slane %v2384_v50, 1  ;;  %v2390_v52 = vadd.f32 %v2389_v28, %v2388_v16 }
 0x4e4   :  { %v2386_v32 = vadd.f32 %v2385_v27, %v2384_v50  ;;  %v2391_v60 = vrot.slane %v2390_v52, 1 }
 0x4e5   :  { %v2577_v11 = vpop.f32.mrb[24].mxu0 }
 0x4e6   :  { %v2393_v9 = vmul.f32 0.125, %v2386_v32  ;;  %v2392_v13 = vadd.f32 %v2391_v60, %v2390_v52  ;;  %v2578_v30 = vadd.f32 %v2577_v11, %v2536_v8  ;;  %v2579_v31 = vpop.f32.mrb[25].mxu0 }
 0x4e7   :  { %v2580_v44 = vadd.f32 %v2579_v31, %v2540_v37  ;;  %v2581_v59 = vpop.f32.mrb[26].mxu0 }
 0x4e8   :  { %v2395_v22 = vadd.f32 1e-05, %v2393_v9  ;;  %v2394_v56 = vmul.f32 0.125, %v2392_v13  ;;  %v2586_v23 = vrot.slane %v2578_v30, 4  ;;  %v2582_v15 = vadd.f32 %v2581_v59, %v2536_v8  ;;  %v2583_v16 = vpop.f32.mrb[27].mxu0 }
 0x4e9   :  { %v2592_v28 = vrot.slane %v2580_v44, 4  ;;  %v2584_v51 = vadd.f32 %v2583_v16, %v2540_v37 }
 0x4ea   :  { %3369 = vrsqrt.f32 %v2395_v22  ;;  %v2396_v0 = vadd.f32 1e-05, %v2394_v56  ;;  %v2587_v40 = vadd.f32 %v2586_v23, %v2578_v30  ;;  %v2598_v55 = vrot.slane %v2582_v15, 4 }
 0x4eb   :  { %v2593_v50 = vadd.f32 %v2592_v28, %v2580_v44  ;;  %v2604_v27 = vrot.slane %v2584_v51, 4 }
 0x4ec   :  { %3371 = vrsqrt.f32 %v2396_v0  ;;  %v2588_v32 = vrot.slane %v2587_v40, 2  ;;  %v2599_v52 = vadd.f32 %v2598_v55, %v2582_v15  ;;  %v2996_v0 = vld [vmem:[%s6263_s8] ss:$0 sm:$0xff] }
 0x4ed   :  { %v2594_v60 = vrot.slane %v2593_v50, 2  ;;  %v2605_v31 = vadd.f32 %v2604_v27, %v2584_v51 }
 0x4ee   :  { %v2589_v11 = vadd.f32 %v2588_v32, %v2587_v40  ;;  %v2600_v9 = vrot.slane %v2599_v52, 2 }
 0x4ef   :  { %v2595_v13 = vadd.f32 %v2594_v60, %v2593_v50  ;;  %v2606_v5 = vrot.slane %v2605_v31, 2 }
 0x4f0   :  { %v2590_v8 = vrot.slane %v2589_v11, 1  ;;  %v2601_v59 = vadd.f32 %v2600_v9, %v2599_v52  ;;  %v2997_v52 = vld [vmem:[%s6264_s16] ss:$0 sm:$0xff] }
 0x4f1   :  { %v2596_v20 = vrot.slane %v2595_v13, 1  ;;  %v2607_v37 = vadd.f32 %v2606_v5, %v2605_v31 }
 0x4f2   :  { %v2591_v22 = vadd.f32 %v2590_v8, %v2589_v11  ;;  %v2602_v56 = vrot.slane %v2601_v59, 1 }
 0x4f3   :  { %v2597_v23 = vadd.f32 %v2596_v20, %v2595_v13  ;;  %v2608_v16 = vrot.slane %v2607_v37, 1 }
 0x4f4   :  { %v3370_v28 = vpop.eup %3369  ;;  %v2610_v26 = vmul.f32 0.125, %v2591_v22  ;;  %v2603_v55 = vadd.f32 %v2602_v56, %v2601_v59 }
 0x4f5   :  { %v2399_v39 = vmul.f32 %v3370_v28, %v5827_v46  ;;  %v2611_v27 = vmul.f32 0.125, %v2597_v23  ;;  %v2609_v40 = vadd.f32 %v2608_v16, %v2607_v37 }
 0x4f6   :  { %v3372_v32 = vpop.eup %3371  ;;  %v5846_v50 = vsub.f32 %v2578_v30, %v2610_v26  ;;  %v2612_v60 = vmul.f32 0.125, %v2603_v55 }
 0x4f7   :  { %v2407_v9 = vmul.f32 %v2996_v0, %v2399_v39  ;;  %v2400_v5 = vmul.f32 %v3372_v32, %v5832_v57  ;;  %v5850_v31 = vsub.f32 %v2580_v44, %v2611_v27  ;;  %v2613_v20 = vmul.f32 0.125, %v2609_v40 }
 0x4f8   :  { %v2618_v11 = vmul.f32 %v5846_v50, %v5846_v50  ;;  %v5854_v13 = vsub.f32 %v2582_v15, %v2612_v60 }
 0x4f9   :  { %v2408_v8 = vmul.f32 %v2996_v0, %v2400_v5  ;;  %v2619_v46 = vmul.f32 %v5850_v31, %v5850_v31  ;;  %v5858_v59 = vsub.f32 %v2584_v51, %v2613_v20  ;;  %v2415_v26 = vadd.f32 %v2997_v52, %v2407_v9 }
 0x4fa   :  { %v2622_v30 = vrot.slane %v2618_v11, 4  ;;  %v2620_v39 = vmul.f32 %v5854_v13, %v5854_v13 }
 0x4fb   :  { %v2628_v57 = vrot.slane %v2619_v46, 4  ;;  %v2621_v44 = vmul.f32 %v5858_v59, %v5858_v59  ;;  %v2416_v37 = vadd.f32 %v2997_v52, %v2408_v8  ;;  %v2417_v16 = vmax.f32 %v2415_v26, 0.0 }
 0x4fc   :  { %v2623_v22 = vadd.f32 %v2622_v30, %v2618_v11  ;;  %v2634_v56 = vrot.slane %v2620_v39, 4  ;;  %v6265_v52 = vpack.c.bf16 %v5625_v17, %v5623_v36  ;;  %v1706_v36 = vld [vmem:[#allocation12] sm:$0x3] }
 0x4fd   :  { %v2629_v15 = vadd.f32 %v2628_v57, %v2619_v46  ;;  %v2640_v23 = vrot.slane %v2621_v44, 4  ;;  %v2418_v28 = vmax.f32 %v2416_v37, 0.0  ;;  %v6266_v46 = vpack.c.bf16 %v5644_v53, %v5642_v58  ;;  %v1707_v58 = vld [vmem:[%s6248_s13] sm:$0x3] }
 0x4fe   :  { %v2624_v0 = vrot.slane %v2623_v22, 2  ;;  %v2635_v55 = vadd.f32 %v2634_v56, %v2620_v39 }
 0x4ff   :  { %v2630_v51 = vrot.slane %v2629_v15, 2  ;;  %v2641_v27 = vadd.f32 %v2640_v23, %v2621_v44  ;;  %v2419_v40 = vpack.c.bf16 %v2418_v28, %v2417_v16 }
 0x500   :  { %v2625_v32 = vadd.f32 %v2624_v0, %v2623_v22  ;;  %v2636_v60 = vrot.slane %v2635_v55, 2  ;;  %v6267_v22 = vpack.c.bf16 %v5649_v38, %v5647_v29  ;;  %v1712_v29 = vld [vmem:[#allocation13] sm:$0x3]  ;;  %v1713_v38 = vld [vmem:[%s6249_s21] sm:$0x3] }
 0x501   :  { %v2631_v9 = vadd.f32 %v2630_v51, %v2629_v15  ;;  %v2642_v5 = vrot.slane %v2641_v27, 2  ;;  %3282 = vmatmul.mubr.bf16.vlgmr.msra.gmra.mrb[20].mxu1 %v2419_v40  ;;  %v6268_v15 = vpack.c.bf16 %v5672_v6, %v5670_v61  ;;  %v1709_v51 = vmul.f32 %v1707_v58, %v4061_v4 }
 0x502   :  { %v2626_v20 = vrot.slane %v2625_v32, 1  ;;  %v2637_v21 = vadd.f32 %v2636_v60, %v2635_v55  ;;  %3224 = vmatpush3.bf16.msra.mxu1 %v6265_v52  ;;  %v1708_v55 = vmul.f32 %v1706_v36, %v4059_v3  ;;  %v6270_v6 = vpack.c.bf16 %v5700_v33, %v5698_v24  ;;  %v1911_v36 = vld [vmem:[%s6254_s14] sm:$0x1] }
 0x503   :  { %v2632_v11 = vrot.slane %v2631_v9, 1  ;;  %v2643_v8 = vadd.f32 %v2642_v5, %v2641_v27  ;;  %3225 = vmatprep.subr.bf16.mxu1 %v6266_v46  ;;  %v1714_v27 = vmul.f32 %v1712_v29, %v4059_v3  ;;  %v1715_v40 = vmul.f32 %v1713_v38, %v4061_v4 }
 0x504   :  { %v2627_v26 = vadd.f32 %v2626_v20, %v2625_v32  ;;  %v2638_v30 = vrot.slane %v2637_v21, 1  ;;  %v6272_v32 = vpack.c.bf16 %v5728_v42, %v5726_v25  ;;  %v6273_v24 = vpack.c.bf16 %v5733_v18, %v5731_v54 }
 0x505   :  { %v2633_v39 = vadd.f32 %v2632_v11, %v2631_v9  ;;  %v2644_v57 = vrot.slane %v2643_v8, 1  ;;  %v5896_v60 = vadd.f32 %v1715_v40, %v1714_v27  ;;  %v6274_v9 = vpack.c.bf16 %v5756_v19, %v5754_v49 }
 0x506   :  { %v2646_v44 = vmul.f32 0.125, %v2627_v26  ;;  %v2639_v37 = vadd.f32 %v2638_v30, %v2637_v21  ;;  %3226 = vmatpush3.bf16.msra.mxu1 %v6267_v22  ;;  %v6269_v21 = vpack.c.bf16 %v5677_v62, %v5675_v63  ;;  %v6271_v63 = vpack.c.bf16 %v5705_v12, %v5703_v34  ;;  %v1910_v22 = vld [vmem:[#allocation16] sm:$0x1] }
 0x507   :  { %v2647_v17 = vmul.f32 0.125, %v2633_v39  ;;  %v2645_v56 = vadd.f32 %v2644_v57, %v2643_v8  ;;  %3227 = vmatprep.subr.bf16.mxu1 %v6268_v15  ;;  %v5891_v62 = vadd.f32 %v1709_v51, %v1708_v55  ;;  %v2681_v42 = vrot.slane %v5896_v60, %v5361_v48 }
 0x508   :  { %v2650_v53 = vadd.f32 1e-05, %v2646_v44  ;;  %v2648_v23 = vmul.f32 0.125, %v2639_v37  ;;  %v6275_v18 = vpack.c.bf16 %v5761_v1, %v5759_v10  ;;  %v2685_v49 = vrot.slane %v5896_v60, %v5364_v2 }
 0x509   :  { %v2651_v16 = vadd.f32 1e-05, %v2647_v17  ;;  %v2649_v28 = vmul.f32 0.125, %v2645_v56  ;;  %v2666_v33 = vrot.slane %v5891_v62, %v5361_v48  ;;  %v2670_v12 = vrot.slane %v5891_v62, %v5364_v2  ;;  %v2998_v56 = vld [vmem:[%s6279_s18] ss:$0 sm:$0xff] }
 0x50a   :  { %3373 = vrsqrt.f32 %v2650_v53  ;;  %v2652_v0 = vadd.f32 1e-05, %v2648_v23  ;;  %3228 = vmatpush3.bf16.msra.mxu1 %v6269_v21  ;;  %v6277_v10 = vpack.c.bf16 %v5797_v41, %v5787_v45  ;;  %v6278_v30 = vpack.c.bf16 %v5812_v35, %v5804_v43 }
 0x50b   :  { %3375 = vrsqrt.f32 %v2651_v16  ;;  %v2653_v61 = vadd.f32 1e-05, %v2649_v28  ;;  %3229 = vmatprep.subr.bf16.mxu1 %v6270_v6  ;;  %v1912_v43 = vmul.f32 %v1910_v22, %v4059_v3  ;;  %v1913_v35 = vmul.f32 %v1911_v36, %v4061_v4 }
 0x50c   :  { %3377 = vrsqrt.f32 %v2652_v0 }
 0x50d   :  { %3379 = vrsqrt.f32 %v2653_v61  ;;  %v1914_v17 = vadd.f32 %v1913_v35, %v1912_v43 }
 0x50e   :  { %3230 = vmatpush3.bf16.msra.mxu1 %v6271_v63 }
 0x50f   :  { %3231 = vmatprep.subr.bf16.mxu1 %v6272_v32  ;;  %1915 = vst [vmem:[#allocation29] sm:$0x1] %v1914_v17  ;;  %v2718_v29 = vrot.slane %v1914_v17, %v5361_v48 }
 0x512   :  { %3232 = vmatpush3.bf16.msra.mxu1 %v6273_v24 }
 0x513   :  { %3233 = vmatprep.subr.bf16.mxu1 %v6274_v9 }
 0x514   :  { %v3374_v34 = vpop.eup %3373 }
 0x515   :  { %v3376_v5 = vpop.eup %3375  ;;  %v2658_v25 = vmul.f32 %v3374_v34, %v5846_v50  ;;  %v6276_v50 = vpack.c.bf16 %v5783_v7, %v5781_v47 }
 0x516   :  { %v3378_v20 = vpop.eup %3377  ;;  %v2659_v54 = vmul.f32 %v3376_v5, %v5850_v31  ;;  %3234 = vmatpush3.bf16.msra.mxu1 %v6275_v18 }
 0x517   :  { %v3380_v19 = vpop.eup %3379  ;;  %v2673_v52 = vmul.f32 %v2666_v33, %v2658_v25  ;;  %v2660_v11 = vmul.f32 %v3378_v20, %v5854_v13  ;;  %3235 = vmatprep.subr.bf16.mxu1 %v6276_v50 }
 0x518   :  { %v2661_v8 = vmul.f32 %v3380_v19, %v5858_v59  ;;  %v2674_v46 = vmul.f32 %v2670_v12, %v2659_v54  ;;  %v6280_v59 = vld [vmem:[#allocation60_spill] sm:$0xff] }
 0x519   :  { %v2675_v26 = vmul.f32 %v2666_v33, %v2660_v11  ;;  %v2688_v31 = vadd.f32 %v2681_v42, %v2673_v52  ;;  %v6281_v57 = vpack.c.bf16 %v5817_v14, %v6280_v59 }
 0x51a   :  { %3236 = vmatpush3.bf16.msra.mxu1 %v6277_v10  ;;  %v2676_v1 = vmul.f32 %v2670_v12, %v2661_v8  ;;  %v2689_v2 = vadd.f32 %v2685_v49, %v2674_v46 }
 0x51b   :  { %3237 = vmatprep.subr.bf16.mxu1 %v6278_v30  ;;  %v2690_v13 = vadd.f32 %v2681_v42, %v2675_v26  ;;  %v2692_v47 = vmax.f32 %v2688_v31, 0.0 }
 0x51c   :  { %v2691_v39 = vadd.f32 %v2685_v49, %v2676_v1  ;;  %v2693_v44 = vmax.f32 %v2689_v2, 0.0  ;;  %v1498_v1 = vld [vmem:[#allocation7] sm:$0x1] }
 0x51d   :  { %v2694_v7 = vmax.f32 %v2690_v13, 0.0  ;;  %v1499_v2 = vld [vmem:[%s3860_s17] sm:$0x1]  ;;  %v1500_v30 = vmul.f32 %v1498_v1, %v4059_v3  ;;  %s3573_s17 = scalar_lea.vmem %s2846_s4, 16 }
 0x51e   :  { %3238 = vmatpush3.bf16.msra.mxu1 %v6281_v57  ;;  %v2695_v37 = vmax.f32 %v2691_v39, 0.0  ;;  %v1501_v13 = vmul.f32 %v1499_v2, %v4061_v4  ;;  %p3574_p8 = scmp.ne.s32.totalorder %s2846_s4, %s3573_s17  ;;  %p3579_p10 = scmp.lt.s32.totalorder %s3577_s6, %s3573_s17 }
 0x51f   :  { %v2696_v45 = vpack.c.bf16 %v2694_v7, %v2692_v47  ;;  %v6282_v47 = vlaneseq  ;;  %v6283_v7 = vld [vmem:[#allocation65_spill] sm:$0xff] }
 0x520   :  { %v2697_v41 = vpack.c.bf16 %v2695_v37, %v2693_v44  ;;  %v1502_v39 = vadd.f32 %v1501_v13, %v1500_v30  ;;  %p3580_p11 = por %p3579_p10, %p3578_p9 }
 0x521   :  { %vm1703_vm2 = vcmp.lt.s32.totalorder %v6282_v47, 256 }
 0x522   :  { %2752 = vmatprep.mubr.bf16.mxu1 %v2697_v41  ;;  %1503 = vst [vmem:[#allocation20] sm:$0x1] %v1502_v39  ;;  %1705 = vst.msk [vmem:[#allocation23] sm:$0x3] %vm1703_vm2, %v6283_v7  ;;  %p3581_p12 = pnand %p3580_p11, %p3574_p8 }
 0x523   :  { %2753 = vmatmul.mubr.bf16.vlgmr.msra.gmra.mrb[24].mxu1 %v2696_v45  ;;  %1711 = vst.msk [vmem:[#allocation25] sm:$0x3] %vm1703_vm2, %v5891_v62  ;;  %1717 = vst.msk [vmem:[#allocation26] sm:$0x3] %vm1703_vm2, %v5896_v60 }
 0x5d4   :  { %v2508_v15 = vpop.f32.mrb[20].mxu1 }
 0x5d5   :  { %v2509_v58 = vadd.f32 %v2998_v56, %v2508_v15  ;;  %v3283_v53 = vpop.f32.mrb[21].mxu1 }
 0x5d6   :  { %v2511_v14 = vpop.f32.mrb[22].mxu1 }
 0x5d7   :  { %v2512_v23 = vadd.f32 %v2998_v56, %v2511_v14  ;;  %v3284_v16 = vpop.f32.mrb[23].mxu1  ;;  %v2761_v28 = vmul.f32 %v2509_v58, %v2509_v58 }
 0x5d9   :  { %2762 = vadd.xlane.f32.xlu0 %v2761_v28  ;;  %v2787_v0 = vmul.f32 %v2512_v23, %v2512_v23 }
 0x5dd   :  { %2788 = vadd.xlane.f32.xlu0 %v2787_v0 }
 0x5f6   :  { %v3239_v21 = vpop.f32.mrb[24].mxu1 }
 0x5f7   :  { %v3240_v38 = vpop.f32.mrb[25].mxu1 }
 0x5f8   :  { %v3241_v55 = vadd.f32 %v3240_v38, %v3239_v21  ;;  %v3242_v51 = vpop.f32.mrb[26].mxu1 }
 0x5f9   :  { %v3243_v61 = vpop.f32.mrb[27].mxu1 }
 0x5fa   :  { %v2755_v6 = vadd.f32 %v3241_v55, %v2718_v29  ;;  %v3244_v27 = vadd.f32 %v3243_v61, %v3242_v51 }
 0x5fc   :  { %v2758_v40 = vadd.f32 %v3244_v27, %v2718_v29  ;;  %v2793_v63 = vmul.f32 %v2755_v6, %v2512_v23  ;;  %v2790_v33 = vmul.f32 %v2755_v6, %v2755_v6 }
 0x5fe   :  { %v2767_v32 = vmul.f32 %v2758_v40, %v2509_v58  ;;  %v2764_v24 = vmul.f32 %v2758_v40, %v2758_v40 }
 0x600   :  { %2768 = vadd.xlane.f32.xlu0 %v2767_v32  ;;  %2765 = vadd.xlane.f32.xlu1 %v2764_v24 }
 0x604   :  { %2791 = vadd.xlane.f32.xlu1 %v2790_v33 }
 0x608   :  { %2794 = vadd.xlane.f32.xlu1 %v2793_v63 }
 0x666   :  { %v2763_v9 = vpop.xlane.xlu0 %2762 }
 0x667   :  { %v2770_v34 = vmax.f32 %v2763_v9, 1e-24 }
 0x669   :  { %3381 = vrsqrt.f32 %v2770_v34 }
 0x66a   :  { %v2789_v12 = vpop.xlane.xlu0 %2788 }
 0x66b   :  { %v2796_v48 = vmax.f32 %v2789_v12, 1e-24 }
 0x673   :  { %v3382_v18 = vpop.eup %3381 }
 0x68d   :  { %v2766_v5 = vpop.xlane.xlu1 %2765  ;;  %v2769_v54 = vpop.xlane.xlu0 %2768 }
 0x68e   :  { %v2773_v25 = vmax.f32 %v2766_v5, 1e-24  ;;  %v2772_v49 = vmul.f32 %v3382_v18, %v2769_v54 }
 0x690   :  { %3383 = vrsqrt.f32 %v2773_v25 }
 0x691   :  { %v2792_v42 = vpop.xlane.xlu1 %2791  ;;  %3385 = vrsqrt.f32 %v2796_v48 }
 0x692   :  { %v2799_v20 = vmax.f32 %v2792_v42, 1e-24 }
 0x694   :  { %3387 = vrsqrt.f32 %v2799_v20 }
 0x695   :  { %v2795_v52 = vpop.xlane.xlu1 %2794 }
 0x69a   :  { %v3384_v19 = vpop.eup %3383 }
 0x69b   :  { %v2775_v11 = vmul.f32 %v3384_v19, %v2772_v49  ;;  %v3386_v50 = vpop.eup %3385 }
 0x69c   :  { %v2798_v8 = vmul.f32 %v3386_v50, %v2795_v52 }
 0x69d   :  { %v2777_v46 = vsel %vm2776_vm1, %v2775_v11, 0.0 }
 0x69e   :  { %v3388_v26 = vpop.eup %3387  ;;  %2778 = vadd.xlane.f32.xlu0 %v2777_v46 }
 0x69f   :  { %v2801_v31 = vmul.f32 %v3388_v26, %v2798_v8 }
 0x6a1   :  { %v2802_v10 = vsel %vm2776_vm1, %v2801_v31, 0.0 }
 0x6a2   :  { %2803 = vadd.xlane.f32.xlu1 %v2802_v10 }
 0x6a3   :  { %3584 = shalt.err (!%p3581_p12)
}
 0x6a4   :  { %s6284_s28 = sld [smem:[#allocation54_spill]] }
 0x6aa   :  { %s3585_s30 = scalar_lea.hbm %s6284_s28, 16 }
 0x6ab   :  { %p3586_p13 = scmp.ne.s32.totalorder %s6284_s28, %s3585_s30  ;;  %p3589_p0 = scmp.lt.u32.totalorder %s3585_s30, %s6284_s28 }
 0x6ad   :  { %p3591_p1 = pnand %p3589_p0, %p3586_p13 }
 0x6af   :  { %3594 = shalt.err (!%p3591_p1)
}
 0x6b0   :  { %2848 = dma.vmem_to_hbm [thread:$0]  %s2846_s4, 16, %s6284_s28, [#allocation21]  }
 0x6b1   :  { %s3595_s20 = scalar_lea.vmem %s5941_s26, 32  ;;  %p3600_p3 = scmp.lt.s32.totalorder %s5941_s26, %s5941_s26 }
 0x6b2   :  { %p3596_p2 = scmp.ne.s32.totalorder %s5941_s26, %s3595_s20  ;;  %p3601_p4 = scmp.lt.s32.totalorder %s3595_s20, %s3595_s20 }
 0x6b4   :  { %p3602_p5 = por %p3601_p4, %p3600_p3 }
 0x6b6   :  { %p3603_p6 = pnand %p3602_p5, %p3596_p2 }
 0x6b8   :  { %3606 = shalt.err (!%p3603_p6)
}
 0x6b9   :  { %s6285_s1 = sld [smem:[#allocation56_spill]] }
 0x6bf   :  { %s3607_s7 = scalar_lea.hbm %s6285_s1, 32 }
 0x6c0   :  { %p3608_p7 = scmp.ne.s32.totalorder %s6285_s1, %s3607_s7  ;;  %p3611_p8 = scmp.lt.u32.totalorder %s3607_s7, %s6285_s1 }
 0x6c2   :  { %p3613_p9 = pnand %p3611_p8, %p3608_p7 }
 0x6c4   :  { %3616 = shalt.err (!%p3613_p9)
}
 0x6c5   :  { %2870 = dma.vmem_to_hbm [thread:$0]  %s5941_s26, 32, %s6285_s1, [#allocation24]  }
 0x6c6   :  { %s3830_s0 = smov [#allocation26]   ;;  %s3831_s5 = smov [#allocation19]  }
 0x6c7   :  { %s2887_s12 = sshll.u32 %s3830_s0, 4  ;;  %s2832_s9 = sshll.u32 %s3831_s5, 4  ;;  %s2888_s12 = int_to_ptr.vmem [resolvable:$true] %s2887_s12  ;;  %s2833_s9 = int_to_ptr.vmem [resolvable:$true] %s2832_s9 }
 0x6c8   :  { %s3617_s13 = scalar_lea.vmem %s2888_s12, 32  ;;  %p3622_p11 = scmp.lt.s32.totalorder %s2888_s12, %s2888_s12 }
 0x6c9   :  { %p3618_p10 = scmp.ne.s32.totalorder %s2888_s12, %s3617_s13  ;;  %p3623_p12 = scmp.lt.s32.totalorder %s3617_s13, %s3617_s13 }
 0x6cb   :  { %p3624_p13 = por %p3623_p12, %p3622_p11 }
 0x6cd   :  { %p3625_p0 = pnand %p3624_p13, %p3618_p10 }
 0x6cf   :  { %3628 = shalt.err (!%p3625_p0)
}
 0x6d0   :  { %s3629_s21 = scalar_lea.hbm %s3995_s25, 32 }
 0x6d1   :  { %p3630_p1 = scmp.ne.s32.totalorder %s3995_s25, %s3629_s21  ;;  %p3633_p2 = scmp.lt.u32.totalorder %s3629_s21, %s3995_s25 }
 0x6d3   :  { %p3635_p3 = pnand %p3633_p2, %p3630_p1 }
 0x6d5   :  { %3638 = shalt.err (!%p3635_p3)
}
 0x6d6   :  { %2890 = dma.vmem_to_hbm [thread:$0]  %s2888_s12, 32, %s3995_s25, [#allocation27]  }
 0x6d7   :  { %s3639_s14 = scalar_lea.vmem %s2833_s9, 16384  ;;  %p3644_p5 = scmp.lt.s32.totalorder %s2833_s9, %s2833_s9 }
 0x6d8   :  { %p3640_p4 = scmp.ne.s32.totalorder %s2833_s9, %s3639_s14  ;;  %p3645_p6 = scmp.lt.s32.totalorder %s3639_s14, %s3639_s14 }
 0x6da   :  { %p3646_p7 = por %p3645_p6, %p3644_p5 }
 0x6dc   :  { %p3647_p8 = pnand %p3646_p7, %p3640_p4 }
 0x6de   :  { %3650 = shalt.err (!%p3647_p8)
}
 0x6df   :  { %s6286_s10 = sld [smem:[#allocation53_spill]] }
 0x6e5   :  { %s3651_s11 = scalar_lea.hbm %s6286_s10, 16384 }
 0x6e6   :  { %p3652_p9 = scmp.ne.s32.totalorder %s6286_s10, %s3651_s11  ;;  %p3655_p10 = scmp.lt.u32.totalorder %s3651_s11, %s6286_s10 }
 0x6e8   :  { %p3657_p11 = pnand %p3655_p10, %p3652_p9 }
 0x6ea   :  { %3660 = shalt.err (!%p3657_p11)
}
 0x6eb   :  { %2838 = dma.vmem_to_hbm [thread:$0]  %s2833_s9, 16384, %s6286_s10, [#allocation5], %s3817_s2, %s3817_s2, %s3818_s24  }
 0x6ec   :  { %s3832_s25 = smov [#allocation22]   ;;  %s3833_s16 = smov [#allocation25]  }
 0x6ed   :  { %s2854_s8 = sshll.u32 %s3832_s25, 4  ;;  %s2877_s18 = sshll.u32 %s3833_s16, 4  ;;  %s2855_s8 = int_to_ptr.vmem [resolvable:$true] %s2854_s8  ;;  %s2878_s18 = int_to_ptr.vmem [resolvable:$true] %s2877_s18 }
 0x6ee   :  { %s3661_s22 = scalar_lea.vmem %s2855_s8, 4096  ;;  %p3666_p13 = scmp.lt.s32.totalorder %s2855_s8, %s2855_s8 }
 0x6ef   :  { %p3662_p12 = scmp.ne.s32.totalorder %s2855_s8, %s3661_s22  ;;  %p3667_p0 = scmp.lt.s32.totalorder %s3661_s22, %s3661_s22 }
 0x6f1   :  { %p3668_p1 = por %p3667_p0, %p3666_p13 }
 0x6f3   :  { %p3669_p2 = pnand %p3668_p1, %p3662_p12 }
 0x6f5   :  { %3672 = shalt.err (!%p3669_p2)
}
 0x6f6   :  { %s6287_s4 = sld [smem:[#allocation55_spill]] }
 0x6fc   :  { %s3673_s23 = scalar_lea.hbm %s6287_s4, 4096 }
 0x6fd   :  { %p3674_p3 = scmp.ne.s32.totalorder %s6287_s4, %s3673_s23  ;;  %p3677_p4 = scmp.lt.u32.totalorder %s3673_s23, %s6287_s4 }
 0x6ff   :  { %p3679_p5 = pnand %p3677_p4, %p3674_p3 }
 0x701   :  { %3682 = shalt.err (!%p3679_p5)
}
 0x702   :  { %2860 = dma.vmem_to_hbm [thread:$0]  %s2855_s8, 4096, %s6287_s4, [#allocation21], %s3820_s15, %s3820_s15, %s3821_s27  }
 0x703   :  { %s3683_s26 = scalar_lea.vmem %s2878_s18, 32  ;;  %p3688_p7 = scmp.lt.s32.totalorder %s2878_s18, %s2878_s18 }
 0x704   :  { %p3684_p6 = scmp.ne.s32.totalorder %s2878_s18, %s3683_s26  ;;  %p3689_p8 = scmp.lt.s32.totalorder %s3683_s26, %s3683_s26 }
 0x706   :  { %p3690_p9 = por %p3689_p8, %p3688_p7 }
 0x708   :  { %p3691_p10 = pnand %p3690_p9, %p3684_p6 }
 0x70a   :  { %3694 = shalt.err (!%p3691_p10)
}
 0x70b   :  { %s3695_s17 = scalar_lea.hbm %s3990_s29, 32 }
 0x70c   :  { %p3696_p11 = scmp.ne.s32.totalorder %s3990_s29, %s3695_s17  ;;  %p3699_p12 = scmp.lt.u32.totalorder %s3695_s17, %s3990_s29 }
 0x70e   :  { %p3701_p13 = pnand %p3699_p12, %p3696_p11 }
 0x710   :  { %3704 = shalt.err (!%p3701_p13)
}
 0x711   :  { %2880 = dma.vmem_to_hbm [thread:$0]  %s2878_s18, 32, %s3990_s29, [#allocation24]  }
 0x712   :  { %s3834_s6 = smov [#allocation28]   ;;  %s3835_s27 = smov [#allocation29]  }
 0x713   :  { %s2896_s15 = sshll.u32 %s3834_s6, 4  ;;  %s2909_s28 = sshll.u32 %s3835_s27, 4  ;;  %s2897_s15 = int_to_ptr.vmem [resolvable:$true] %s2896_s15  ;;  %s2910_s28 = int_to_ptr.vmem [resolvable:$true] %s2909_s28 }
 0x714   :  { %s3705_s30 = scalar_lea.vmem %s2897_s15, 4096  ;;  %p3710_p1 = scmp.lt.s32.totalorder %s2897_s15, %s2897_s15 }
 0x715   :  { %p3706_p0 = scmp.ne.s32.totalorder %s2897_s15, %s3705_s30  ;;  %p3711_p2 = scmp.lt.s32.totalorder %s3705_s30, %s3705_s30 }
 0x717   :  { %p3712_p3 = por %p3711_p2, %p3710_p1 }
 0x719   :  { %p3713_p4 = pnand %p3712_p3, %p3706_p0 }
 0x71b   :  { %3716 = shalt.err (!%p3713_p4)
}
 0x71c   :  { %s3717_s20 = scalar_lea.hbm %s4000_s19, 4096 }
 0x71d   :  { %p3718_p5 = scmp.ne.s32.totalorder %s4000_s19, %s3717_s20  ;;  %p3721_p6 = scmp.lt.u32.totalorder %s3717_s20, %s4000_s19 }
 0x71f   :  { %p3723_p7 = pnand %p3721_p6, %p3718_p5 }
 0x721   :  { %3726 = shalt.err (!%p3723_p7)
}
 0x722   :  { %2902 = dma.vmem_to_hbm [thread:$0]  %s2897_s15, 4096, %s4000_s19, [#allocation27], %s3817_s2, %s3817_s2, %s3818_s24  }
 0x723   :  { %s3727_s29 = scalar_lea.vmem %s2910_s28, 16  ;;  %s3731_s1 = scalar_lea.vmem %s2910_s28, 32 }
 0x724   :  { %p3728_p8 = scmp.ne.s32.totalorder %s2910_s28, %s3727_s29  ;;  %p3732_p9 = scmp.lt.s32.totalorder %s2910_s28, %s2910_s28 }
 0x725   :  { %p3733_p10 = scmp.lt.s32.totalorder %s3731_s1, %s3727_s29 }
 0x727   :  { %p3734_p11 = por %p3733_p10, %p3732_p9 }
 0x729   :  { %p3735_p12 = pnand %p3734_p11, %p3728_p8 }
 0x72b   :  { %3738 = shalt.err (!%p3735_p12)
}
 0x72c   :  { %s3739_s7 = scalar_lea.hbm %s4005_s3, 16 }
 0x72d   :  { %p3740_p13 = scmp.ne.s32.totalorder %s4005_s3, %s3739_s7  ;;  %p3743_p0 = scmp.lt.u32.totalorder %s3739_s7, %s4005_s3 }
 0x72f   :  { %p3745_p1 = pnand %p3743_p0, %p3740_p13 }
 0x731   :  { %3748 = shalt.err (!%p3745_p1)
}
 0x732   :  { %2912 = dma.vmem_to_hbm [thread:$0]  %s2910_s28, 16, %s4005_s3, [#allocation30]   ;;  %v2779_v3 = vpop.xlane.xlu0 %2778  ;;  %v2804_v60 = vpop.xlane.xlu1 %2803 }
 0x733   :  { %v2780_v4 = vrot.slane %v2779_v3, 4  ;;  %v2805_v57 = vrot.slane %v2804_v60, 4  ;;  %s6288_s19 = sld [smem:[#allocation52_spill]] }
 0x735   :  { %v2781_v62 = vadd.f32 %v2780_v4, %v2779_v3  ;;  %v2806_v44 = vadd.f32 %v2805_v57, %v2804_v60 }
 0x737   :  { %v2782_v59 = vrot.slane %v2781_v62, 2  ;;  %v2807_v45 = vrot.slane %v2806_v44, 2 }
 0x739   :  { %v2783_v37 = vadd.f32 %v2782_v59, %v2781_v62  ;;  %v2808_v22 = vadd.f32 %v2807_v45, %v2806_v44  ;;  %s3749_s5 = scalar_lea.hbm %s6288_s19, 16 }
 0x73a   :  { %p3750_p2 = scmp.ne.s32.totalorder %s6288_s19, %s3749_s5  ;;  %p3753_p3 = scmp.lt.u32.totalorder %s3749_s5, %s6288_s19 }
 0x73b   :  { %v2784_v41 = vrot.slane %v2783_v37, 1  ;;  %v2809_v43 = vrot.slane %v2808_v22, 1 }
 0x73c   :  { %p3755_p4 = pnand %p3753_p3, %p3750_p2 }
 0x73d   :  { %v2785_v36 = vadd.f32 %v2784_v41, %v2783_v37  ;;  %v2810_v35 = vadd.f32 %v2809_v43, %v2808_v22 }
 0x73f   :  { %3285 = vpush %v2785_v36 }
 0x740   :  { %3287 = vpush %v2810_v35 }
 0x770   :  { %s3286_s3 = spop %3285 }
 0x771   :  { %s3288_s2 = spop %3287 }
 0x772   :  { %s2812_s24 = sadd.f32 %s3288_s2, %s3286_s3 }
 0x774   :  { %s2813_s0 = smul.f32 -0.5, %s2812_s24 }
 0x776   :  { %s2816_s12 = smul.f32 0.125, %s2813_s0 }
 0x778   :  { %2818 = sst [smem:[#allocation18]] %s2816_s12 }
 0x779   :  { %3758 = shalt.err (!%p3755_p4)
}
 0x77a   :  { %s3836_s9 = smov [#allocation18]  }
 0x77b   :  { %2826 = dma.smem_to_hbm %s3836_s9, 16, %s6288_s19, [#allocation6]  }
 0x77c   :  { %3769 = dma.done.wait [#allocation6], 16  }
 0x77d   :  { %3770 = vsyncadd [#allocation6], 4294967280 }
 0x77e   :  { %3771 = dma.done.wait [#allocation5], 16384  }
 0x77f   :  { %3772 = vsyncadd [#allocation5], 4294950912 }
 0x780   :  { %3773 = dma.done.wait [#allocation21], 4112  }
 0x781   :  { %3774 = vsyncadd [#allocation21], 4294963184 }
 0x782   :  { %3775 = dma.done.wait [#allocation24], 64  }
 0x783   :  { %3776 = vsyncadd [#allocation24], 4294967232 }
 0x784   :  { %3777 = dma.done.wait [#allocation27], 4128  }
 0x785   :  { %3778 = vsyncadd [#allocation27], 4294963168 }
 0x786   :  { %3779 = dma.done.wait [#allocation30], 16  }
 0x787   :  { %3780 = vsyncadd [#allocation30], 4294967280 }
 0x788   :  { %2940 = sfence }
 0x789   :  { %2941 = vsyncpa [#allocation4], 1 }
 0x78a   :  { %2942 = vsyncpa [#allocation8], 1 }
 0x78b   :  { %2943 = vsyncpa [#allocation11], 1 }
 0x78c   :  { %2944 = vsyncpa [#allocation14], 1 }
 0x78d   :  { %2945 = vsyncpa [#allocation17], 1 }
 0x78e   :  { %2946 = vsyncpa [#allocation5], 1 }
 0x78f   :  { %2947 = vsyncpa [#allocation21], 1 }
 0x790   :  { %2948 = vsyncpa [#allocation24], 1 }
 0x791   :  { %2949 = vsyncpa [#allocation27], 1 }
 0x792   :  { %2950 = vsyncpa [#allocation30], 1 }
 0x793   :  { %2951 = vsyncpa [#allocation6], 1 }

</bundles_post_ra>
